<compile_context>
chip_gen: v7x
topology: tpu7x:2x2x1
jax: 0.10.0
libtpu: 0.0.40
codegen_flags: <defaults>
</compile_context>

<pallas_src>
import jax
import jax.numpy as jnp
from jax.experimental import pallas as pl
from jax.experimental.pallas import tpu as pltpu


def _link_concat_kernel(x_ref, w1x_ref, adj_ref, w1a_ref,
                        b1_ref, scale_ref, shift_ref, w2_ref, b2_ref,
                        o_ref, acc_ref):
    """Grid = (M tiles over nodes, K tiles over the adjacency/neighbor axis).

    K is the reduction axis (last grid dim, "arbitrary"); the output block and
    the f32 accumulator stay resident across it.
    """
    k = pl.program_id(1)

    @pl.when(k == 0)
    def _():
        # Feature half of the concatenated input: X @ W1[:in_ch].
        acc_ref[...] = jnp.dot(x_ref[...].astype(jnp.bfloat16), w1x_ref[...],
                               preferred_element_type=jnp.float32)

    # Adjacency half, one K tile per step: A[:, k*tk:(k+1)*tk] @ W1a[k*tk:(k+1)*tk, :].
    # In-kernel upcast to bf16 (no-op if the adjacency already lives as bf16).
    acc_ref[...] += jnp.dot(adj_ref[...].astype(jnp.bfloat16), w1a_ref[...],
                            preferred_element_type=jnp.float32)

    @pl.when(k == pl.num_programs(1) - 1)
    def _():
        h = acc_ref[...] + b1_ref[...]               # first Linear bias
        h = jnp.maximum(h, 0.0)                      # ReLU
        h = h * scale_ref[...] + shift_ref[...]      # eval-mode BatchNorm1d; dropout = identity
        o_ref[...] = (jnp.dot(h.astype(jnp.bfloat16), w2_ref[...],
                              preferred_element_type=jnp.float32)
                      + b2_ref[...]).astype(o_ref.dtype)


def _pick_tile(dim, desired, quantum):
    """Largest multiple of `quantum` that divides `dim` and is <= desired; else `dim`."""
    t = min(desired, dim)
    t -= t % quantum
    while t >= quantum:
        if dim % t == 0:
            return t
        t -= quantum
    return dim  # full extent is always a legal block size


def _choose_tiles(n, in_ch, hidden, out_pad, x_itemsize, adj_itemsize, budget_bytes):
    """Derive (tm, tk) from a VMEM budget; prefer >=2 M tiles and a single K step."""
    tm = _pick_tile(n, min(max(16, n // 2), 2048), 16)   # bf16 sublane quantum = 16

    def footprint(tm_, tk_):
        return (2 * tm_ * in_ch * x_itemsize      # X tile (double buffered)
                + 2 * in_ch * hidden * 2          # W1_x (bf16)
                + 2 * tm_ * tk_ * adj_itemsize    # adjacency tile
                + 2 * tk_ * hidden * 2            # W1_adj K tile (bf16)
                + 2 * hidden * out_pad * 2        # W2 (bf16, lane-padded)
                + 2 * tm_ * out_pad * 4           # output tile (f32)
                + tm_ * hidden * 4                # f32 accumulator scratch
                + 8 * 8 * 128 * 4)                # small epilogue params (padded)

    tk = _pick_tile(n, n, 128)
    while footprint(tm, tk) > budget_bytes and tk % 128 == 0 and tk > 128:
        nxt = _pick_tile(n, tk - 128, 128)
        if nxt in (tk, n):
            break
        tk = nxt
    while footprint(tm, tk) > budget_bytes and tm > 16:
        nxt = _pick_tile(n, max(16, tm // 2), 16)
        if nxt == tm:
            break
        tm = nxt
    return tm, tk, footprint(tm, tk)


def link_concat_forward(x, adj, params, *, vmem_budget_bytes=24 * 1024 * 1024):
    """LINK_Concat forward (2-layer MLP over [X ; A]), inference mode.

    x:   (N, in_ch) node features (any float dtype; upcast to bf16 in-kernel)
    adj: (N, N)     dense 0/1 adjacency (bf16 recommended; upcast in-kernel)
    params: w1 (in_ch+N, hidden), b1 (hidden,), bn_{gamma,beta,mean,var} (hidden,),
            bn_eps, w2 (hidden, out_ch), b2 (out_ch,)
    """
    n, in_ch = x.shape
    assert adj.shape == (n, n)

    w1 = params["w1"]
    hidden = w1.shape[1]
    w2 = params["w2"]
    out_ch = w2.shape[1]
    eps = params.get("bn_eps", 1e-5)

    # Column order of [X ; A]: first in_ch columns are X, remaining N are A.
    w1x_bf = w1[:in_ch].astype(jnp.bfloat16)
    w1a_bf = w1[in_ch:].astype(jnp.bfloat16)

    # Fold eval-mode BatchNorm1d into a single scale/shift.
    scale = (params["bn_gamma"] / jnp.sqrt(params["bn_var"] + eps)).astype(jnp.float32)
    shift = (params["bn_beta"] - params["bn_mean"] * scale).astype(jnp.float32)
    b1_2d = params["b1"].reshape(1, hidden).astype(jnp.float32)
    scale_2d = scale.reshape(1, hidden)
    shift_2d = shift.reshape(1, hidden)

    # Lane-dense output: pad W2/b2 columns to a multiple of 128 (zeros), slice after.
    out_pad = ((out_ch + 127) // 128) * 128
    w2_bf = w2.astype(jnp.bfloat16)
    b2_2d = params["b2"].reshape(1, out_ch).astype(jnp.float32)
    if out_pad != out_ch:
        w2_bf = jnp.zeros((hidden, out_pad), jnp.bfloat16).at[:, :out_ch].set(w2_bf)
        b2_2d = jnp.zeros((1, out_pad), jnp.float32).at[:, :out_ch].set(b2_2d)

    tm, tk, fp_bytes = _choose_tiles(
        n, in_ch, hidden, out_pad,
        jnp.dtype(x.dtype).itemsize, jnp.dtype(adj.dtype).itemsize,
        vmem_budget_bytes)
    # NOTE: if n has no divisor that is a multiple of 16 (other than n itself),
    # tm falls back to the full extent and megacore M-sharding disappears.

    # Footprint-derived limit, kept below v7x's 64 MiB physical VMEM.
    vmem_limit = int(min(60 * 1024 * 1024,
                         max(int(1.5 * fp_bytes) + (2 << 20), 16 << 20)))

    out = pl.pallas_call(
        _link_concat_kernel,
        out_shape=jax.ShapeDtypeStruct((n, out_pad), jnp.float32),
        grid_spec=pltpu.PrefetchScalarGridSpec(
            num_scalar_prefetch=0,
            grid=(n // tm, n // tk),
            in_specs=[
                pl.BlockSpec((tm, in_ch), lambda i, k: (i, 0)),        # X row tile
                pl.BlockSpec((in_ch, hidden), lambda i, k: (0, 0)),    # W1_x (resident)
                pl.BlockSpec((tm, tk), lambda i, k: (i, k)),           # adjacency tile
                pl.BlockSpec((tk, hidden), lambda i, k: (k, 0)),       # W1_adj K tile
                pl.BlockSpec((1, hidden), lambda i, k: (0, 0)),        # b1
                pl.BlockSpec((1, hidden), lambda i, k: (0, 0)),        # BN scale
                pl.BlockSpec((1, hidden), lambda i, k: (0, 0)),        # BN shift
                pl.BlockSpec((hidden, out_pad), lambda i, k: (0, 0)),  # W2 (lane-padded)
                pl.BlockSpec((1, out_pad), lambda i, k: (0, 0)),       # b2 (lane-padded)
            ],
            out_specs=pl.BlockSpec((tm, out_pad), lambda i, k: (i, 0)),
            scratch_shapes=[pltpu.VMEM((tm, hidden), jnp.float32)],
        ),
        compiler_params=pltpu.CompilerParams(
            dimension_semantics=("parallel", "arbitrary"),
            vmem_limit_bytes=vmem_limit,
        ),
    )(x, w1x_bf, adj, w1a_bf, b1_2d, scale_2d, shift_2d, w2_bf, b2_2d)

    return out[:, :out_ch] if out_pad != out_ch else out


def link_concat_ref(x, adj, params):
    """Pure-JAX reference with the same dtype policy as the kernel."""
    eps = params.get("bn_eps", 1e-5)
    z = jnp.concatenate([x.astype(jnp.bfloat16), adj.astype(jnp.bfloat16)], axis=1)
    h = jnp.dot(z, params["w1"].astype(jnp.bfloat16),
                preferred_element_type=jnp.float32) + params["b1"]
    h = jnp.maximum(h, 0.0)
    scale = params["bn_gamma"] / jnp.sqrt(params["bn_var"] + eps)
    shift = params["bn_beta"] - params["bn_mean"] * scale
    h = h * scale + shift
    # dropout: identity at inference
    return (jnp.dot(h.astype(jnp.bfloat16), params["w2"].astype(jnp.bfloat16),
                    preferred_element_type=jnp.float32) + params["b2"])


if __name__ == "__main__":
    N = 1024       # nodes
    IN_CH = 128    # input feature channels
    HIDDEN = 128   # hidden channels
    OUT_CH = 32    # output channels (logits)

    key = jax.random.PRNGKey(0)
    k1, k2, k3, k4, k5, k6, k7, k8, k9, k10 = jax.random.split(key, 10)

    x = jax.random.normal(k1, (N, IN_CH), dtype=jnp.float32)
    # Dense 0/1 adjacency (densified edge_index), stored as bf16 in HBM (exact for 0/1).
    adj = (jax.random.uniform(k2, (N, N), dtype=jnp.float32) < 0.02).astype(jnp.bfloat16)

    params = {
        "w1": jax.random.normal(k3, (IN_CH + N, HIDDEN), dtype=jnp.float32)
              * (1.0 / jnp.sqrt(IN_CH + N)),
        "b1": 0.1 * jax.random.normal(k4, (HIDDEN,), dtype=jnp.float32),
        "bn_gamma": 1.0 + 0.1 * jax.random.normal(k5, (HIDDEN,), dtype=jnp.float32),
        "bn_beta": 0.1 * jax.random.normal(k6, (HIDDEN,), dtype=jnp.float32),
        "bn_mean": 0.1 * jax.random.normal(k7, (HIDDEN,), dtype=jnp.float32),
        "bn_var": jax.random.uniform(k8, (HIDDEN,), dtype=jnp.float32,
                                     minval=0.5, maxval=1.5),
        "bn_eps": 1e-5,
        "w2": jax.random.normal(k9, (HIDDEN, OUT_CH), dtype=jnp.float32)
              * (1.0 / jnp.sqrt(HIDDEN)),
        "b2": 0.1 * jax.random.normal(k10, (OUT_CH,), dtype=jnp.float32),
    }

    out = link_concat_forward(x, adj, params)
    out = jax.block_until_ready(out)

    ref = link_concat_ref(x, adj, params)
    assert out.shape == (N, OUT_CH)
    assert jnp.allclose(out, ref, atol=2e-2, rtol=2e-2)

    print("KERNEL_OK")
</pallas_src>

<mosaic_0001>
module attributes {stable_mosaic.version = 11 : i64} {
  func.func @_link_concat_kernel(%arg0: i32, %arg1: i32, %arg2: memref<512x128xf32, #tpu.memory_space<vmem>>, %arg3: memref<128x128xbf16, #tpu.memory_space<vmem>>, %arg4: memref<512x1024xbf16, #tpu.memory_space<vmem>>, %arg5: memref<1024x128xbf16, #tpu.memory_space<vmem>>, %arg6: memref<1x128xf32, #tpu.memory_space<vmem>>, %arg7: memref<1x128xf32, #tpu.memory_space<vmem>>, %arg8: memref<1x128xf32, #tpu.memory_space<vmem>>, %arg9: memref<128x128xbf16, #tpu.memory_space<vmem>>, %arg10: memref<1x128xf32, #tpu.memory_space<vmem>>, %arg11: memref<512x128xf32, #tpu.memory_space<vmem>>, %arg12: memref<512x128xf32, #tpu.memory_space<vmem>>) attributes {dimension_semantics = [#tpu.dimension_semantics<parallel>, #tpu.dimension_semantics<arbitrary>], iteration_bounds = array<i64: 2, 1>, scalar_prefetch = 0 : i64, scratch_operands = 1 : i64, tpu.core_type = #tpu.core_type<tc>, window_params = [{transform_indices = @transform_0, window_bounds = array<i64: 512, 128>}, {pipeline_mode = #tpu.pipeline_mode<synchronous>, transform_indices = @transform_1, window_bounds = array<i64: 128, 128>}, {transform_indices = @transform_2, window_bounds = array<i64: 512, 1024>}, {transform_indices = @transform_3, window_bounds = array<i64: 1024, 128>}, {pipeline_mode = #tpu.pipeline_mode<synchronous>, transform_indices = @transform_4, window_bounds = array<i64: 1, 128>}, {pipeline_mode = #tpu.pipeline_mode<synchronous>, transform_indices = @transform_5, window_bounds = array<i64: 1, 128>}, {pipeline_mode = #tpu.pipeline_mode<synchronous>, transform_indices = @transform_6, window_bounds = array<i64: 1, 128>}, {pipeline_mode = #tpu.pipeline_mode<synchronous>, transform_indices = @transform_7, window_bounds = array<i64: 128, 128>}, {pipeline_mode = #tpu.pipeline_mode<synchronous>, transform_indices = @transform_8, window_bounds = array<i64: 1, 128>}, {transform_indices = @transform_9, window_bounds = array<i64: 512, 128>}]} {
    %c0_i32 = arith.constant 0 : i32
    %0 = arith.cmpi eq, %arg1, %c0_i32 : i32
    %1 = arith.extui %0 : i1 to i32
    %c0_i32_0 = arith.constant 0 : i32
    %2 = arith.cmpi ne, %1, %c0_i32_0 : i32
    scf.if %2 {
      %c0_10 = arith.constant 0 : index
      %c0_11 = arith.constant 0 : index
      %12 = vector.load %arg2[%c0_10, %c0_11] : memref<512x128xf32, #tpu.memory_space<vmem>>, vector<512x128xf32>
      %13 = arith.truncf %12 : vector<512x128xf32> to vector<512x128xbf16>
      %c0_12 = arith.constant 0 : index
      %c0_13 = arith.constant 0 : index
      %14 = vector.load %arg3[%c0_12, %c0_13] : memref<128x128xbf16, #tpu.memory_space<vmem>>, vector<128x128xbf16>
      %cst_14 = arith.constant dense<0.000000e+00> : vector<512x128xf32>
      %15 = tpu.matmul %13, %14, %cst_14 {dimension_numbers = #tpu.dot_dimension_numbers<[1], [0], [0], [1], [0, 0, 1, 1], [], []>} : vector<512x128xbf16>, vector<128x128xbf16>, vector<512x128xf32> -> vector<512x128xf32>
      %c0_15 = arith.constant 0 : index
      %c0_16 = arith.constant 0 : index
      %16 = vector.load %arg12[%c0_15, %c0_16] : memref<512x128xf32, #tpu.memory_space<vmem>>, vector<512x128xf32>
      tpu.vector_store %arg12[%c0_15, %c0_16], %15 {strides = array<i32>} : memref<512x128xf32, #tpu.memory_space<vmem>>, vector<512x128xf32>,
    } else {
    }
    %c0 = arith.constant 0 : index
    %c0_1 = arith.constant 0 : index
    %3 = vector.load %arg12[%c0, %c0_1] : memref<512x128xf32, #tpu.memory_space<vmem>>, vector<512x128xf32>
    %c0_2 = arith.constant 0 : index
    %c0_3 = arith.constant 0 : index
    %4 = vector.load %arg4[%c0_2, %c0_3] : memref<512x1024xbf16, #tpu.memory_space<vmem>>, vector<512x1024xbf16>
    %c0_4 = arith.constant 0 : index
    %c0_5 = arith.constant 0 : index
    %5 = vector.load %arg5[%c0_4, %c0_5] : memref<1024x128xbf16, #tpu.memory_space<vmem>>, vector<1024x128xbf16>
    %cst = arith.constant dense<0.000000e+00> : vector<512x128xf32>
    %6 = tpu.matmul %4, %5, %cst {dimension_numbers = #tpu.dot_dimension_numbers<[1], [0], [0], [1], [0, 0, 1, 1], [], []>} : vector<512x1024xbf16>, vector<1024x128xbf16>, vector<512x128xf32> -> vector<512x128xf32>
    %7 = arith.addf %3, %6 : vector<512x128xf32>
    %c0_6 = arith.constant 0 : index
    %c0_7 = arith.constant 0 : index
    %8 = vector.load %arg12[%c0_6, %c0_7] : memref<512x128xf32, #tpu.memory_space<vmem>>, vector<512x128xf32>
    tpu.vector_store %arg12[%c0_6, %c0_7], %7 {strides = array<i32>} : memref<512x128xf32, #tpu.memory_space<vmem>>, vector<512x128xf32>,
    %c0_i32_8 = arith.constant 0 : i32
    %9 = arith.cmpi eq, %arg1, %c0_i32_8 : i32
    %10 = arith.extui %9 : i1 to i32
    %c0_i32_9 = arith.constant 0 : i32
    %11 = arith.cmpi ne, %10, %c0_i32_9 : i32
    scf.if %11 {
      %c0_10 = arith.constant 0 : index
      %c0_11 = arith.constant 0 : index
      %12 = vector.load %arg12[%c0_10, %c0_11] : memref<512x128xf32, #tpu.memory_space<vmem>>, vector<512x128xf32>
      %c0_12 = arith.constant 0 : index
      %c0_13 = arith.constant 0 : index
      %13 = vector.load %arg6[%c0_12, %c0_13] : memref<1x128xf32, #tpu.memory_space<vmem>>, vector<1x128xf32>
      %14 = vector.broadcast %13 : vector<1x128xf32> to vector<512x128xf32>
      %15 = arith.addf %12, %14 : vector<512x128xf32>
      %cst_14 = arith.constant 0.000000e+00 : f32
      %16 = vector.broadcast %cst_14 : f32 to vector<512x128xf32>
      %17 = arith.maximumf %15, %16 : vector<512x128xf32>
      %c0_15 = arith.constant 0 : index
      %c0_16 = arith.constant 0 : index
      %18 = vector.load %arg7[%c0_15, %c0_16] : memref<1x128xf32, #tpu.memory_space<vmem>>, vector<1x128xf32>
      %19 = vector.broadcast %18 : vector<1x128xf32> to vector<512x128xf32>
      %20 = arith.mulf %17, %19 : vector<512x128xf32>
      %c0_17 = arith.constant 0 : index
      %c0_18 = arith.constant 0 : index
      %21 = vector.load %arg8[%c0_17, %c0_18] : memref<1x128xf32, #tpu.memory_space<vmem>>, vector<1x128xf32>
      %22 = vector.broadcast %21 : vector<1x128xf32> to vector<512x128xf32>
      %23 = arith.addf %20, %22 : vector<512x128xf32>
      %24 = arith.truncf %23 : vector<512x128xf32> to vector<512x128xbf16>
      %c0_19 = arith.constant 0 : index
      %c0_20 = arith.constant 0 : index
      %25 = vector.load %arg9[%c0_19, %c0_20] : memref<128x128xbf16, #tpu.memory_space<vmem>>, vector<128x128xbf16>
      %cst_21 = arith.constant dense<0.000000e+00> : vector<512x128xf32>
      %26 = tpu.matmul %24, %25, %cst_21 {dimension_numbers = #tpu.dot_dimension_numbers<[1], [0], [0], [1], [0, 0, 1, 1], [], []>} : vector<512x128xbf16>, vector<128x128xbf16>, vector<512x128xf32> -> vector<512x128xf32>
      %c0_22 = arith.constant 0 : index
      %c0_23 = arith.constant 0 : index
      %27 = vector.load %arg10[%c0_22, %c0_23] : memref<1x128xf32, #tpu.memory_space<vmem>>, vector<1x128xf32>
      %28 = vector.broadcast %27 : vector<1x128xf32> to vector<512x128xf32>
      %29 = arith.addf %26, %28 : vector<512x128xf32>
      %c0_24 = arith.constant 0 : index
      %c0_25 = arith.constant 0 : index
      %30 = vector.load %arg11[%c0_24, %c0_25] : memref<512x128xf32, #tpu.memory_space<vmem>>, vector<512x128xf32>
      tpu.vector_store %arg11[%c0_24, %c0_25], %29 {strides = array<i32>} : memref<512x128xf32, #tpu.memory_space<vmem>>, vector<512x128xf32>,
    } else {
    }
    return
  }
  func.func @transform_0(%arg0: i32, %arg1: i32) -> (i32, i32) {
    %c0_i32 = arith.constant 0 : i32
    %c0_i32_0 = arith.constant 0 : i32
    return %arg0, %c0_i32 : i32, i32
  }
  func.func @transform_1(%arg0: i32, %arg1: i32) -> (i32, i32) {
    %c0_i32 = arith.constant 0 : i32
    %c0_i32_0 = arith.constant 0 : i32
    %c0_i32_1 = arith.constant 0 : i32
    return %c0_i32, %c0_i32_0 : i32, i32
  }
  func.func @transform_2(%arg0: i32, %arg1: i32) -> (i32, i32) {
    %c0_i32 = arith.constant 0 : i32
    return %arg0, %arg1 : i32, i32
  }
  func.func @transform_3(%arg0: i32, %arg1: i32) -> (i32, i32) {
    %c0_i32 = arith.constant 0 : i32
    %c0_i32_0 = arith.constant 0 : i32
    return %arg1, %c0_i32 : i32, i32
  }
  func.func @transform_4(%arg0: i32, %arg1: i32) -> (i32, i32) {
    %c0_i32 = arith.constant 0 : i32
    %c0_i32_0 = arith.constant 0 : i32
    %c0_i32_1 = arith.constant 0 : i32
    return %c0_i32, %c0_i32_0 : i32, i32
  }
  func.func @transform_5(%arg0: i32, %arg1: i32) -> (i32, i32) {
    %c0_i32 = arith.constant 0 : i32
    %c0_i32_0 = arith.constant 0 : i32
    %c0_i32_1 = arith.constant 0 : i32
    return %c0_i32, %c0_i32_0 : i32, i32
  }
  func.func @transform_6(%arg0: i32, %arg1: i32) -> (i32, i32) {
    %c0_i32 = arith.constant 0 : i32
    %c0_i32_0 = arith.constant 0 : i32
    %c0_i32_1 = arith.constant 0 : i32
    return %c0_i32, %c0_i32_0 : i32, i32
  }
  func.func @transform_7(%arg0: i32, %arg1: i32) -> (i32, i32) {
    %c0_i32 = arith.constant 0 : i32
    %c0_i32_0 = arith.constant 0 : i32
    %c0_i32_1 = arith.constant 0 : i32
    return %c0_i32, %c0_i32_0 : i32, i32
  }
  func.func @transform_8(%arg0: i32, %arg1: i32) -> (i32, i32) {
    %c0_i32 = arith.constant 0 : i32
    %c0_i32_0 = arith.constant 0 : i32
    %c0_i32_1 = arith.constant 0 : i32
    return %c0_i32, %c0_i32_0 : i32, i32
  }
  func.func @transform_9(%arg0: i32, %arg1: i32) -> (i32, i32) {
    %c0_i32 = arith.constant 0 : i32
    %c0_i32_0 = arith.constant 0 : i32
    return %arg0, %c0_i32 : i32, i32
  }
}

</mosaic_0001>

<bundles_post_ra>
// kernel: tpu_custom_call.1
= control target key start
LH: loop header
LB: loop body
LE: loop exit
PB: predicated region body
PF: predicated region fallthrough
CT: control target
= control target key end

     0   :  { %s8515_s0 = inlined_call_operand.hbm [shape: f32[1024,128], index: 0, kind: input, shape index: {}]   ;;  %s8516_s1 = inlined_call_operand.hbm [shape: bf16[128,128], index: 1, kind: input, shape index: {}]   ;;  %s8517_s2 = inlined_call_operand.hbm [shape: bf16[1024,1024], index: 2, kind: input, shape index: {}]   ;;  %s8518_s3 = inlined_call_operand.hbm [shape: bf16[1024,128], index: 3, kind: input, shape index: {}]   ;;  %s8519_s4 = inlined_call_operand.hbm [shape: f32[1,128], index: 4, kind: input, shape index: {}]   ;;  %s8520_s5 = inlined_call_operand.hbm [shape: f32[1,128], index: 5, kind: input, shape index: {}]   ;;  %s8521_s6 = inlined_call_operand.hbm [shape: f32[1,128], index: 6, kind: input, shape index: {}]   ;;  %s8522_s7 = inlined_call_operand.hbm [shape: bf16[128,128], index: 7, kind: input, shape index: {}]   ;;  %s8523_s8 = inlined_call_operand.hbm [shape: f32[1,128], index: 8, kind: input, shape index: {}]   ;;  %s8524_s9 = inlined_call_operand.hbm [shape: f32[1024,128], index: 9, kind: output, shape index: {}]  }
   0x1   :  { %8545 = sst [smem:[#allocation88_spill]] %s8515_s0 }
   0x2   :  { %8546 = sst [smem:[#allocation89_spill]] %s8516_s1 }
   0x3   :  { %8547 = sst [smem:[#allocation90_spill]] %s8519_s4 }
   0x4   :  { %8548 = sst [smem:[#allocation91_spill]] %s8521_s6 }
   0x5   :  { %8549 = sst [smem:[#allocation92_spill]] %s8524_s9 }
   0x6   :  { %14 = vsyncpa [#allocation4], 0 }
   0x7   :  { %16 = vsyncpa [#allocation4 + $0x1], 0 }
   0x8   :  { %17 = vsyncpa [#allocation7], 0 }
   0x9   :  { %18 = vsyncpa [#allocation11], 0 }
   0xa   :  { %19 = vsyncpa [#allocation14], 0 }
   0xb   :  { %20 = vsyncpa [#allocation17], 0 }
   0xc   :  { %21 = vsyncpa [#allocation5], 0 }
   0xd   :  { %23 = vsyncpa [#allocation5 + $0x1], 0  ;;  %s7062_s30 = smov 0   ;;  %s7064_s10 = smov 0  }
   0xe   :  { %s7066_s11 = smov 0   ;;  %s7068_s12 = smov 0  }
   0xf   :  { %s7070_s13 = smov 0   ;;  %s7072_s14 = smov 0  }
  0x10 LB: > { %8550 = sst [smem:[#allocation27_spill]] %s6983_s12  ;;  %s7093_s15 = sadd.s32 4294967295, %s6991_s14   ;;  %s6991_s14 = sphi %s7072_s14, %s29_s14   ;;  %s6987_s13 = sphi %s7070_s13, %s8712_s13   ;;  %s6983_s12 = sphi %s7068_s12, %s8711_s12   ;;  %s6979_s11 = sphi %s7066_s11, %s8710_s11   ;;  %s6975_s10 = sphi %s7064_s10, %s8709_s10   ;;  %s6971_s30 = sphi %s7062_s30, %s8708_s30  }
  0x11   : > { %8551 = sst [smem:[#allocation28_spill]] %s6991_s14  ;;  %p5415_p0 = scmp.ge.s32.totalorder %s6991_s14, 1 }
  0x12   : > { %p8527_p1 = scmp.eq.s32.totalorder %s7093_s15, 0  ;;  %p278_p2 = scmp.lt.s32.totalorder %s6991_s14, 3 }
  0x13   : > { %s6993_s17 = smov [#allocation6]   ;;  %s6994_s20 = smov [#allocation10]  }
  0x14   : > { %p7098_p3 = pnand %p5415_p0, %p278_p2  ;;  %s290_s18 = sshll.u32 %s6993_s17, 4  ;;  %s7102_s18 = int_to_ptr.vmem [resolvable:$true] %s290_s18 }
  0x15   : > { %s320_s21 = sshll.u32 %s6994_s20, 4  ;;  %s6995_s22 = smov [#allocation13]   ;;  %s7113_s21 = int_to_ptr.vmem [resolvable:$true] %s320_s21 }
  0x16   : > { %s8552_s16 = scalar_select %p7098_p3, 1, 0 }
  0x17   : > { %p6417_p4 = pneg %p7098_p3  ;;  %s7115_s23 = sshll.u32 %s6995_s22, 4  ;;  %s343_s23 = int_to_ptr.vmem [resolvable:$true] %s7115_s23 }
  0x18   : > { %8553 = sst [smem:[#allocation29_spill]] %s8552_s16 }
  0x19   : > { %p7109_p6 = pnand %p6417_p4, %p8527_p1  ;;  %s8555_s1 = sld [smem:[#allocation89_spill]] }
  0x1b   : > { %s8554_s19 = scalar_select %p7109_p6, 1, 0 }
  0x1c   : > { %p7125_p8 = pneg %p7109_p6 }
  0x1f   : > { %s6629_s26 = scalar_lea.hbm %s8555_s1, 1024 }
  0x20   : > { %p6630_p7 = scmp.ne.s32.totalorder %s8555_s1, %s6629_s26  ;;  %p6636_p11 = scmp.lt.u32.totalorder %s6629_s26, %s8555_s1 }
  0x22   : > { %p6632_p9 = pnand %p7125_p8, %p6630_p7 }
  0x24   : > { %p6633_p10 = pneg %p6632_p9 }
  0x26   : > { %p6638_p12 = pnand %p6636_p11, %p6633_p10 }
  0x28   : > { %6641 = shalt.err (!%p6638_p12)
}
  0x29   : > { %s6642_s22 = scalar_lea.vmem %s7102_s18, 1024  ;;  %p6650_p4 = scmp.lt.s32.totalorder %s7102_s18, %s7102_s18 }
  0x2a   : > { %p6643_p13 = scmp.ne.s32.totalorder %s7102_s18, %s6642_s22  ;;  %p6651_p5 = scmp.lt.s32.totalorder %s6642_s22, %s6642_s22 }
  0x2c   : > { %p6645_p0 = pnand %p6643_p13, %p7125_p8  ;;  %p6652_p7 = por %p6651_p5, %p6650_p4 }
  0x2e   : > { %p6646_p2 = pneg %p6645_p0 }
  0x30   : > { %p6653_p9 = pnand %p6652_p7, %p6646_p2 }
  0x32   : > { %6656 = shalt.err (!%p6653_p9)
}
  0x33   : > { %s8529_s24 = smov 64   ;;  %s8531_s25 = smov 4  }
  0x34   : > { %6420 = dma.hbm_to_vmem [thread:$0]  (!%p7109_p6), %s8555_s1, 1024, %s7102_s18, [#allocation7], %s8529_s24, %s8529_s24, %s8531_s25  }
  0x35   : > { %s8557_s4 = sld [smem:[#allocation90_spill]] }
  0x3b   : > { %s6657_s20 = scalar_lea.hbm %s8557_s4, 16 }
  0x3c   : > { %p6658_p5 = scmp.ne.s32.totalorder %s8557_s4, %s6657_s20  ;;  %p6664_p12 = scmp.lt.u32.totalorder %s6657_s20, %s8557_s4 }
  0x3e   : > { %p6660_p10 = pnand %p6658_p5, %p7125_p8 }
  0x40   : > { %p6661_p11 = pneg %p6660_p10 }
  0x42   : > { %p6666_p13 = pnand %p6664_p12, %p6661_p11 }
  0x44   : > { %6669 = shalt.err (!%p6666_p13)
}
  0x45   : > { %s6670_s18 = scalar_lea.vmem %s7113_s21, 16  ;;  %s6677_s9 = scalar_lea.vmem %s7113_s21, 32 }
  0x46   : > { %p6671_p0 = scmp.ne.s32.totalorder %s7113_s21, %s6670_s18  ;;  %p6678_p7 = scmp.lt.s32.totalorder %s7113_s21, %s7113_s21 }
  0x47   : > { %p6679_p9 = scmp.lt.s32.totalorder %s6677_s9, %s6670_s18 }
  0x48   : > { %p6673_p2 = pnand %p6671_p0, %p7125_p8 }
  0x49   : > { %p6680_p5 = por %p6679_p9, %p6678_p7 }
  0x4a   : > { %p6674_p4 = pneg %p6673_p2 }
  0x4c   : > { %p6681_p10 = pnand %p6680_p5, %p6674_p4 }
  0x4e   : > { %6684 = shalt.err (!%p6681_p10)
}
  0x4f   : > { %6426 = dma.hbm_to_vmem [thread:$0]  (!%p7109_p6), %s8557_s4, 16, %s7113_s21, [#allocation11]  }
  0x50   : > { %s8558_s6 = sld [smem:[#allocation91_spill]] }
  0x56   : > { %s6685_s28 = scalar_lea.hbm %s8558_s6, 16 }
  0x57   : > { %p6686_p11 = scmp.ne.s32.totalorder %s8558_s6, %s6685_s28  ;;  %p6692_p0 = scmp.lt.u32.totalorder %s6685_s28, %s8558_s6 }
  0x59   : > { %p6688_p12 = pnand %p6686_p11, %p7125_p8 }
  0x5b   : > { %p6689_p13 = pneg %p6688_p12 }
  0x5d   : > { %p6694_p2 = pnand %p6692_p0, %p6689_p13 }
  0x5f   : > { %6697 = shalt.err (!%p6694_p2)
}
  0x60   : > { %s6698_s9 = scalar_lea.vmem %s343_s23, 16  ;;  %s6705_s21 = scalar_lea.vmem %s343_s23, 32 }
  0x61   : > { %p6699_p4 = scmp.ne.s32.totalorder %s343_s23, %s6698_s9  ;;  %p6706_p5 = scmp.lt.s32.totalorder %s343_s23, %s343_s23 }
  0x62   : > { %p6707_p10 = scmp.lt.s32.totalorder %s6705_s21, %s6698_s9 }
  0x63   : > { %p6701_p7 = pnand %p6699_p4, %p7125_p8 }
  0x64   : > { %p6708_p1 = por %p6707_p10, %p6706_p5 }
  0x65   : > { %p6702_p9 = pneg %p6701_p7 }
  0x67   : > { %p6709_p3 = pnand %p6708_p1, %p6702_p9 }
  0x69   : > { %6712 = shalt.err (!%p6709_p3)
}
  0x6a   : > { %6432 = dma.hbm_to_vmem [thread:$0]  (!%p7109_p6), %s8558_s6, 16, %s343_s23, [#allocation14]  }
  0x6b   : > { %s5414_s26 = sadd.s32 4294967294, %s6991_s14   ;;  %s41_s27 = sadd.s32 1, %s6987_s13 }
  0x6c   : > { %s48_s28 = sadd.s32 1, %s6979_s11  ;;  %p43_p1 = scmp.ge.s32.totalorder %s41_s27, 2 }
  0x6d   : > { %p55_p3 = scmp.ne.s32.totalorder %s6979_s11, %s6975_s10  ;;  %p56_p11 = scmp.eq.s32.totalorder %s6991_s14, 0 }
  0x6e   : > { %p61_p12 = scmp.ne.s32.totalorder %s6975_s10, %s6971_s30  ;;  %s8714_s27 = smov (%p43_p1, %s41_s27), 0 }
  0x6f   : > { %8559 = sst [smem:[#allocation30_spill]] %s8714_s27  ;;  %p7202_p13 = por %p56_p11, %p55_p3 }
  0x70   : > { %p8561_p0 = scmp.eq.s32.totalorder %s7093_s15, 0  ;;  %s45_s20 = ssub.s32 %s6987_s13, %s8714_s27 }
  0x71   : > { %p265_p4 = scmp.eq.s32.totalorder %s7093_s15, 1  ;;  %p46_p7 = scmp.eq.s32.totalorder %s45_s20, 0 }
  0x72   : > { %p7208_p2 = por %p8561_p0, %p61_p12  ;;  %p271_p9 = scmp.eq.s32.totalorder %s5414_s26, 1 }
  0x73   : > { %p7215_p5 = por %p265_p4, %p55_p3  ;;  %p6457_p10 = scmp.lt.s32.totalorder %s6991_s14, 2 }
  0x74   : > { %s8562_s23 = scalar_select %p7208_p2, 1, 0 }
  0x75   : > { %s8563_s22 = scalar_select %p7215_p5, 1, 0 }
  0x76   : > { %s7221_s18 = scalar_select %p46_p7, %s6979_s11, %s48_s28  }
  0x77   : > { %p7223_p1 = por %p271_p9, %p61_p12  ;;  %s377_s21 = sand.u32 1, %s6991_s14  }
  0x78   : > { %8564 = sst [smem:[#allocation31_spill]] %s7221_s18  ;;  %s8533_s12 = sand.u32 1, %s6979_s11  }
  0x79   : > { %s8565_s9 = scalar_select %p7223_p1, 1, 0 }
  0x7a   : > { %s5424_s16 = sshll.u32 %s8533_s12, 9  ;;  %s5787_s24 = sshll.u32 %s6987_s13, 13 }
  0x7b   : > { %8566 = sst [smem:[#allocation32_spill]] %s8565_s9  ;;  %s8567_s0 = sld [smem:[#allocation88_spill]] }
  0x7c   : > { %s381_s28 = scalar_lea.vmem [#allocation3], %s5424_s16  ;;  %p7239_p3 = pnand %p6457_p10, %p7202_p13 }
  0x7d   : > { %s388_s20 = sshll.u32 %s381_s28, 4  ;;  %s7245_s12 = scalar_lea.sflag [#allocation4], %s377_s21  ;;  %s7243_s20 = int_to_ptr.vmem [resolvable:$true] %s388_s20 }
  0x7e   : > { %s8568_s4 = scalar_select %p7239_p3, 1, 0 }
  0x7f   : > { %p8542_p12 = pneg %p7239_p3 }
  0x81   : > { %s7235_s26 = scalar_lea.hbm %s8567_s0, %s5787_s24  ;;  %s6718_s17 = scalar_lea.hbm %s8567_s0, 16384 }
  0x82   : > { %s6713_s1 = scalar_lea.hbm %s7235_s26, 8192  ;;  %p6719_p13 = scmp.lt.u32.totalorder %s7235_s26, %s8567_s0 }
  0x83   : > { %p6714_p11 = scmp.ne.s32.totalorder %s7235_s26, %s6713_s1  ;;  %p6720_p7 = scmp.lt.u32.totalorder %s6718_s17, %s6713_s1 }
  0x84   : > { %p6722_p10 = scmp.lt.u32.totalorder %s6713_s1, %s7235_s26 }
  0x85   : > { %p6716_p0 = pnand %p8542_p12, %p6714_p11  ;;  %p6721_p9 = por %p6720_p7, %p6719_p13 }
  0x87   : > { %p6717_p4 = pneg %p6716_p0  ;;  %p6723_p1 = por %p6722_p10, %p6721_p9 }
  0x89   : > { %p6724_p5 = pnand %p6723_p1, %p6717_p4 }
  0x8b   : > { %6727 = shalt.err (!%p6724_p5)
}
  0x8c   : > { %s6728_s21 = scalar_lea.vmem %s7243_s20, 8192  ;;  %s6998_s24 = smov [#allocation3]  }
  0x8d   : > { %p6729_p11 = scmp.ne.s32.totalorder %s7243_s20, %s6728_s21  ;;  %s6733_s25 = sshll.u32 %s6998_s24, 4  ;;  %s6734_s25 = int_to_ptr.vmem [resolvable:$false] %s6733_s25 }
  0x8e   : > { %s6735_s16 = scalar_lea.vmem %s6734_s25, 16384  ;;  %p6736_p6 = scmp.lt.s32.totalorder %s7243_s20, %s6734_s25 }
  0x8f   : > { %p6731_p0 = pnand %p6729_p11, %p8542_p12  ;;  %p6737_p13 = scmp.lt.s32.totalorder %s6735_s16, %s6728_s21 }
  0x91   : > { %p6732_p2 = pneg %p6731_p0  ;;  %p6738_p7 = por %p6737_p13, %p6736_p6 }
  0x93   : > { %p6739_p9 = pnand %p6738_p7, %p6732_p2 }
  0x95   : > { %6742 = shalt.err (!%p6739_p9)
}
  0x96   : > { %s6999_s1 = smov 128   ;;  %s7000_s17 = smov 8  }
  0x97   : > { %6442 = dma.hbm_to_vmem [thread:$0]  (!%p7239_p3), %s7235_s26, 8192, %s7243_s20, %s7245_s12, %s6999_s1, %s6999_s1, %s7000_s17  }
  0x98   : > { %s8569_s28 = sand.u32 1, %s6979_s11   ;;  %s7001_s24 = smov [#allocation9]  }
  0x99   : > { %s5427_s0 = sshll.u32 %s8569_s28, 11  ;;  %s306_s6 = sshll.u32 %s7001_s24, 4  ;;  %s307_s6 = int_to_ptr.vmem [resolvable:$true] %s306_s6 }
  0x9a   : > { %s402_s27 = scalar_lea.vmem [#allocation8], %s5427_s0  ;;  %s6743_s18 = scalar_lea.hbm %s8518_s3, 8192 }
  0x9b   : > { %s7275_s25 = sshll.u32 %s402_s27, 4  ;;  %p6744_p6 = scmp.ne.s32.totalorder %s8518_s3, %s6743_s18  ;;  %s7351_s25 = int_to_ptr.vmem [resolvable:$true] %s7275_s25 }
  0x9c   : > { %p6750_p1 = scmp.lt.u32.totalorder %s6743_s18, %s8518_s3 }
  0x9d   : > { %p6746_p2 = pnand %p6744_p6, %p7125_p8 }
  0x9f   : > { %p6747_p5 = pneg %p6746_p2 }
  0xa1   : > { %p6752_p4 = pnand %p6750_p1, %p6747_p5 }
  0xa3   : > { %6755 = shalt.err (!%p6752_p4)
}
  0xa4   : > { %s6756_s0 = scalar_lea.vmem %s307_s6, 8192  ;;  %p6764_p13 = scmp.lt.s32.totalorder %s307_s6, %s307_s6 }
  0xa5   : > { %p6757_p10 = scmp.ne.s32.totalorder %s307_s6, %s6756_s0  ;;  %p6765_p7 = scmp.lt.s32.totalorder %s6756_s0, %s6756_s0 }
  0xa7   : > { %p6759_p11 = pnand %p6757_p10, %p7125_p8  ;;  %p6766_p9 = por %p6765_p7, %p6764_p13 }
  0xa9   : > { %p6760_p0 = pneg %p6759_p11 }
  0xab   : > { %p6767_p12 = pnand %p6766_p9, %p6760_p0 }
  0xad   : > { %6770 = shalt.err (!%p6767_p12)
}
  0xae   : > { %p8570_p6 = scmp.ne.s32.totalorder %s8554_s19, 0  ;;  %s8571_s14 = smov 4  }
  0xaf   : > { %s8572_s27 = smov 64   ;;  %s7002_s1 = smov [#allocation12]  }
  0xb0   : > { %6423 = dma.hbm_to_vmem [thread:$0]  (!%p8570_p6), %s8518_s3, 8192, %s307_s6, [#allocation7], %s8572_s27, %s8572_s27, %s8571_s14  }
  0xb1   : > { %s331_s17 = sshll.u32 %s7002_s1, 4  ;;  %s7003_s28 = smov [#allocation15]   ;;  %s332_s17 = int_to_ptr.vmem [resolvable:$true] %s331_s17 }
  0xb2   : > { %s352_s24 = sshll.u32 %s7003_s28, 4  ;;  %s6771_s26 = scalar_lea.hbm %s8520_s5, 16  ;;  %s7298_s24 = int_to_ptr.vmem [resolvable:$true] %s352_s24 }
  0xb3   : > { %p6772_p12 = scmp.ne.s32.totalorder %s8520_s5, %s6771_s26  ;;  %p6778_p1 = scmp.lt.u32.totalorder %s6771_s26, %s8520_s5 }
  0xb5   : > { %p6774_p2 = pnand %p6772_p12, %p7125_p8 }
  0xb7   : > { %p6775_p5 = pneg %p6774_p2 }
  0xb9   : > { %p6780_p4 = pnand %p6778_p1, %p6775_p5 }
  0xbb   : > { %6783 = shalt.err (!%p6780_p4)
}
  0xbc   : > { %s6784_s18 = scalar_lea.vmem %s332_s17, 16  ;;  %s6791_s1 = scalar_lea.vmem %s332_s17, 32 }
  0xbd   : > { %p6785_p10 = scmp.ne.s32.totalorder %s332_s17, %s6784_s18  ;;  %p6792_p13 = scmp.lt.s32.totalorder %s332_s17, %s332_s17 }
  0xbe   : > { %p6793_p7 = scmp.lt.s32.totalorder %s6791_s1, %s6784_s18 }
  0xbf   : > { %p6787_p11 = pnand %p6785_p10, %p7125_p8 }
  0xc0   : > { %p6794_p9 = por %p6793_p7, %p6792_p13 }
  0xc1   : > { %p6788_p0 = pneg %p6787_p11 }
  0xc3   : > { %p6795_p3 = pnand %p6794_p9, %p6788_p0 }
  0xc5   : > { %6798 = shalt.err (!%p6795_p3)
}
  0xc6   : > { %6429 = dma.hbm_to_vmem [thread:$0]  (!%p8570_p6), %s8520_s5, 16, %s332_s17, [#allocation11]  }
  0xc7   : > { %s6799_s20 = scalar_lea.hbm %s8522_s7, 1024 }
  0xc8   : > { %p6800_p12 = scmp.ne.s32.totalorder %s8522_s7, %s6799_s20  ;;  %p6806_p3 = scmp.lt.u32.totalorder %s6799_s20, %s8522_s7 }
  0xca   : > { %p6802_p2 = pnand %p6800_p12, %p7125_p8 }
  0xcc   : > { %p6803_p5 = pneg %p6802_p2 }
  0xce   : > { %p6808_p1 = pnand %p6806_p3, %p6803_p5 }
  0xd0   : > { %6811 = shalt.err (!%p6808_p1)
}
  0xd1   : > { %s6812_s17 = scalar_lea.vmem %s7298_s24, 1024  ;;  %p6820_p0 = scmp.lt.s32.totalorder %s7298_s24, %s7298_s24 }
  0xd2   : > { %p6813_p4 = scmp.ne.s32.totalorder %s7298_s24, %s6812_s17  ;;  %p6821_p13 = scmp.lt.s32.totalorder %s6812_s17, %s6812_s17 }
  0xd4   : > { %p6815_p10 = pnand %p6813_p4, %p7125_p8  ;;  %p6822_p7 = por %p6821_p13, %p6820_p0 }
  0xd6   : > { %p6816_p11 = pneg %p6815_p10 }
  0xd8   : > { %p6823_p9 = pnand %p6822_p7, %p6816_p11 }
  0xda   : > { %6826 = shalt.err (!%p6823_p9)
}
  0xdb   : > { %6435 = dma.hbm_to_vmem [thread:$0]  (!%p8570_p6), %s8522_s7, 1024, %s7298_s24, [#allocation14], %s8572_s27, %s8572_s27, %s8571_s14  }
  0xdc   : > { %s5789_s21 = sshll.u32 %s6987_s13, 15  ;;  %s7004_s16 = smov [#allocation16]  }
  0xdd   : > { %s366_s26 = sshll.u32 %s7004_s16, 4  ;;  %s7348_s9 = scalar_lea.hbm %s8517_s2, %s5789_s21  ;;  %s367_s26 = int_to_ptr.vmem [resolvable:$true] %s366_s26 }
  0xde   : > { %s6827_s17 = scalar_lea.hbm %s8523_s8, 16 }
  0xdf   : > { %p6828_p12 = scmp.ne.s32.totalorder %s8523_s8, %s6827_s17  ;;  %p6834_p3 = scmp.lt.u32.totalorder %s6827_s17, %s8523_s8 }
  0xe1   : > { %p6830_p2 = pnand %p6828_p12, %p7125_p8 }
  0xe3   : > { %p6831_p5 = pneg %p6830_p2 }
  0xe5   : > { %p6836_p1 = pnand %p6834_p3, %p6831_p5 }
  0xe7   : > { %6839 = shalt.err (!%p6836_p1)
}
  0xe8   : > { %s6840_s24 = scalar_lea.vmem %s367_s26, 16  ;;  %s6847_s21 = scalar_lea.vmem %s367_s26, 32 }
  0xe9   : > { %p6841_p4 = scmp.ne.s32.totalorder %s367_s26, %s6840_s24  ;;  %p6848_p0 = scmp.lt.s32.totalorder %s367_s26, %s367_s26 }
  0xea   : > { %p6849_p13 = scmp.lt.s32.totalorder %s6847_s21, %s6840_s24 }
  0xeb   : > { %p6843_p10 = pnand %p6841_p4, %p7125_p8 }
  0xec   : > { %p6850_p7 = por %p6849_p13, %p6848_p0 }
  0xed   : > { %p6844_p11 = pneg %p6843_p10 }
  0xef   : > { %p6851_p9 = pnand %p6850_p7, %p6844_p11 }
  0xf1   : > { %6854 = shalt.err (!%p6851_p9)
}
  0xf2   : > { %6438 = dma.hbm_to_vmem [thread:$0]  (!%p8570_p6), %s8523_s8, 16, %s367_s26, [#allocation17]  }
  0xf3   : > { %s6855_s29 = scalar_lea.hbm %s7348_s9, 32768  ;;  %p8573_p12 = scmp.ne.s32.totalorder %s8568_s4, 0 }
  0xf4   : > { %p6856_p8 = scmp.ne.s32.totalorder %s7348_s9, %s6855_s29  ;;  %s6860_s18 = scalar_lea.hbm %s8517_s2, 65536 }
  0xf5   : > { %p8574_p2 = pneg %p8573_p12  ;;  %p6861_p1 = scmp.lt.u32.totalorder %s7348_s9, %s8517_s2 }
  0xf6   : > { %p6862_p4 = scmp.lt.u32.totalorder %s6860_s18, %s6855_s29  ;;  %p6864_p11 = scmp.lt.u32.totalorder %s6855_s29, %s7348_s9 }
  0xf7   : > { %p6858_p5 = pnand %p6856_p8, %p8574_p2 }
  0xf8   : > { %p6863_p10 = por %p6862_p4, %p6861_p1 }
  0xf9   : > { %p6859_p3 = pneg %p6858_p5 }
  0xfa   : > { %p6865_p0 = por %p6864_p11, %p6863_p10 }
  0xfc   : > { %p6866_p13 = pnand %p6865_p0, %p6859_p3 }
  0xfe   : > { %6869 = shalt.err (!%p6866_p13)
}
  0xff   : > { %s6870_s26 = scalar_lea.vmem %s7351_s25, 32768  ;;  %p8575_p7 = pmov %p8574_p2 }
 0x100   : > { %p6871_p6 = scmp.ne.s32.totalorder %s7351_s25, %s6870_s26  ;;  %s7005_s1 = smov [#allocation8]  }
 0x101   : > { %s6875_s28 = sshll.u32 %s7005_s1, 4  ;;  %s6876_s28 = int_to_ptr.vmem [resolvable:$false] %s6875_s28 }
 0x102   : > { %p6873_p9 = pnand %p6871_p6, %p8575_p7  ;;  %s6877_s14 = scalar_lea.vmem %s6876_s28, 65536 }
 0x103   : > { %p6878_p2 = scmp.lt.s32.totalorder %s7351_s25, %s6876_s28  ;;  %p6879_p5 = scmp.lt.s32.totalorder %s6877_s14, %s6870_s26 }
 0x104   : > { %p6874_p8 = pneg %p6873_p9 }
 0x105   : > { %p6880_p1 = por %p6879_p5, %p6878_p2 }
 0x107   : > { %p6881_p4 = pnand %p6880_p1, %p6874_p8 }
 0x109   : > { %6884 = shalt.err (!%p6881_p4)
}
 0x10a   : > { %s7006_s27 = smov 512   ;;  %s7007_s24 = smov 32  }
 0x10b   : > { %6445 = dma.hbm_to_vmem [thread:$0]  (!%p8573_p12), %s7348_s9, 32768, %s7351_s25, %s7245_s12, %s7006_s27, %s7006_s27, %s7007_s24  }
 0x10c   : > { %s8576_s21 = sld [smem:[#allocation29_spill]] }
 0x112   : > { %p8577_p3 = scmp.ne.s32.totalorder %s8576_s21, 0 }
 0x114   : > { %424 = sbr.rel (%p8577_p3) target bundleno = 1447 (0x5a7), region = 56 }
 0x11b   : > { %s426_s16 = sand.u32 1, %s7093_s15   ;;  %s7399_s20 = sand.u32 1, %s6975_s10  }
 0x11c   : > { %s5432_s29 = sshll.u32 %s7399_s20, 9  ;;  %s427_s0 = scalar_lea.sflag [#allocation4], %s426_s16 }
 0x11d   : > { %s7404_s6 = scalar_lea.vmem [#allocation3], %s5432_s29  ;;  %p8578_p10 = scmp.ne.s32.totalorder %s8562_s23, 0 }
 0x11f   : > { %6938 = dma.done.wait (%p8578_p10), %s427_s0, 8192  }
 0x120   : > { %6940 = vsyncadd (%p8578_p10), %s427_s0, 4294959104  ;;  %p8579_p12 = scmp.eq.s32.totalorder %s7093_s15, 0 }
 0x122   : > { %6942 = dma.done.wait (%p8579_p12), [#allocation7], 1024   ;;  %p8580_p11 = pmov %p8579_p12 }
 0x123   : > { %s5434_s4 = sshll.u32 %s7399_s20, 11 }
 0x124   : > { %6944 = vsyncadd (%p8580_p11), [#allocation7], 4294966272  ;;  %s7415_s12 = scalar_lea.vmem [#allocation8], %s5434_s4 }
 0x125   : > { %6946 = dma.done.wait (%p8578_p10), %s427_s0, 32768  }
 0x126   : > { %6948 = vsyncadd (%p8578_p10), %s427_s0, 4294934528  ;;  %p8581_p0 = pmov %p8580_p11 }
 0x128   : > { %6950 = dma.done.wait (%p8581_p0), [#allocation7], 8192   ;;  %p8582_p13 = pmov %p8581_p0 }
 0x129   : > { %p8583_p6 = pmov %p8581_p0 }
 0x12a   : > { %6952 = vsyncadd (%p8582_p13), [#allocation7], 4294959104 }
 0x12b   : > { %6954 = dma.done.wait (%p8583_p6), [#allocation11], 32   ;;  %p8584_p7 = pmov %p8581_p0 }
 0x12c   : > { %p8585_p9 = pmov %p8581_p0 }
 0x12d   : > { %6956 = vsyncadd (%p8584_p7), [#allocation11], 4294967264 }
 0x12e   : > { %6958 = dma.done.wait (%p8585_p9), [#allocation14], 1040   ;;  %p8586_p8 = pmov %p8581_p0 }
 0x12f   : > { %p8587_p2 = pmov %p8581_p0 }
 0x130   : > { %6960 = vsyncadd (%p8586_p8), [#allocation14], 4294966256 }
 0x131   : > { %6962 = dma.done.wait (%p8587_p2), [#allocation17], 16   ;;  %p8588_p5 = pmov %p8581_p0 }
 0x132   : > { %v7008_v0 = vmov 0   ;;  %v6530_v1 = vld [vmem:[#allocation6] sm:$0xff]   ;;  %v6532_v3 = vld [vmem:[#allocation6 + $0x8] sm:$0xff]   ;;  %v6534_v5 = vld [vmem:[#allocation6 + $0x10] sm:$0xff]   ;;  %s8307_s15 = scalar_lea.vmem [#allocation18], %s5432_s29  ;;  %s8699_s23 = sld [smem:[#allocation27_spill]] }
 0x133   : > { %6964 = vsyncadd (%p8588_p5), [#allocation17], 4294967280  ;;  %6031 = vmatprep.subr.bf16.mxu1 %v7008_v0  ;;  %v6531_v2 = vld [vmem:[#allocation9 + $0x80] sm:$0xff]   ;;  %5871 = vmatprep.subr.bf16.mxu0 %v6530_v1  ;;  %v6533_v4 = vld [vmem:[#allocation9 + $0x88] sm:$0xff]   ;;  %s5240_s9 = sshll.u32 %s8307_s15, 4  ;;  %s8700_s17 = sld [smem:[#allocation92_spill]]  ;;  %s8462_s9 = int_to_ptr.vmem [resolvable:$true] %s5240_s9 }
 0x134   : > { %6047 = vmatpush1.bf16.msra.mxu1 %v6531_v2  ;;  %5872 = vmatpush3.bf16.msra.mxu0 %v6530_v1  ;;  %v6535_v6 = vld [vmem:[#allocation9 + $0x90] sm:$0xff]   ;;  %v6536_v7 = vld [vmem:[#allocation6 + $0x18] sm:$0xff]   ;;  %v6538_v9 = vld [vmem:[#allocation6 + $0x20] sm:$0xff]   ;;  %s5227_s1 = scalar_lea.sflag [#allocation5], %s7399_s20  ;;  %s6885_s28 = scalar_lea.vmem %s8462_s9, 8192 }
 0x135   : > { %6032 = vmatprep.subr.bf16.mxu1 %v7008_v0  ;;  %5873 = vmatprep.subr.bf16.mxu0 %v6532_v3  ;;  %v6537_v8 = vld [vmem:[#allocation9 + $0x98] sm:$0xff]   ;;  %v6539_v10 = vld [vmem:[#allocation9 + $0xa0] sm:$0xff]   ;;  %v6540_v11 = vld [vmem:[#allocation6 + $0x28] sm:$0xff]   ;;  %p6886_p1 = scmp.ne.s32.totalorder %s8462_s9, %s6885_s28  ;;  %p8701_p4 = scmp.ne.s32.totalorder %s8563_s22, 0 }
 0x136   : > { %v517_v12 = vld [vmem:[%s7404_s6] sm:$0xff]  ;;  %v518_v13 = vld [vmem:[%s7404_s6 + $0x8] sm:$0xff]  ;;  %v6542_v16 = vld [vmem:[#allocation6 + $0x30] sm:$0xff]   ;;  %s7009_s14 = smov [#allocation18]  }
 0x137   : > { %v581_v14 = vpack.c.bf16 %v518_v13, %v517_v12  ;;  %v6541_v15 = vld [vmem:[#allocation9 + $0xa8] sm:$0xff]   ;;  %v6543_v17 = vld [vmem:[#allocation9 + $0xb0] sm:$0xff]   ;;  %v6544_v18 = vld [vmem:[#allocation6 + $0x38] sm:$0xff]   ;;  %p6887_p3 = pnand %p6886_p1, %p8701_p4  ;;  %s6889_s27 = sshll.u32 %s7009_s14, 4  ;;  %s6890_s27 = int_to_ptr.vmem [resolvable:$false] %s6889_s27 }
 0x138   : > { %6048 = vmatpush1.bf16.msra.mxu1 %v6533_v4  ;;  %5874 = vmatpush3.bf16.msra.mxu0 %v6532_v3  ;;  %v6545_v19 = vld [vmem:[#allocation9 + $0xb8] sm:$0xff]   ;;  %v519_v20 = vld [vmem:[%s7404_s6 + $0x10] sm:$0xff]  ;;  %v521_v22 = vld [vmem:[%s7404_s6 + $0x20] sm:$0xff]  ;;  %s5790_s25 = sshll.u32 %s8699_s23, 13  ;;  %s6891_s24 = scalar_lea.vmem %s6890_s27, 16384 }
 0x139   : > { %6033 = vmatprep.subr.bf16.mxu1 %v7008_v0  ;;  %5875 = vmatprep.subr.bf16.mxu0 %v6534_v5  ;;  %v520_v21 = vld [vmem:[%s7404_s6 + $0x18] sm:$0xff]  ;;  %v522_v23 = vld [vmem:[%s7404_s6 + $0x28] sm:$0xff]  ;;  %v6546_v28 = vld [vmem:[#allocation9 + $0xc0] sm:$0xff]   ;;  %s8460_s26 = scalar_lea.hbm %s8700_s17, %s5790_s25  ;;  %p6888_p10 = pneg %p6887_p3 }
 0x13a   : > { %5887 = vmatprep.mubr.bf16.mxu0 %v581_v14  ;;  %v7452_v24 = vld [vmem:[%s7415_s12 + $0x488] sm:$0xff]  ;;  %v582_v26 = vpack.c.bf16 %v520_v21, %v519_v20  ;;  %v583_v29 = vpack.c.bf16 %v522_v23, %v521_v22  ;;  %v523_v31 = vld [vmem:[%s7404_s6 + $0x30] sm:$0xff]  ;;  %v524_v32 = vld [vmem:[%s7404_s6 + $0x38] sm:$0xff]  ;;  %p6892_p12 = scmp.lt.s32.totalorder %s8462_s9, %s6890_s27  ;;  %p6893_p11 = scmp.lt.s32.totalorder %s6891_s24, %s6885_s28 }
 0x13b   : > { %v7455_v25 = vld [vmem:[%s7415_s12 + $0x4a8] sm:$0xff]  ;;  %v525_v33 = vld [vmem:[%s7404_s6 + $0x40] sm:$0xff]  ;;  %v584_v35 = vpack.c.bf16 %v524_v32, %v523_v31  ;;  %v6548_v36 = vld [vmem:[#allocation9 + $0xd0] sm:$0xff]  }
 0x13c   : > { %6049 = vmatpush1.bf16.msra.mxu1 %v6535_v6  ;;  %5876 = vmatpush3.bf16.msra.mxu0 %v6534_v5  ;;  %v5597_v27 = vcombine.high %v7452_v24, %v7455_v25  ;;  %v6547_v30 = vld [vmem:[#allocation9 + $0xc8] sm:$0xff]   ;;  %v6549_v38 = vld [vmem:[#allocation9 + $0xd8] sm:$0xff]   ;;  %v527_v39 = vld [vmem:[%s7404_s6 + $0x50] sm:$0xff]  ;;  %v5596_v3 = vcombine.low %v7452_v24, %v7455_v25  ;;  %p6894_p0 = por %p6893_p11, %p6892_p12 }
 0x13d   : > { %6034 = vmatprep.subr.bf16.mxu1 %v7008_v0  ;;  %5877 = vmatprep.subr.bf16.mxu0 %v6536_v7  ;;  %v526_v34 = vld [vmem:[%s7404_s6 + $0x48] sm:$0xff]  ;;  %v528_v40 = vld [vmem:[%s7404_s6 + $0x58] sm:$0xff]  ;;  %v529_v41 = vld [vmem:[%s7404_s6 + $0x60] sm:$0xff] }
 0x13e   : > { %3607 = vmatprep.mubr.bf16.mxu1 %v5597_v27  ;;  %v585_v37 = vpack.c.bf16 %v526_v34, %v525_v33  ;;  %v530_v42 = vld [vmem:[%s7404_s6 + $0x68] sm:$0xff]  ;;  %v6559_v43 = vld [vmem:[#allocation9] sm:$0xff]   ;;  %v586_v44 = vpack.c.bf16 %v528_v40, %v527_v39  ;;  %v531_v49 = vld [vmem:[%s7404_s6 + $0x70] sm:$0xff]  ;;  %p6895_p13 = pnand %p6894_p0, %p6888_p10 }
 0x13f   : > { %v6550_v45 = vld [vmem:[#allocation9 + $0xe0] sm:$0xff]   ;;  %v587_v46 = vpack.c.bf16 %v530_v42, %v529_v41  ;;  %v6561_v47 = vld [vmem:[#allocation9 + $0x8] sm:$0xff]   ;;  %v532_v50 = vld [vmem:[%s7404_s6 + $0x78] sm:$0xff] }
 0x140   : > { %6050 = vmatpush1.bf16.msra.mxu1 %v6537_v8  ;;  %5878 = vmatpush3.bf16.msra.mxu0 %v6536_v7  ;;  %v6551_v48 = vld [vmem:[#allocation9 + $0xe8] sm:$0xff]   ;;  %v533_v51 = vld [vmem:[%s7404_s6 + $0x80] sm:$0xff]  ;;  %v6562_v53 = vld [vmem:[#allocation9 + $0x10] sm:$0xff]   ;;  %v588_v54 = vpack.c.bf16 %v532_v50, %v531_v49 }
 0x141   : > { %6035 = vmatprep.subr.bf16.mxu1 %v7008_v0  ;;  %5879 = vmatprep.subr.bf16.mxu0 %v6538_v9  ;;  %v534_v52 = vld [vmem:[%s7404_s6 + $0x88] sm:$0xff]  ;;  %v6552_v55 = vld [vmem:[#allocation9 + $0xf0] sm:$0xff]   ;;  %v6564_v57 = vld [vmem:[#allocation9 + $0x18] sm:$0xff]  }
 0x142   : > { %v589_v56 = vpack.c.bf16 %v534_v52, %v533_v51  ;;  %v6553_v58 = vld [vmem:[#allocation9 + $0xf8] sm:$0xff]   ;;  %v535_v59 = vld [vmem:[%s7404_s6 + $0x90] sm:$0xff]  ;;  %v1247_v61 = vld [vmem:[%s7415_s12 + $0x4c8] sm:$0xff] }
 0x143   : > { %v536_v60 = vld [vmem:[%s7404_s6 + $0x98] sm:$0xff]  ;;  %v1251_v62 = vld [vmem:[%s7415_s12 + $0x4e8] sm:$0xff]  ;;  %v537_v63 = vld [vmem:[%s7404_s6 + $0xa0] sm:$0xff] }
 0x144   : > { %6051 = vmatpush1.bf16.msra.mxu1 %v6539_v10  ;;  %5880 = vmatpush3.bf16.msra.mxu0 %v6538_v9  ;;  %v6565_v1 = vld [vmem:[#allocation9 + $0x20] sm:$0xff]   ;;  %v538_v2 = vld [vmem:[%s7404_s6 + $0xa8] sm:$0xff]  ;;  %v590_v4 = vpack.c.bf16 %v536_v60, %v535_v59  ;;  %v5605_v6 = vcombine.high %v1247_v61, %v1251_v62  ;;  %v539_v10 = vld [vmem:[%s7404_s6 + $0xb0] sm:$0xff] }
 0x145   : > { %6036 = vmatprep.subr.bf16.mxu1 %v7008_v0  ;;  %5881 = vmatprep.subr.bf16.mxu0 %v6540_v11  ;;  %v6554_v5 = vld [vmem:[#allocation9 + $0x100] sm:$0xff]   ;;  %v591_v7 = vpack.c.bf16 %v538_v2, %v537_v63  ;;  %v6567_v8 = vld [vmem:[#allocation9 + $0x28] sm:$0xff]   ;;  %v6556_v20 = vld [vmem:[#allocation9 + $0x110] sm:$0xff]  }
 0x146   : > { %v6555_v9 = vld [vmem:[#allocation9 + $0x108] sm:$0xff]   ;;  %v541_v14 = vld [vmem:[%s7404_s6 + $0xc0] sm:$0xff]  ;;  %v543_v22 = vld [vmem:[%s7404_s6 + $0xd0] sm:$0xff] }
 0x147   : > { %v1255_v12 = vld [vmem:[%s7415_s12 + $0x508] sm:$0xff]  ;;  %v544_v23 = vld [vmem:[%s7404_s6 + $0xd8] sm:$0xff]  ;;  %v6558_v34 = vld [vmem:[#allocation9 + $0x120] sm:$0xff]  }
 0x148   : > { %6052 = vmatpush1.bf16.msra.mxu1 %v6541_v15  ;;  %5882 = vmatpush3.bf16.msra.mxu0 %v6540_v11  ;;  %v540_v11 = vld [vmem:[%s7404_s6 + $0xb8] sm:$0xff]  ;;  %v1259_v13 = vld [vmem:[%s7415_s12 + $0x528] sm:$0xff]  ;;  %v594_v31 = vpack.c.bf16 %v544_v23, %v543_v22  ;;  %v549_v40 = vld [vmem:[%s7404_s6 + $0x100] sm:$0xff] }
 0x149   : > { %6037 = vmatprep.subr.bf16.mxu1 %v7008_v0  ;;  %5883 = vmatprep.subr.bf16.mxu0 %v6542_v16  ;;  %v542_v15 = vld [vmem:[%s7404_s6 + $0xc8] sm:$0xff]  ;;  %v6557_v24 = vld [vmem:[#allocation9 + $0x118] sm:$0xff]   ;;  %v6575_v49 = vld [vmem:[#allocation9 + $0x50] sm:$0xff]  }
 0x14a   : > { %v593_v21 = vpack.c.bf16 %v542_v15, %v541_v14  ;;  %v1263_v25 = vld [vmem:[%s7415_s12 + $0x548] sm:$0xff]  ;;  %v6570_v27 = vld [vmem:[#allocation9 + $0x38] sm:$0xff]   ;;  %v551_v50 = vld [vmem:[%s7404_s6 + $0x110] sm:$0xff] }
 0x14b   : > { %v1275_v39 = vld [vmem:[%s7415_s12 + $0x5a8] sm:$0xff]  ;;  %v552_v51 = vld [vmem:[%s7404_s6 + $0x118] sm:$0xff]  ;;  %v6578_v63 = vld [vmem:[#allocation9 + $0x60] sm:$0xff]  }
 0x14c   : > { %6053 = vmatpush1.bf16.msra.mxu1 %v6543_v17  ;;  %5884 = vmatpush3.bf16.msra.mxu0 %v6542_v16  ;;  %v6569_v16 = vld [vmem:[#allocation9 + $0x30] sm:$0xff]   ;;  %v5604_v17 = vcombine.low %v1247_v61, %v1251_v62  ;;  %v550_v41 = vld [vmem:[%s7404_s6 + $0x108] sm:$0xff]  ;;  %v598_v59 = vpack.c.bf16 %v552_v51, %v551_v50  ;;  %v6568_v62 = vld [vmem:[#allocation9 + $0x140] sm:$0xff]  }
 0x14d   : > { %6038 = vmatprep.subr.bf16.mxu1 %v7008_v0  ;;  %5885 = vmatprep.subr.bf16.mxu0 %v6544_v18  ;;  %v6560_v42 = vld [vmem:[#allocation9 + $0x128] sm:$0xff]   ;;  %v556_v2 = vld [vmem:[%s7404_s6 + $0x138] sm:$0xff]  ;;  %v559_v15 = vld [vmem:[%s7404_s6 + $0x150] sm:$0xff] }
 0x14e   : > { %v1279_v52 = vld [vmem:[%s7415_s12 + $0x5c8] sm:$0xff]  ;;  %v6583_v22 = vld [vmem:[#allocation9 + $0x78] sm:$0xff]   ;;  %v571_v51 = vld [vmem:[%s7404_s6 + $0x1b0] sm:$0xff] }
 0x150   : > { %6054 = vmatpush1.bf16.msra.mxu1 %v6545_v19  ;;  %5886 = vmatpush3.bf16.msra.mxu0 %v6544_v18  ;;  %v592_v18 = vpack.c.bf16 %v540_v11, %v539_v10  ;;  %v5613_v19 = vcombine.high %v1255_v12, %v1259_v13  ;;  %v6574_v11 = vld [vmem:[#allocation9 + $0x150] sm:$0xff]  }
 0x151   : > { %6039 = vmatprep.subr.bf16.mxu1 %v7008_v0  ;;  %3142 = vmatprep.subr.bf16.mxu0 %v7008_v0 }
 0x153   : > { %5888 = vmatmul.mubr.bf16.vlgmr.msra.gmra.mrb[0].mxu0 %v582_v26  ;;  %v1267_v26 = vld [vmem:[%s7415_s12 + $0x568] sm:$0xff] }
 0x154   : > { %6055 = vmatpush1.bf16.msra.mxu1 %v6546_v28  ;;  %5891 = vmatprep.mubr.bf16.mxu0 %v583_v29  ;;  %v545_v28 = vld [vmem:[%s7404_s6 + $0xe0] sm:$0xff]  ;;  %v546_v29 = vld [vmem:[%s7404_s6 + $0xe8] sm:$0xff]  ;;  %v5621_v32 = vcombine.high %v1263_v25, %v1267_v26 }
 0x155   : > { %6040 = vmatprep.subr.bf16.mxu1 %v7008_v0  ;;  %3143 = vmatpush1.bf16.msra.mxu0 %v6559_v43  ;;  %v595_v33 = vpack.c.bf16 %v546_v29, %v545_v28  ;;  %v6573_v43 = vld [vmem:[#allocation9 + $0x48] sm:$0xff]   ;;  %v563_v28 = vld [vmem:[%s7404_s6 + $0x170] sm:$0xff]  ;;  %v564_v29 = vld [vmem:[%s7404_s6 + $0x178] sm:$0xff] }
 0x156   : > { %3144 = vmatprep.subr.bf16.mxu0 %v7008_v0 }
 0x158   : > { %6056 = vmatpush1.bf16.msra.mxu1 %v6547_v30  ;;  %v5612_v30 = vcombine.low %v1255_v12, %v1259_v13  ;;  %v6581_v12 = vld [vmem:[#allocation9 + $0x70] sm:$0xff]  }
 0x159   : > { %6041 = vmatprep.subr.bf16.mxu1 %v7008_v0  ;;  %3145 = vmatpush1.bf16.msra.mxu0 %v6561_v47  ;;  %v597_v47 = vpack.c.bf16 %v550_v41, %v549_v40  ;;  %v567_v40 = vld [vmem:[%s7404_s6 + $0x190] sm:$0xff]  ;;  %v568_v41 = vld [vmem:[%s7404_s6 + $0x198] sm:$0xff] }
 0x15a   : > { %3146 = vmatprep.subr.bf16.mxu0 %v7008_v0 }
 0x15b   : > { %5892 = vmatmul.mubr.bf16.gmra.mrb[4].mxu0 %v584_v35  ;;  %v6572_v35 = vld [vmem:[#allocation9 + $0x40] sm:$0xff]  }
 0x15c   : > { %6057 = vmatpush1.bf16.msra.mxu1 %v6548_v36  ;;  %5895 = vmatprep.mubr.bf16.mxu0 %v585_v37  ;;  %v547_v36 = vld [vmem:[%s7404_s6 + $0xf0] sm:$0xff]  ;;  %v548_v37 = vld [vmem:[%s7404_s6 + $0xf8] sm:$0xff] }
 0x15d   : > { %6042 = vmatprep.subr.bf16.mxu1 %v7008_v0  ;;  %3147 = vmatpush1.bf16.msra.mxu0 %v6562_v53  ;;  %v1283_v53 = vld [vmem:[%s7415_s12 + $0x5e8] sm:$0xff] }
 0x15e   : > { %3148 = vmatprep.subr.bf16.mxu0 %v7008_v0  ;;  %v5637_v60 = vcombine.high %v1279_v52, %v1283_v53 }
 0x160   : > { %6058 = vmatpush1.bf16.msra.mxu1 %v6549_v38  ;;  %v1271_v38 = vld [vmem:[%s7415_s12 + $0x588] sm:$0xff] }
 0x161   : > { %6043 = vmatprep.subr.bf16.mxu1 %v7008_v0  ;;  %3149 = vmatpush1.bf16.msra.mxu0 %v6564_v57  ;;  %v6576_v57 = vld [vmem:[#allocation9 + $0x58] sm:$0xff]  }
 0x162   : > { %3150 = vmatprep.subr.bf16.mxu0 %v7008_v0 }
 0x163   : > { %5896 = vmatmul.mubr.bf16.gmra.mrb[8].mxu0 %v586_v44  ;;  %v5620_v44 = vcombine.low %v1263_v25, %v1267_v26  ;;  %v6579_v25 = vld [vmem:[#allocation9 + $0x160] sm:$0xff]  }
 0x164   : > { %6059 = vmatpush1.bf16.msra.mxu1 %v6550_v45  ;;  %5899 = vmatprep.mubr.bf16.mxu0 %v587_v46  ;;  %v596_v45 = vpack.c.bf16 %v548_v37, %v547_v36  ;;  %v5629_v46 = vcombine.high %v1271_v38, %v1275_v39  ;;  %v604_v36 = vpack.c.bf16 %v564_v29, %v563_v28  ;;  %v1110_v28 = vld [vmem:[%s7415_s12 + $0x80] sm:$0xff] }
 0x165   : > { %6044 = vmatprep.subr.bf16.mxu1 %v7008_v0  ;;  %3151 = vmatpush1.bf16.msra.mxu0 %v6565_v1  ;;  %v555_v1 = vld [vmem:[%s7404_s6 + $0x130] sm:$0xff]  ;;  %v1114_v29 = vld [vmem:[%s7415_s12 + $0xa0] sm:$0xff] }
 0x166   : > { %3152 = vmatprep.subr.bf16.mxu0 %v7008_v0  ;;  %v600_v10 = vpack.c.bf16 %v556_v2, %v555_v1  ;;  %v1331_v1 = vld [vmem:[%s7415_s12 + $0x768] sm:$0xff]  ;;  %v577_v2 = vld [vmem:[%s7404_s6 + $0x1e0] sm:$0xff] }
 0x168   : > { %6060 = vmatpush1.bf16.msra.mxu1 %v6551_v48  ;;  %v6563_v48 = vld [vmem:[#allocation9 + $0x130] sm:$0xff]  }
 0x169   : > { %6045 = vmatprep.subr.bf16.mxu1 %v7008_v0  ;;  %3153 = vmatpush1.bf16.msra.mxu0 %v6567_v8  ;;  %v6580_v8 = vld [vmem:[#allocation9 + $0x68] sm:$0xff]  }
 0x16a   : > { %3154 = vmatprep.subr.bf16.mxu0 %v7008_v0 }
 0x16b   : > { %5900 = vmatmul.mubr.bf16.gmra.mrb[12].mxu0 %v588_v54  ;;  %v553_v54 = vld [vmem:[%s7404_s6 + $0x120] sm:$0xff] }
 0x16c   : > { %6061 = vmatpush1.bf16.msra.mxu1 %v6552_v55  ;;  %5903 = vmatprep.mubr.bf16.mxu0 %v589_v56  ;;  %v554_v55 = vld [vmem:[%s7404_s6 + $0x128] sm:$0xff]  ;;  %v6566_v56 = vld [vmem:[#allocation9 + $0x138] sm:$0xff]  }
 0x16d   : > { %6046 = vmatprep.subr.bf16.mxu1 %v7008_v0  ;;  %3155 = vmatpush1.bf16.msra.mxu0 %v6569_v16  ;;  %v599_v61 = vpack.c.bf16 %v554_v55, %v553_v54  ;;  %v560_v16 = vld [vmem:[%s7404_s6 + $0x158] sm:$0xff]  ;;  %v1323_v54 = vld [vmem:[%s7415_s12 + $0x728] sm:$0xff]  ;;  %v573_v55 = vld [vmem:[%s7404_s6 + $0x1c0] sm:$0xff] }
 0x16e   : > { %3156 = vmatprep.subr.bf16.mxu0 %v7008_v0 }
 0x170   : > { %6062 = vmatpush1.bf16.msra.mxu1 %v6553_v58  ;;  %v5628_v58 = vcombine.low %v1271_v38, %v1275_v39  ;;  %v6584_v39 = vld [vmem:[#allocation9 + $0x170] sm:$0xff]  }
 0x171   : > { %3720 = vmatprep.subr.bf16.mxu1 %v7008_v0  ;;  %3157 = vmatpush1.bf16.msra.mxu0 %v6570_v27 }
 0x172   : > { %3158 = vmatprep.subr.bf16.mxu0 %v7008_v0 }
 0x173   : > { %3608 = vmatmul.mubr.bf16.vlgmr.msra.gmra.mrb[0].mxu1 %v5596_v3  ;;  %5904 = vmatmul.mubr.bf16.gmra.mrb[16].mxu0 %v590_v4  ;;  %v1287_v3 = vld [vmem:[%s7415_s12 + $0x608] sm:$0xff] }
 0x174   : > { %3721 = vmatpush1.bf16.msra.mxu1 %v6554_v5  ;;  %3615 = vmatprep.mubr.bf16.mxu1 %v5605_v6  ;;  %v1291_v4 = vld [vmem:[%s7415_s12 + $0x628] sm:$0xff]  ;;  %v557_v5 = vld [vmem:[%s7404_s6 + $0x140] sm:$0xff] }
 0x175   : > { %3722 = vmatprep.subr.bf16.mxu1 %v7008_v0  ;;  %5907 = vmatprep.mubr.bf16.mxu0 %v591_v7  ;;  %v558_v6 = vld [vmem:[%s7404_s6 + $0x148] sm:$0xff]  ;;  %v5645_v13 = vcombine.high %v1287_v3, %v1291_v4  ;;  %v5644_v23 = vcombine.low %v1287_v3, %v1291_v4 }
 0x176   : > { %3159 = vmatpush1.bf16.msra.mxu0 %v6572_v35  ;;  %v6571_v7 = vld [vmem:[#allocation9 + $0x148] sm:$0xff]   ;;  %v601_v14 = vpack.c.bf16 %v558_v6, %v557_v5 }
 0x177   : > { %3160 = vmatprep.subr.bf16.mxu0 %v7008_v0  ;;  %v578_v3 = vld [vmem:[%s7404_s6 + $0x1e8] sm:$0xff] }
 0x178   : > { %3723 = vmatpush1.bf16.msra.mxu1 %v6555_v9  ;;  %v5636_v9 = vcombine.low %v1279_v52, %v1283_v53  ;;  %v572_v52 = vld [vmem:[%s7404_s6 + $0x1b8] sm:$0xff]  ;;  %v1319_v53 = vld [vmem:[%s7415_s12 + $0x708] sm:$0xff] }
 0x179   : > { %3724 = vmatprep.subr.bf16.mxu1 %v7008_v0  ;;  %v5676_v4 = vcombine.low %v1319_v53, %v1323_v54 }
 0x17a   : > { %3161 = vmatpush1.bf16.msra.mxu0 %v6573_v43  ;;  %v1315_v43 = vld [vmem:[%s7415_s12 + $0x6e8] sm:$0xff] }
 0x17b   : > { %3616 = vmatmul.mubr.bf16.gmra.mrb[4].mxu1 %v5604_v17  ;;  %5908 = vmatmul.mubr.bf16.gmra.mrb[20].mxu0 %v592_v18  ;;  %v1295_v17 = vld [vmem:[%s7415_s12 + $0x648] sm:$0xff] }
 0x17c   : > { %3623 = vmatprep.mubr.bf16.mxu1 %v5613_v19  ;;  %3725 = vmatpush1.bf16.msra.mxu1 %v6556_v20  ;;  %v1299_v18 = vld [vmem:[%s7415_s12 + $0x668] sm:$0xff]  ;;  %v561_v19 = vld [vmem:[%s7404_s6 + $0x160] sm:$0xff] }
 0x17d   : > { %5911 = vmatprep.mubr.bf16.mxu0 %v593_v21  ;;  %3726 = vmatprep.subr.bf16.mxu1 %v7008_v0  ;;  %v562_v20 = vld [vmem:[%s7404_s6 + $0x168] sm:$0xff]  ;;  %v6577_v21 = vld [vmem:[#allocation9 + $0x158] sm:$0xff]   ;;  %v5653_v26 = vcombine.high %v1295_v17, %v1299_v18  ;;  %v5652_v35 = vcombine.low %v1295_v17, %v1299_v18 }
 0x17e   : > { %3162 = vmatprep.subr.bf16.mxu0 %v7008_v0  ;;  %v603_v27 = vpack.c.bf16 %v562_v20, %v561_v19  ;;  %v1343_v18 = vld [vmem:[%s7415_s12 + $0x7c8] sm:$0xff]  ;;  %v1102_v20 = vld [vmem:[%s7415_s12 + $0x40] sm:$0xff] }
 0x17f   : > { %3163 = vmatpush1.bf16.msra.mxu0 %v6575_v49  ;;  %v1347_v19 = vld [vmem:[%s7415_s12 + $0x7e8] sm:$0xff] }
 0x180   : > { %3727 = vmatpush1.bf16.msra.mxu1 %v6557_v24  ;;  %3164 = vmatprep.subr.bf16.mxu0 %v7008_v0  ;;  %v602_v24 = vpack.c.bf16 %v560_v16, %v559_v15 }
 0x181   : > { %3728 = vmatprep.subr.bf16.mxu1 %v7008_v0 }
 0x183   : > { %3624 = vmatmul.mubr.bf16.gmra.mrb[8].mxu1 %v5612_v30  ;;  %5912 = vmatmul.mubr.bf16.gmra.mrb[24].mxu0 %v594_v31  ;;  %v1303_v30 = vld [vmem:[%s7415_s12 + $0x688] sm:$0xff] }
 0x184   : > { %3631 = vmatprep.mubr.bf16.mxu1 %v5621_v32  ;;  %5915 = vmatprep.mubr.bf16.mxu0 %v595_v33  ;;  %v1307_v31 = vld [vmem:[%s7415_s12 + $0x6a8] sm:$0xff]  ;;  %v565_v32 = vld [vmem:[%s7404_s6 + $0x180] sm:$0xff] }
 0x185   : > { %3729 = vmatpush1.bf16.msra.mxu1 %v6558_v34  ;;  %3165 = vmatpush1.bf16.msra.mxu0 %v6576_v57  ;;  %v566_v33 = vld [vmem:[%s7404_s6 + $0x188] sm:$0xff]  ;;  %v5661_v37 = vcombine.high %v1303_v30, %v1307_v31 }
 0x186   : > { %3730 = vmatprep.subr.bf16.mxu1 %v7008_v0  ;;  %3166 = vmatprep.subr.bf16.mxu0 %v7008_v0  ;;  %v6582_v34 = vld [vmem:[#allocation9 + $0x168] sm:$0xff]   ;;  %v605_v38 = vpack.c.bf16 %v566_v33, %v565_v32 }
 0x189   : > { %3731 = vmatpush1.bf16.msra.mxu1 %v6560_v42  ;;  %3167 = vmatpush1.bf16.msra.mxu0 %v6578_v63  ;;  %v1311_v42 = vld [vmem:[%s7415_s12 + $0x6c8] sm:$0xff] }
 0x18a   : > { %3732 = vmatprep.subr.bf16.mxu1 %v7008_v0  ;;  %3168 = vmatprep.subr.bf16.mxu0 %v7008_v0  ;;  %v5669_v49 = vcombine.high %v1311_v42, %v1315_v43  ;;  %v5668_v57 = vcombine.low %v1311_v42, %v1315_v43  ;;  %v1327_v63 = vld [vmem:[%s7415_s12 + $0x748] sm:$0xff]  ;;  %v5466_v42 = vcombine.low %v1110_v28, %v1114_v29  ;;  %v6586_v43 = vld [vmem:[#allocation9 + $0x180] sm:$0xff]  }
 0x18b   : > { %3632 = vmatmul.mubr.bf16.gmra.mrb[12].mxu1 %v5620_v44  ;;  %5916 = vmatmul.mubr.bf16.gmra.mrb[28].mxu0 %v596_v45  ;;  %v569_v44 = vld [vmem:[%s7404_s6 + $0x1a0] sm:$0xff]  ;;  %v570_v45 = vld [vmem:[%s7404_s6 + $0x1a8] sm:$0xff]  ;;  %v5685_v6 = vcombine.high %v1327_v63, %v1331_v1 }
 0x18c   : > { %3639 = vmatprep.mubr.bf16.mxu1 %v5629_v46  ;;  %5919 = vmatprep.mubr.bf16.mxu0 %v597_v47  ;;  %v6585_v46 = vld [vmem:[#allocation9 + $0x178] sm:$0xff]   ;;  %v5660_v47 = vcombine.low %v1303_v30, %v1307_v31  ;;  %v607_v50 = vpack.c.bf16 %v570_v45, %v569_v44  ;;  %v6610_v30 = vld [vmem:[#allocation9 + $0x80] sm:$0xff]   ;;  %v5700_v31 = vcombine.low %v1343_v18, %v1347_v19 }
 0x18d   : > { %3733 = vmatpush1.bf16.msra.mxu1 %v6563_v48  ;;  %3169 = vmatpush1.bf16.msra.mxu0 %v6580_v8  ;;  %v606_v48 = vpack.c.bf16 %v568_v41, %v567_v40  ;;  %v579_v8 = vld [vmem:[%s7404_s6 + $0x1f0] sm:$0xff]  ;;  %v1122_v40 = vld [vmem:[%s7415_s12 + $0xe0] sm:$0xff] }
 0x18e   : > { %3734 = vmatprep.subr.bf16.mxu1 %v7008_v0  ;;  %3170 = vmatprep.subr.bf16.mxu0 %v7008_v0 }
 0x191   : > { %3735 = vmatpush1.bf16.msra.mxu1 %v6566_v56  ;;  %3171 = vmatpush1.bf16.msra.mxu0 %v6581_v12  ;;  %v574_v56 = vld [vmem:[%s7404_s6 + $0x1c8] sm:$0xff]  ;;  %v1094_v12 = vld [vmem:[%s7415_s12] sm:$0xff] }
 0x192   : > { %3736 = vmatprep.subr.bf16.mxu1 %v7008_v0  ;;  %3172 = vmatprep.subr.bf16.mxu0 %v7008_v0 }
 0x193   : > { %3640 = vmatmul.mubr.bf16.gmra.mrb[16].mxu1 %v5628_v58  ;;  %5920 = vmatmul.mubr.bf16.gmra.mrb[32].mxu0 %v598_v59  ;;  %v608_v58 = vpack.c.bf16 %v572_v52, %v571_v51  ;;  %v5677_v59 = vcombine.high %v1319_v53, %v1323_v54  ;;  %v1130_v51 = vld [vmem:[%s7415_s12 + $0x120] sm:$0xff] }
 0x194   : > { %3647 = vmatprep.mubr.bf16.mxu1 %v5637_v60  ;;  %5923 = vmatprep.mubr.bf16.mxu0 %v599_v61  ;;  %v609_v60 = vpack.c.bf16 %v574_v56, %v573_v55  ;;  %v575_v61 = vld [vmem:[%s7404_s6 + $0x1d0] sm:$0xff]  ;;  %v6614_v52 = vld [vmem:[#allocation9 + $0xa0] sm:$0xff]  }
 0x195   : > { %3737 = vmatpush1.bf16.msra.mxu1 %v6568_v62  ;;  %3173 = vmatpush1.bf16.msra.mxu0 %v6583_v22  ;;  %v576_v62 = vld [vmem:[%s7404_s6 + $0x1d8] sm:$0xff] }
 0x196   : > { %3738 = vmatprep.subr.bf16.mxu1 %v7008_v0  ;;  %3431 = vmatprep.subr.bf16.mxu0 %v7008_v0  ;;  %v610_v5 = vpack.c.bf16 %v576_v62, %v575_v61  ;;  %v1134_v61 = vld [vmem:[%s7415_s12 + $0x140] sm:$0xff] }
 0x197   : > { %v1138_v62 = vld [vmem:[%s7415_s12 + $0x160] sm:$0xff] }
 0x199   : > { %3739 = vmatpush1.bf16.msra.mxu1 %v6571_v7  ;;  %v611_v7 = vpack.c.bf16 %v578_v3, %v577_v2 }
 0x19a   : > { %3740 = vmatprep.subr.bf16.mxu1 %v7008_v0 }
 0x19b   : > { %3648 = vmatmul.mubr.bf16.gmra.mrb[20].mxu1 %v5636_v9  ;;  %5924 = vmatmul.mubr.bf16.gmra.mrb[36].mxu0 %v600_v10  ;;  %v580_v9 = vld [vmem:[%s7404_s6 + $0x1f8] sm:$0xff]  ;;  %v1335_v10 = vld [vmem:[%s7415_s12 + $0x788] sm:$0xff] }
 0x19c   : > { %3655 = vmatprep.mubr.bf16.mxu1 %v5645_v13  ;;  %5927 = vmatprep.mubr.bf16.mxu0 %v601_v14  ;;  %v1098_v13 = vld [vmem:[%s7415_s12 + $0x20] sm:$0xff]  ;;  %v5684_v14 = vcombine.low %v1327_v63, %v1331_v1  ;;  %v612_v15 = vpack.c.bf16 %v580_v9, %v579_v8  ;;  %v6589_v63 = vld [vmem:[#allocation9 + $0x198] sm:$0xff]   ;;  %v6616_v1 = vld [vmem:[#allocation9 + $0xb0] sm:$0xff]  }
 0x19d   : > { %3741 = vmatpush1.bf16.msra.mxu1 %v6574_v11  ;;  %v1339_v11 = vld [vmem:[%s7415_s12 + $0x7a8] sm:$0xff]  ;;  %v5451_v17 = vcombine.high %v1094_v12, %v1098_v13  ;;  %v5450_v22 = vcombine.low %v1094_v12, %v1098_v13  ;;  %v1128_v8 = vld [vmem:[%s7415_s12 + $0x110] sm:$0xff]  ;;  %v6618_v13 = vld [vmem:[#allocation9 + $0xc0] sm:$0xff]  }
 0x19e   : > { %3742 = vmatprep.subr.bf16.mxu1 %v7008_v0  ;;  %v5693_v16 = vcombine.high %v1335_v10, %v1339_v11  ;;  %v1132_v9 = vld [vmem:[%s7415_s12 + $0x130] sm:$0xff]  ;;  %v6591_v12 = vld [vmem:[#allocation9 + $0x1a8] sm:$0xff]  }
 0x1a1   : > { %3743 = vmatpush1.bf16.msra.mxu1 %v6577_v21  ;;  %v1106_v21 = vld [vmem:[%s7415_s12 + $0x60] sm:$0xff] }
 0x1a2   : > { %3744 = vmatprep.subr.bf16.mxu1 %v7008_v0  ;;  %v5458_v32 = vcombine.low %v1102_v20, %v1106_v21 }
 0x1a3   : > { %3656 = vmatmul.mubr.bf16.gmra.mrb[24].mxu1 %v5644_v23  ;;  %5928 = vmatmul.mubr.bf16.gmra.mrb[40].mxu0 %v602_v24  ;;  %v5692_v23 = vcombine.low %v1335_v10, %v1339_v11  ;;  %v5701_v24 = vcombine.high %v1343_v18, %v1347_v19  ;;  %v1142_v10 = vld [vmem:[%s7415_s12 + $0x180] sm:$0xff]  ;;  %v6592_v18 = vld [vmem:[#allocation9 + $0x1b0] sm:$0xff]   ;;  %v6619_v19 = vld [vmem:[#allocation9 + $0xc8] sm:$0xff]  }
 0x1a4   : > { %3663 = vmatprep.mubr.bf16.mxu1 %v5653_v26  ;;  %5931 = vmatprep.mubr.bf16.mxu0 %v603_v27  ;;  %v1096_v26 = vld [vmem:[%s7415_s12 + $0x10] sm:$0xff]  ;;  %v1146_v11 = vld [vmem:[%s7415_s12 + $0x1a0] sm:$0xff] }
 0x1a5   : > { %3745 = vmatpush1.bf16.msra.mxu1 %v6579_v25  ;;  %v5459_v25 = vcombine.high %v1102_v20, %v1106_v21  ;;  %v1100_v27 = vld [vmem:[%s7415_s12 + $0x30] sm:$0xff] }
 0x1a6   : > { %3746 = vmatprep.subr.bf16.mxu1 %v7008_v0  ;;  %v5455_v33 = vcombine.high %v1096_v26, %v1100_v27  ;;  %v5454_v41 = vcombine.low %v1096_v26, %v1100_v27  ;;  %v1136_v20 = vld [vmem:[%s7415_s12 + $0x150] sm:$0xff]  ;;  %v5486_v26 = vcombine.low %v1128_v8, %v1132_v9  ;;  %v5498_v27 = vcombine.low %v1142_v10, %v1146_v11 }
 0x1a7   : > { %v1140_v21 = vld [vmem:[%s7415_s12 + $0x170] sm:$0xff] }
 0x1a9   : > { %3747 = vmatpush1.bf16.msra.mxu1 %v6582_v34  ;;  %v5467_v34 = vcombine.high %v1110_v28, %v1114_v29  ;;  %v5495_v28 = vcombine.high %v1136_v20, %v1140_v21 }
 0x1aa   : > { %3748 = vmatprep.subr.bf16.mxu1 %v7008_v0 }
 0x1ab   : > { %3664 = vmatmul.mubr.bf16.gmra.mrb[28].mxu1 %v5652_v35  ;;  %5932 = vmatmul.mubr.bf16.gmra.mrb[44].mxu0 %v604_v36  ;;  %v6611_v35 = vld [vmem:[#allocation9 + $0x88] sm:$0xff]   ;;  %v1104_v36 = vld [vmem:[%s7415_s12 + $0x50] sm:$0xff] }
 0x1ac   : > { %3671 = vmatprep.mubr.bf16.mxu1 %v5661_v37  ;;  %5935 = vmatprep.mubr.bf16.mxu0 %v605_v38  ;;  %v1108_v37 = vld [vmem:[%s7415_s12 + $0x70] sm:$0xff] }
 0x1ad   : > { %3749 = vmatpush1.bf16.msra.mxu1 %v6584_v39  ;;  %v6612_v38 = vld [vmem:[#allocation9 + $0x90] sm:$0xff]   ;;  %v1118_v39 = vld [vmem:[%s7415_s12 + $0xc0] sm:$0xff]  ;;  %v5463_v44 = vcombine.high %v1104_v36, %v1108_v37  ;;  %v5462_v53 = vcombine.low %v1104_v36, %v1108_v37  ;;  %v6595_v36 = vld [vmem:[#allocation9 + $0x1c8] sm:$0xff]  }
 0x1ae   : > { %3750 = vmatprep.subr.bf16.mxu1 %v7008_v0  ;;  %v5475_v45 = vcombine.high %v1118_v39, %v1122_v40  ;;  %v5474_v54 = vcombine.low %v1118_v39, %v1122_v40  ;;  %v6622_v37 = vld [vmem:[#allocation9 + $0xe0] sm:$0xff]  }
 0x1b1   : > { %3751 = vmatpush1.bf16.msra.mxu1 %v6585_v46  ;;  %v6613_v46 = vld [vmem:[#allocation9 + $0x98] sm:$0xff]  }
 0x1b2   : > { %4009 = vmatprep.subr.bf16.mxu1 %v7008_v0 }
 0x1b3   : > { %3672 = vmatmul.mubr.bf16.gmra.mrb[32].mxu1 %v5660_v47  ;;  %5936 = vmatmul.mubr.bf16.gmra.mrb[48].mxu0 %v606_v48  ;;  %v1112_v47 = vld [vmem:[%s7415_s12 + $0x90] sm:$0xff]  ;;  %v6587_v48 = vld [vmem:[#allocation9 + $0x188] sm:$0xff]  }
 0x1b4   : > { %3679 = vmatprep.mubr.bf16.mxu1 %v5669_v49  ;;  %5939 = vmatprep.mubr.bf16.mxu0 %v607_v50  ;;  %v1116_v49 = vld [vmem:[%s7415_s12 + $0xb0] sm:$0xff]  ;;  %v1126_v50 = vld [vmem:[%s7415_s12 + $0x100] sm:$0xff] }
 0x1b5   : > { %v5471_v55 = vcombine.high %v1112_v47, %v1116_v49  ;;  %v5483_v56 = vcombine.high %v1126_v50, %v1130_v51  ;;  %v5470_v2 = vcombine.low %v1112_v47, %v1116_v49  ;;  %v5482_v3 = vcombine.low %v1126_v50, %v1130_v51  ;;  %v1170_v47 = vld [vmem:[%s7415_s12 + $0x260] sm:$0xff] }
 0x1bb   : > { %3680 = vmatmul.mubr.bf16.gmra.mrb[36].mxu1 %v5668_v57  ;;  %5940 = vmatmul.mubr.bf16.gmra.mrb[52].mxu0 %v608_v58  ;;  %v6588_v57 = vld [vmem:[#allocation9 + $0x190] sm:$0xff]   ;;  %v6615_v58 = vld [vmem:[#allocation9 + $0xa8] sm:$0xff]  }
 0x1bc   : > { %3687 = vmatprep.mubr.bf16.mxu1 %v5677_v59  ;;  %5943 = vmatprep.mubr.bf16.mxu0 %v609_v60  ;;  %v1120_v59 = vld [vmem:[%s7415_s12 + $0xd0] sm:$0xff] }
 0x1bd   : > { %v1124_v60 = vld [vmem:[%s7415_s12 + $0xf0] sm:$0xff] }
 0x1c3   : > { %3688 = vmatmul.mubr.bf16.gmra.mrb[40].mxu1 %v5676_v4  ;;  %5944 = vmatmul.mubr.bf16.gmra.mrb[56].mxu0 %v610_v5  ;;  %v5479_v4 = vcombine.high %v1120_v59, %v1124_v60  ;;  %v5491_v5 = vcombine.high %v1134_v61, %v1138_v62 }
 0x1c4   : > { %3695 = vmatprep.mubr.bf16.mxu1 %v5685_v6  ;;  %5947 = vmatprep.mubr.bf16.mxu0 %v611_v7  ;;  %v6590_v6 = vld [vmem:[#allocation9 + $0x1a0] sm:$0xff]   ;;  %v6617_v7 = vld [vmem:[#allocation9 + $0xb8] sm:$0xff]  }
 0x1cb   : > { %3696 = vmatmul.mubr.bf16.gmra.mrb[44].mxu1 %v5684_v14  ;;  %5948 = vmatmul.mubr.bf16.gmra.mrb[60].mxu0 %v612_v15  ;;  %v5478_v14 = vcombine.low %v1120_v59, %v1124_v60  ;;  %v5490_v15 = vcombine.low %v1134_v61, %v1138_v62 }
 0x1cc   : > { %3703 = vmatprep.mubr.bf16.mxu1 %v5693_v16  ;;  %3174 = vmatprep.mubr.bf16.mxu0 %v5451_v17  ;;  %v5487_v16 = vcombine.high %v1128_v8, %v1132_v9  ;;  %v5499_v17 = vcombine.high %v1142_v10, %v1146_v11  ;;  %v6598_v8 = vld [vmem:[#allocation9 + $0x1e0] sm:$0xff]   ;;  %v1176_v9 = vld [vmem:[%s7415_s12 + $0x290] sm:$0xff] }
 0x1cd   : > { %v1180_v10 = vld [vmem:[%s7415_s12 + $0x2b0] sm:$0xff]  ;;  %v1190_v11 = vld [vmem:[%s7415_s12 + $0x300] sm:$0xff] }
 0x1d3   : > { %3704 = vmatmul.mubr.bf16.gmra.mrb[48].mxu1 %v5692_v23  ;;  %3175 = vmatmul.mubr.bf16.vlgmr.msra.gmra.mrb[64].mxu0 %v5450_v22  ;;  %v1150_v22 = vld [vmem:[%s7415_s12 + $0x1c0] sm:$0xff] }
 0x1d4   : > { %3711 = vmatprep.mubr.bf16.mxu1 %v5701_v24  ;;  %3182 = vmatprep.mubr.bf16.mxu0 %v5459_v25  ;;  %v1154_v23 = vld [vmem:[%s7415_s12 + $0x1e0] sm:$0xff]  ;;  %v6593_v24 = vld [vmem:[#allocation9 + $0x1b8] sm:$0xff]   ;;  %v6620_v25 = vld [vmem:[#allocation9 + $0xd0] sm:$0xff]  }
 0x1d5   : > { %3432 = vmatpush1.bf16.msra.mxu0 %v6610_v30  ;;  %v5507_v29 = vcombine.high %v1150_v22, %v1154_v23  ;;  %v6594_v30 = vld [vmem:[#allocation9 + $0x1c0] sm:$0xff]   ;;  %v5506_v39 = vcombine.low %v1150_v22, %v1154_v23  ;;  %v1188_v22 = vld [vmem:[%s7415_s12 + $0x2f0] sm:$0xff] }
 0x1d6   : > { %3433 = vmatprep.subr.bf16.mxu0 %v7008_v0  ;;  %v1198_v23 = vld [vmem:[%s7415_s12 + $0x340] sm:$0xff] }
 0x1d9   : > { %3434 = vmatpush1.bf16.msra.mxu0 %v6611_v35  ;;  %v1162_v35 = vld [vmem:[%s7415_s12 + $0x220] sm:$0xff] }
 0x1da   : > { %3435 = vmatprep.subr.bf16.mxu0 %v7008_v0 }
 0x1db   : > { %3712 = vmatmul.mubr.bf16.gmra.mrb[52].mxu1 %v5700_v31  ;;  %3183 = vmatmul.mubr.bf16.gmra.mrb[68].mxu0 %v5458_v32  ;;  %v6621_v31 = vld [vmem:[#allocation9 + $0xd8] sm:$0xff]   ;;  %v1144_v32 = vld [vmem:[%s7415_s12 + $0x190] sm:$0xff] }
 0x1dc   : > { %3752 = vmatprep.mubr.bf16.mxu1 %v5455_v33  ;;  %3190 = vmatprep.mubr.bf16.mxu0 %v5467_v34  ;;  %v1148_v33 = vld [vmem:[%s7415_s12 + $0x1b0] sm:$0xff]  ;;  %v1158_v34 = vld [vmem:[%s7415_s12 + $0x200] sm:$0xff] }
 0x1dd   : > { %3436 = vmatpush1.bf16.msra.mxu0 %v6612_v38  ;;  %v5494_v38 = vcombine.low %v1136_v20, %v1140_v21  ;;  %v5503_v40 = vcombine.high %v1144_v32, %v1148_v33  ;;  %v5502_v49 = vcombine.low %v1144_v32, %v1148_v33  ;;  %v5514_v50 = vcombine.low %v1158_v34, %v1162_v35  ;;  %v1184_v21 = vld [vmem:[%s7415_s12 + $0x2d0] sm:$0xff]  ;;  %v6599_v33 = vld [vmem:[#allocation9 + $0x1e8] sm:$0xff]  }
 0x1de   : > { %3437 = vmatprep.subr.bf16.mxu0 %v7008_v0 }
 0x1e1   : > { %3438 = vmatpush1.bf16.msra.mxu0 %v6613_v46  ;;  %v1166_v46 = vld [vmem:[%s7415_s12 + $0x240] sm:$0xff] }
 0x1e2   : > { %3439 = vmatprep.subr.bf16.mxu0 %v7008_v0  ;;  %v5522_v60 = vcombine.low %v1166_v46, %v1170_v47 }
 0x1e3   : > { %3753 = vmatmul.mubr.bf16.vlgmr.msra.gmra.mrb[56].mxu1 %v5454_v41  ;;  %3191 = vmatmul.mubr.bf16.gmra.mrb[72].mxu0 %v5466_v42  ;;  %v5515_v41 = vcombine.high %v1158_v34, %v1162_v35  ;;  %v6596_v42 = vld [vmem:[#allocation9 + $0x1d0] sm:$0xff]  }
 0x1e4   : > { %4010 = vmatpush1.bf16.msra.mxu1 %v6586_v43  ;;  %3760 = vmatprep.mubr.bf16.mxu1 %v5463_v44  ;;  %v6623_v43 = vld [vmem:[#allocation9 + $0xe8] sm:$0xff]   ;;  %v1152_v44 = vld [vmem:[%s7415_s12 + $0x1d0] sm:$0xff] }
 0x1e5   : > { %3198 = vmatprep.mubr.bf16.mxu0 %v5475_v45  ;;  %4011 = vmatprep.subr.bf16.mxu1 %v7008_v0  ;;  %v1156_v45 = vld [vmem:[%s7415_s12 + $0x1f0] sm:$0xff] }
 0x1e6   : > { %3440 = vmatpush1.bf16.msra.mxu0 %v6614_v52  ;;  %v5511_v51 = vcombine.high %v1152_v44, %v1156_v45  ;;  %v5523_v52 = vcombine.high %v1166_v46, %v1170_v47  ;;  %v5510_v59 = vcombine.low %v1152_v44, %v1156_v45  ;;  %v1192_v34 = vld [vmem:[%s7415_s12 + $0x310] sm:$0xff] }
 0x1e7   : > { %3441 = vmatprep.subr.bf16.mxu0 %v7008_v0  ;;  %v1196_v35 = vld [vmem:[%s7415_s12 + $0x330] sm:$0xff] }
 0x1e8   : > { %4012 = vmatpush1.bf16.msra.mxu1 %v6587_v48  ;;  %v6624_v48 = vld [vmem:[#allocation9 + $0xf0] sm:$0xff]  }
 0x1e9   : > { %4013 = vmatprep.subr.bf16.mxu1 %v7008_v0  ;;  %v1200_v46 = vld [vmem:[%s7415_s12 + $0x350] sm:$0xff] }
 0x1ea   : > { %3442 = vmatpush1.bf16.msra.mxu0 %v6615_v58  ;;  %v1178_v58 = vld [vmem:[%s7415_s12 + $0x2a0] sm:$0xff]  ;;  %v1204_v47 = vld [vmem:[%s7415_s12 + $0x370] sm:$0xff] }
 0x1eb   : > { %3761 = vmatmul.mubr.bf16.gmra.mrb[60].mxu1 %v5462_v53  ;;  %3199 = vmatmul.mubr.bf16.gmra.mrb[76].mxu0 %v5474_v54  ;;  %v6625_v53 = vld [vmem:[#allocation9 + $0xf8] sm:$0xff]  }
 0x1ec   : > { %3768 = vmatprep.mubr.bf16.mxu1 %v5471_v55  ;;  %3206 = vmatprep.mubr.bf16.mxu0 %v5483_v56  ;;  %v6597_v54 = vld [vmem:[#allocation9 + $0x1d8] sm:$0xff]   ;;  %v1160_v55 = vld [vmem:[%s7415_s12 + $0x210] sm:$0xff] }
 0x1ed   : > { %4014 = vmatpush1.bf16.msra.mxu1 %v6588_v57  ;;  %3443 = vmatprep.subr.bf16.mxu0 %v7008_v0  ;;  %v1164_v56 = vld [vmem:[%s7415_s12 + $0x230] sm:$0xff]  ;;  %v1174_v57 = vld [vmem:[%s7415_s12 + $0x280] sm:$0xff] }
 0x1ee   : > { %4015 = vmatprep.subr.bf16.mxu1 %v7008_v0  ;;  %3444 = vmatpush1.bf16.msra.mxu0 %v6616_v1  ;;  %v5519_v61 = vcombine.high %v1160_v55, %v1164_v56  ;;  %v5531_v62 = vcombine.high %v1174_v57, %v1178_v58  ;;  %v1172_v1 = vld [vmem:[%s7415_s12 + $0x270] sm:$0xff] }
 0x1ef   : > { %3445 = vmatprep.subr.bf16.mxu0 %v7008_v0 }
 0x1f1   : > { %4016 = vmatpush1.bf16.msra.mxu1 %v6589_v63  ;;  %v1168_v63 = vld [vmem:[%s7415_s12 + $0x250] sm:$0xff] }
 0x1f2   : > { %4017 = vmatprep.subr.bf16.mxu1 %v7008_v0  ;;  %3446 = vmatpush1.bf16.msra.mxu0 %v6617_v7 }
 0x1f3   : > { %3769 = vmatmul.mubr.bf16.gmra.mrb[64].mxu1 %v5470_v2  ;;  %3207 = vmatmul.mubr.bf16.gmra.mrb[80].mxu0 %v5482_v3  ;;  %v1182_v2 = vld [vmem:[%s7415_s12 + $0x2c0] sm:$0xff] }
 0x1f4   : > { %3776 = vmatprep.mubr.bf16.mxu1 %v5479_v4  ;;  %3214 = vmatprep.mubr.bf16.mxu0 %v5491_v5  ;;  %v1186_v3 = vld [vmem:[%s7415_s12 + $0x2e0] sm:$0xff]  ;;  %v5518_v4 = vcombine.low %v1160_v55, %v1164_v56  ;;  %v5530_v5 = vcombine.low %v1174_v57, %v1178_v58  ;;  %v6600_v58 = vld [vmem:[#allocation9 + $0x1f0] sm:$0xff]  }
 0x1f5   : > { %4018 = vmatpush1.bf16.msra.mxu1 %v6590_v6  ;;  %3447 = vmatprep.subr.bf16.mxu0 %v7008_v0  ;;  %v5527_v6 = vcombine.high %v1168_v63, %v1172_v1  ;;  %v5539_v7 = vcombine.high %v1182_v2, %v1186_v3 }
 0x1f6   : > { %4019 = vmatprep.subr.bf16.mxu1 %v7008_v0  ;;  %3448 = vmatpush1.bf16.msra.mxu0 %v6618_v13 }
 0x1f7   : > { %3449 = vmatprep.subr.bf16.mxu0 %v7008_v0 }
 0x1f9   : > { %4020 = vmatpush1.bf16.msra.mxu1 %v6591_v12  ;;  %v1194_v12 = vld [vmem:[%s7415_s12 + $0x320] sm:$0xff] }
 0x1fa   : > { %4021 = vmatprep.subr.bf16.mxu1 %v7008_v0  ;;  %3450 = vmatpush1.bf16.msra.mxu0 %v6619_v19 }
 0x1fb   : > { %3777 = vmatmul.mubr.bf16.gmra.mrb[68].mxu1 %v5478_v14  ;;  %3215 = vmatmul.mubr.bf16.gmra.mrb[84].mxu0 %v5490_v15  ;;  %v5526_v14 = vcombine.low %v1168_v63, %v1172_v1  ;;  %v5538_v15 = vcombine.low %v1182_v2, %v1186_v3  ;;  %v5558_v1 = vcombine.low %v1200_v46, %v1204_v47 }
 0x1fc   : > { %3784 = vmatprep.mubr.bf16.mxu1 %v5487_v16  ;;  %3222 = vmatprep.mubr.bf16.mxu0 %v5499_v17  ;;  %v5535_v17 = vcombine.high %v1176_v9, %v1180_v10 }
 0x1fd   : > { %4022 = vmatpush1.bf16.msra.mxu1 %v6592_v18  ;;  %3451 = vmatprep.subr.bf16.mxu0 %v7008_v0  ;;  %v5547_v18 = vcombine.high %v1190_v11, %v1194_v12 }
 0x1fe   : > { %4023 = vmatprep.subr.bf16.mxu1 %v7008_v0  ;;  %3452 = vmatpush1.bf16.msra.mxu0 %v6620_v25 }
 0x1ff   : > { %3453 = vmatprep.subr.bf16.mxu0 %v7008_v0 }
 0x201   : > { %4024 = vmatpush1.bf16.msra.mxu1 %v6593_v24  ;;  %v1202_v24 = vld [vmem:[%s7415_s12 + $0x360] sm:$0xff] }
 0x202   : > { %4025 = vmatprep.subr.bf16.mxu1 %v7008_v0  ;;  %3454 = vmatpush1.bf16.msra.mxu0 %v6621_v31 }
 0x203   : > { %3785 = vmatmul.mubr.bf16.gmra.mrb[72].mxu1 %v5486_v26  ;;  %3223 = vmatmul.mubr.bf16.gmra.mrb[88].mxu0 %v5498_v27  ;;  %v5534_v26 = vcombine.low %v1176_v9, %v1180_v10  ;;  %v5546_v27 = vcombine.low %v1190_v11, %v1194_v12  ;;  %v1220_v9 = vld [vmem:[%s7415_s12 + $0x3f0] sm:$0xff]  ;;  %v1230_v10 = vld [vmem:[%s7415_s12 + $0x440] sm:$0xff] }
 0x204   : > { %3792 = vmatprep.mubr.bf16.mxu1 %v5495_v28  ;;  %3230 = vmatprep.mubr.bf16.mxu0 %v5507_v29  ;;  %v5543_v29 = vcombine.high %v1184_v21, %v1188_v22 }
 0x205   : > { %4026 = vmatpush1.bf16.msra.mxu1 %v6594_v30  ;;  %3455 = vmatprep.subr.bf16.mxu0 %v7008_v0  ;;  %v5555_v30 = vcombine.high %v1198_v23, %v1202_v24 }
 0x206   : > { %4027 = vmatprep.subr.bf16.mxu1 %v7008_v0  ;;  %3456 = vmatpush1.bf16.msra.mxu0 %v6622_v37  ;;  %v1210_v37 = vld [vmem:[%s7415_s12 + $0x3a0] sm:$0xff] }
 0x207   : > { %3457 = vmatprep.subr.bf16.mxu0 %v7008_v0 }
 0x209   : > { %4028 = vmatpush1.bf16.msra.mxu1 %v6595_v36  ;;  %v1206_v36 = vld [vmem:[%s7415_s12 + $0x380] sm:$0xff] }
 0x20a   : > { %4029 = vmatprep.subr.bf16.mxu1 %v7008_v0  ;;  %3458 = vmatpush1.bf16.msra.mxu0 %v6623_v43  ;;  %v5563_v43 = vcombine.high %v1206_v36, %v1210_v37 }
 0x20b   : > { %3793 = vmatmul.mubr.bf16.gmra.mrb[76].mxu1 %v5494_v38  ;;  %3231 = vmatmul.mubr.bf16.gmra.mrb[92].mxu0 %v5506_v39  ;;  %v5542_v39 = vcombine.low %v1184_v21, %v1188_v22 }
 0x20c   : > { %3800 = vmatprep.mubr.bf16.mxu1 %v5503_v40  ;;  %3238 = vmatprep.mubr.bf16.mxu0 %v5515_v41  ;;  %v5554_v40 = vcombine.low %v1198_v23, %v1202_v24  ;;  %v6601_v23 = vld [vmem:[#allocation9 + $0x1f8] sm:$0xff]   ;;  %v1224_v24 = vld [vmem:[%s7415_s12 + $0x410] sm:$0xff] }
 0x20d   : > { %4030 = vmatpush1.bf16.msra.mxu1 %v6596_v42  ;;  %3459 = vmatprep.subr.bf16.mxu0 %v7008_v0  ;;  %v5551_v42 = vcombine.high %v1192_v34, %v1196_v35 }
 0x20e   : > { %4031 = vmatprep.subr.bf16.mxu1 %v7008_v0  ;;  %3460 = vmatpush1.bf16.msra.mxu0 %v6624_v48  ;;  %v1214_v48 = vld [vmem:[%s7415_s12 + $0x3c0] sm:$0xff] }
 0x20f   : > { %3461 = vmatprep.subr.bf16.mxu0 %v7008_v0 }
 0x211   : > { %4032 = vmatpush1.bf16.msra.mxu1 %v6597_v54  ;;  %v5559_v54 = vcombine.high %v1200_v46, %v1204_v47  ;;  %v1246_v46 = vld [vmem:[%s7415_s12 + $0x4c0] sm:$0xff] }
 0x212   : > { %3462 = vmatpush1.bf16.msra.mxu0 %v6625_v53  ;;  %4033 = vmatprep.subr.bf16.mxu1 %v7008_v0  ;;  %v1250_v47 = vld [vmem:[%s7415_s12 + $0x4e0] sm:$0xff] }
 0x213   : > { %3801 = vmatmul.mubr.bf16.gmra.mrb[80].mxu1 %v5502_v49  ;;  %3239 = vmatmul.mubr.bf16.gmra.mrb[96].mxu0 %v5514_v50  ;;  %v1218_v49 = vld [vmem:[%s7415_s12 + $0x3e0] sm:$0xff] }
 0x214   : > { %3808 = vmatprep.mubr.bf16.mxu1 %v5511_v51  ;;  %3246 = vmatprep.mubr.bf16.mxu0 %v5523_v52  ;;  %v5550_v51 = vcombine.low %v1192_v34, %v1196_v35  ;;  %v5562_v52 = vcombine.low %v1206_v36, %v1210_v37  ;;  %v5571_v55 = vcombine.high %v1214_v48, %v1218_v49 }
 0x215   : > { %4034 = vmatpush1.bf16.msra.mxu1 %v6598_v8  ;;  %v5570_v2 = vcombine.low %v1214_v48, %v1218_v49  ;;  %v1216_v8 = vld [vmem:[%s7415_s12 + $0x3d0] sm:$0xff] }
 0x216   : > { %4035 = vmatprep.subr.bf16.mxu1 %v7008_v0 }
 0x219   : > { %4036 = vmatpush1.bf16.msra.mxu1 %v6599_v33  ;;  %v5574_v33 = vcombine.low %v1216_v8, %v1220_v9 }
 0x21a   : > { %4037 = vmatprep.subr.bf16.mxu1 %v7008_v0 }
 0x21b   : > { %3809 = vmatmul.mubr.bf16.gmra.mrb[84].mxu1 %v5510_v59  ;;  %3247 = vmatmul.mubr.bf16.gmra.mrb[100].mxu0 %v5522_v60  ;;  %v1208_v59 = vld [vmem:[%s7415_s12 + $0x390] sm:$0xff] }
 0x21c   : > { %3816 = vmatprep.mubr.bf16.mxu1 %v5519_v61  ;;  %3254 = vmatprep.mubr.bf16.mxu0 %v5531_v62  ;;  %v1212_v60 = vld [vmem:[%s7415_s12 + $0x3b0] sm:$0xff]  ;;  %v1222_v61 = vld [vmem:[%s7415_s12 + $0x400] sm:$0xff] }
 0x21d   : > { %v1226_v62 = vld [vmem:[%s7415_s12 + $0x420] sm:$0xff]  ;;  %4038 = vmatpush1.bf16.msra.mxu1 %v6600_v58  ;;  %v5566_v12 = vcombine.low %v1208_v59, %v1212_v60 }
 0x21e   : > { %4039 = vmatprep.subr.bf16.mxu1 %v7008_v0  ;;  %v1234_v0 = vld [vmem:[%s7415_s12 + $0x460] sm:$0xff] }
 0x21f   : > { %v5586_v34 = vcombine.low %v1230_v10, %v1234_v0 }
 0x221   : > { %4040 = vmatpush1.bf16.msra.mxu1 %v6601_v23  ;;  %v1266_v23 = vld [vmem:[%s7415_s12 + $0x560] sm:$0xff] }
 0x223   : > { %3817 = vmatmul.mubr.bf16.gmra.mrb[88].mxu1 %v5518_v4  ;;  %3255 = vmatmul.mubr.bf16.gmra.mrb[104].mxu0 %v5530_v5  ;;  %v5567_v4 = vcombine.high %v1208_v59, %v1212_v60  ;;  %v5579_v5 = vcombine.high %v1222_v61, %v1226_v62  ;;  %v1240_v60 = vld [vmem:[%s7415_s12 + $0x490] sm:$0xff] }
 0x224   : > { %3824 = vmatprep.mubr.bf16.mxu1 %v5527_v6  ;;  %3262 = vmatprep.mubr.bf16.mxu0 %v5539_v7 }
 0x226   : > { %v7662_v13 = vpop.f32.mrb[0].mxu0 }
 0x227   : > { %v7665_v16 = vpop.f32.mrb[1].mxu0 }
 0x228   : > { %v7667_v19 = vpop.f32.mrb[2].mxu0 }
 0x229   : > { %v7669_v20 = vpop.f32.mrb[3].mxu0 }
 0x22b   : > { %3825 = vmatmul.mubr.bf16.gmra.mrb[92].mxu1 %v5526_v14  ;;  %3263 = vmatmul.mubr.bf16.gmra.mrb[108].mxu0 %v5538_v15  ;;  %v5578_v14 = vcombine.low %v1222_v61, %v1226_v62  ;;  %v1244_v61 = vld [vmem:[%s7415_s12 + $0x4b0] sm:$0xff]  ;;  %v1254_v62 = vld [vmem:[%s7415_s12 + $0x500] sm:$0xff] }
 0x22c   : > { %3832 = vmatprep.mubr.bf16.mxu1 %v5535_v17  ;;  %3270 = vmatprep.mubr.bf16.mxu0 %v5547_v18  ;;  %v5575_v17 = vcombine.high %v1216_v8, %v1220_v9  ;;  %v5587_v18 = vcombine.high %v1230_v10, %v1234_v0  ;;  %v5599_v9 = vcombine.high %v1240_v60, %v1244_v61 }
 0x22e   : > { %v7675_v25 = vpop.f32.mrb[4].mxu0 }
 0x22f   : > { %v7677_v28 = vpop.f32.mrb[5].mxu0 }
 0x230   : > { %v7679_v31 = vpop.f32.mrb[6].mxu0 }
 0x231   : > { %v7681_v32 = vpop.f32.mrb[7].mxu0 }
 0x233   : > { %3833 = vmatmul.mubr.bf16.gmra.mrb[96].mxu1 %v5534_v26  ;;  %3271 = vmatmul.mubr.bf16.gmra.mrb[112].mxu0 %v5546_v27  ;;  %v1228_v26 = vld [vmem:[%s7415_s12 + $0x430] sm:$0xff]  ;;  %v1238_v27 = vld [vmem:[%s7415_s12 + $0x480] sm:$0xff] }
 0x234   : > { %3840 = vmatprep.mubr.bf16.mxu1 %v5543_v29  ;;  %3278 = vmatprep.mubr.bf16.mxu0 %v5555_v30  ;;  %v1242_v29 = vld [vmem:[%s7415_s12 + $0x4a0] sm:$0xff]  ;;  %v5583_v36 = vcombine.high %v1224_v24, %v1228_v26  ;;  %v5582_v49 = vcombine.low %v1224_v24, %v1228_v26  ;;  %v5598_v26 = vcombine.low %v1240_v60, %v1244_v61 }
 0x235   : > { %v5595_v37 = vcombine.high %v1238_v27, %v1242_v29 }
 0x236   : > { %v7687_v38 = vpop.f32.mrb[8].mxu0 }
 0x237   : > { %v7690_v41 = vpop.f32.mrb[9].mxu0 }
 0x238   : > { %v7692_v44 = vpop.f32.mrb[10].mxu0 }
 0x239   : > { %v7694_v45 = vpop.f32.mrb[11].mxu0 }
 0x23b   : > { %3841 = vmatmul.mubr.bf16.gmra.mrb[100].mxu1 %v5542_v39  ;;  %3279 = vmatmul.mubr.bf16.gmra.mrb[116].mxu0 %v5554_v40 }
 0x23c   : > { %3848 = vmatprep.mubr.bf16.mxu1 %v5551_v42  ;;  %3286 = vmatprep.mubr.bf16.mxu0 %v5563_v43  ;;  %v1232_v42 = vld [vmem:[%s7415_s12 + $0x450] sm:$0xff] }
 0x23d   : > { %v1236_v43 = vld [vmem:[%s7415_s12 + $0x470] sm:$0xff] }
 0x23e   : > { %v7700_v50 = vpop.f32.mrb[12].mxu0 }
 0x23f   : > { %v7702_v53 = vpop.f32.mrb[13].mxu0 }
 0x240   : > { %v7704_v56 = vpop.f32.mrb[14].mxu0 }
 0x241   : > { %v7706_v57 = vpop.f32.mrb[15].mxu0 }
 0x243   : > { %3849 = vmatmul.mubr.bf16.gmra.mrb[104].mxu1 %v5550_v51  ;;  %3287 = vmatmul.mubr.bf16.gmra.mrb[120].mxu0 %v5562_v52  ;;  %v5594_v51 = vcombine.low %v1238_v27, %v1242_v29 }
 0x244   : > { %3856 = vmatprep.mubr.bf16.mxu1 %v5559_v54  ;;  %3294 = vmatprep.mubr.bf16.mxu0 %v5571_v55  ;;  %v5591_v54 = vcombine.high %v1232_v42, %v1236_v43  ;;  %v5603_v55 = vcombine.high %v1246_v46, %v1250_v47 }
 0x246   : > { %v7712_v63 = vpop.f32.mrb[16].mxu0 }
 0x247   : > { %v7715_v3 = vpop.f32.mrb[17].mxu0 }
 0x248   : > { %v7717_v6 = vpop.f32.mrb[18].mxu0 }
 0x249   : > { %v7719_v7 = vpop.f32.mrb[19].mxu0 }
 0x24b   : > { %3857 = vmatmul.mubr.bf16.gmra.mrb[108].mxu1 %v5558_v1  ;;  %3295 = vmatmul.mubr.bf16.gmra.mrb[124].mxu0 %v5570_v2  ;;  %v1258_v1 = vld [vmem:[%s7415_s12 + $0x520] sm:$0xff] }
 0x24c   : > { %3864 = vmatprep.mubr.bf16.mxu1 %v5567_v4  ;;  %3302 = vmatprep.mubr.bf16.mxu0 %v5579_v5  ;;  %v5590_v4 = vcombine.low %v1232_v42, %v1236_v43  ;;  %v5602_v5 = vcombine.low %v1246_v46, %v1250_v47  ;;  %v5611_v10 = vcombine.high %v1254_v62, %v1258_v1  ;;  %v1256_v42 = vld [vmem:[%s7415_s12 + $0x510] sm:$0xff]  ;;  %v1270_v46 = vld [vmem:[%s7415_s12 + $0x580] sm:$0xff] }
 0x24d   : > { %v5610_v27 = vcombine.low %v1254_v62, %v1258_v1  ;;  %v1260_v43 = vld [vmem:[%s7415_s12 + $0x530] sm:$0xff]  ;;  %v1274_v47 = vld [vmem:[%s7415_s12 + $0x5a0] sm:$0xff] }
 0x24e   : > { %v7725_v11 = vpop.f32.mrb[20].mxu0  ;;  %v5615_v60 = vcombine.high %v1256_v42, %v1260_v43  ;;  %v5627_v61 = vcombine.high %v1270_v46, %v1274_v47 }
 0x24f   : > { %v7727_v15 = vpop.f32.mrb[21].mxu0 }
 0x250   : > { %v7729_v21 = vpop.f32.mrb[22].mxu0 }
 0x251   : > { %v7731_v22 = vpop.f32.mrb[23].mxu0 }
 0x253   : > { %3865 = vmatmul.mubr.bf16.gmra.mrb[112].mxu1 %v5566_v12  ;;  %3303 = vmatmul.mubr.bf16.gmra.mrb[128].mxu0 %v5578_v14  ;;  %v1248_v14 = vld [vmem:[%s7415_s12 + $0x4d0] sm:$0xff] }
 0x254   : > { %3872 = vmatprep.mubr.bf16.mxu1 %v5575_v17  ;;  %3310 = vmatprep.mubr.bf16.mxu0 %v5587_v18  ;;  %v1252_v17 = vld [vmem:[%s7415_s12 + $0x4f0] sm:$0xff]  ;;  %v1262_v18 = vld [vmem:[%s7415_s12 + $0x540] sm:$0xff] }
 0x256   : > { %v7737_v30 = vpop.f32.mrb[24].mxu0 }
 0x257   : > { %v7739_v35 = vpop.f32.mrb[25].mxu0 }
 0x258   : > { %v7741_v39 = vpop.f32.mrb[26].mxu0 }
 0x259   : > { %v7743_v40 = vpop.f32.mrb[27].mxu0 }
 0x25b   : > { %3873 = vmatmul.mubr.bf16.gmra.mrb[116].mxu1 %v5574_v33  ;;  %3311 = vmatmul.mubr.bf16.gmra.mrb[132].mxu0 %v5586_v34  ;;  %v5607_v33 = vcombine.high %v1248_v14, %v1252_v17  ;;  %v5619_v34 = vcombine.high %v1262_v18, %v1266_v23 }
 0x25c   : > { %3880 = vmatprep.mubr.bf16.mxu1 %v5583_v36  ;;  %3318 = vmatprep.mubr.bf16.mxu0 %v5595_v37 }
 0x25e   : > { %v7749_v48 = vpop.f32.mrb[28].mxu0 }
 0x25f   : > { %v7751_v52 = vpop.f32.mrb[29].mxu0 }
 0x260   : > { %v7753_v58 = vpop.f32.mrb[30].mxu0 }
 0x261   : > { %v7755_v59 = vpop.f32.mrb[31].mxu0 }
 0x263   : > { %3881 = vmatmul.mubr.bf16.gmra.mrb[120].mxu1 %v5582_v49  ;;  %3319 = vmatmul.mubr.bf16.gmra.mrb[136].mxu0 %v5594_v51  ;;  %v5606_v51 = vcombine.low %v1248_v14, %v1252_v17  ;;  %v5614_v17 = vcombine.low %v1256_v42, %v1260_v43  ;;  %v1290_v42 = vld [vmem:[%s7415_s12 + $0x620] sm:$0xff] }
 0x264   : > { %3888 = vmatprep.mubr.bf16.mxu1 %v5591_v54  ;;  %3326 = vmatprep.mubr.bf16.mxu0 %v5603_v55  ;;  %v5618_v54 = vcombine.low %v1262_v18, %v1266_v23  ;;  %v5626_v18 = vcombine.low %v1270_v46, %v1274_v47 }
 0x266   : > { %v7761_v2 = vpop.f32.mrb[32].mxu0 }
 0x267   : > { %v7763_v8 = vpop.f32.mrb[33].mxu0 }
 0x268   : > { %v7765_v0 = vpop.f32.mrb[34].mxu0 }
 0x269   : > { %v7767_v12 = vpop.f32.mrb[35].mxu0 }
 0x26b   : > { %3889 = vmatmul.mubr.bf16.gmra.mrb[124].mxu1 %v5590_v4  ;;  %3327 = vmatmul.mubr.bf16.gmra.mrb[140].mxu0 %v5602_v5  ;;  %v1264_v4 = vld [vmem:[%s7415_s12 + $0x550] sm:$0xff] }
 0x26c   : > { %3896 = vmatprep.mubr.bf16.mxu1 %v5599_v9  ;;  %3334 = vmatprep.mubr.bf16.mxu0 %v5611_v10  ;;  %v1268_v5 = vld [vmem:[%s7415_s12 + $0x570] sm:$0xff]  ;;  %v1278_v9 = vld [vmem:[%s7415_s12 + $0x5c0] sm:$0xff] }
 0x26d   : > { %v1282_v10 = vld [vmem:[%s7415_s12 + $0x5e0] sm:$0xff]  ;;  %v5622_v46 = vcombine.low %v1264_v4, %v1268_v5 }
 0x26e   : > { %v7773_v24 = vpop.f32.mrb[36].mxu0  ;;  %v5634_v47 = vcombine.low %v1278_v9, %v1282_v10 }
 0x26f   : > { %8589 = vst [vmem:[#allocation33_spill] sm:$0xff] %v7773_v24  ;;  %v7775_v29 = vpop.f32.mrb[37].mxu0 }
 0x270   : > { %8590 = vst [vmem:[#allocation34_spill] sm:$0xff] %v7775_v29  ;;  %v7777_v36 = vpop.f32.mrb[38].mxu0 }
 0x271   : > { %8591 = vst [vmem:[#allocation35_spill] sm:$0xff] %v7777_v36  ;;  %v7779_v37 = vpop.f32.mrb[39].mxu0 }
 0x272   : > { %8592 = vst [vmem:[#allocation36_spill] sm:$0xff] %v7779_v37 }
 0x273   : > { %3897 = vmatmul.mubr.bf16.gmra.mrb[0].mxu1 %v5598_v26  ;;  %3335 = vmatmul.mubr.bf16.gmra.mrb[144].mxu0 %v5610_v27  ;;  %v5623_v26 = vcombine.high %v1264_v4, %v1268_v5  ;;  %v5635_v27 = vcombine.high %v1278_v9, %v1282_v10  ;;  %v1298_v4 = vld [vmem:[%s7415_s12 + $0x660] sm:$0xff] }
 0x274   : > { %3904 = vmatprep.mubr.bf16.mxu1 %v5607_v33  ;;  %3342 = vmatprep.mubr.bf16.mxu0 %v5619_v34 }
 0x276   : > { %v7785_v49 = vpop.f32.mrb[40].mxu0 }
 0x277   : > { %8593 = vst [vmem:[#allocation37_spill] sm:$0xff] %v7785_v49  ;;  %v7787_v55 = vpop.f32.mrb[41].mxu0  ;;  %v1209_v49 = vld [vmem:[%s7415_s12 + $0x398] sm:$0xff] }
 0x278   : > { %8594 = vst [vmem:[#allocation38_spill] sm:$0xff] %v7787_v55  ;;  %v7789_v62 = vpop.f32.mrb[42].mxu0  ;;  %v1217_v55 = vld [vmem:[%s7415_s12 + $0x3d8] sm:$0xff] }
 0x279   : > { %8595 = vst [vmem:[#allocation39_spill] sm:$0xff] %v7789_v62  ;;  %v7791_v1 = vpop.f32.mrb[43].mxu0  ;;  %v1215_v62 = vld [vmem:[%s7415_s12 + $0x3c8] sm:$0xff] }
 0x27a   : > { %8596 = vst [vmem:[#allocation40_spill] sm:$0xff] %v7791_v1  ;;  %v1223_v1 = vld [vmem:[%s7415_s12 + $0x408] sm:$0xff] }
 0x27b   : > { %3905 = vmatmul.mubr.bf16.gmra.mrb[4].mxu1 %v5606_v51  ;;  %3343 = vmatmul.mubr.bf16.gmra.mrb[148].mxu0 %v5618_v54  ;;  %v1272_v51 = vld [vmem:[%s7415_s12 + $0x590] sm:$0xff] }
 0x27c   : > { %3912 = vmatprep.mubr.bf16.mxu1 %v5615_v60  ;;  %3350 = vmatprep.mubr.bf16.mxu0 %v5627_v61  ;;  %v1276_v54 = vld [vmem:[%s7415_s12 + $0x5b0] sm:$0xff]  ;;  %v1286_v60 = vld [vmem:[%s7415_s12 + $0x600] sm:$0xff] }
 0x27d   : > { %v5630_v9 = vcombine.low %v1272_v51, %v1276_v54  ;;  %v5642_v10 = vcombine.low %v1286_v60, %v1290_v42 }
 0x27e   : > { %v7797_v14 = vpop.f32.mrb[44].mxu0 }
 0x27f   : > { %8597 = vst [vmem:[#allocation41_spill] sm:$0xff] %v7797_v14  ;;  %v7799_v23 = vpop.f32.mrb[45].mxu0  ;;  %v5643_v14 = vcombine.high %v1286_v60, %v1290_v42 }
 0x280   : > { %8598 = vst [vmem:[#allocation42_spill] sm:$0xff] %v7799_v23  ;;  %v7801_v33 = vpop.f32.mrb[46].mxu0 }
 0x281   : > { %8599 = vst [vmem:[#allocation43_spill] sm:$0xff] %v7801_v33  ;;  %v7803_v34 = vpop.f32.mrb[47].mxu0  ;;  %v5631_v33 = vcombine.high %v1272_v51, %v1276_v54  ;;  %v1306_v51 = vld [vmem:[%s7415_s12 + $0x6a0] sm:$0xff] }
 0x282   : > { %8600 = vst [vmem:[#allocation44_spill] sm:$0xff] %v7803_v34  ;;  %v1294_v34 = vld [vmem:[%s7415_s12 + $0x640] sm:$0xff] }
 0x283   : > { %3913 = vmatmul.mubr.bf16.gmra.mrb[8].mxu1 %v5614_v17  ;;  %3351 = vmatmul.mubr.bf16.gmra.mrb[152].mxu0 %v5626_v18  ;;  %v5650_v42 = vcombine.low %v1294_v34, %v1298_v4 }
 0x284   : > { %3920 = vmatprep.mubr.bf16.mxu1 %v5623_v26  ;;  %3358 = vmatprep.mubr.bf16.mxu0 %v5635_v27  ;;  %v1280_v26 = vld [vmem:[%s7415_s12 + $0x5d0] sm:$0xff] }
 0x285   : > { %v1284_v27 = vld [vmem:[%s7415_s12 + $0x5f0] sm:$0xff] }
 0x286   : > { %v7809_v43 = vpop.f32.mrb[48].mxu0  ;;  %v5638_v60 = vcombine.low %v1280_v26, %v1284_v27 }
 0x287   : > { %8601 = vst [vmem:[#allocation45_spill] sm:$0xff] %v7809_v43  ;;  %v7811_v61 = vpop.f32.mrb[49].mxu0 }
 0x288   : > { %8602 = vst [vmem:[#allocation46_spill] sm:$0xff] %v7811_v61  ;;  %v7813_v17 = vpop.f32.mrb[50].mxu0  ;;  %v1302_v61 = vld [vmem:[%s7415_s12 + $0x680] sm:$0xff] }
 0x289   : > { %8603 = vst [vmem:[#allocation47_spill] sm:$0xff] %v7813_v17  ;;  %v7815_v18 = vpop.f32.mrb[51].mxu0  ;;  %v5639_v17 = vcombine.high %v1280_v26, %v1284_v27  ;;  %v1314_v26 = vld [vmem:[%s7415_s12 + $0x6e0] sm:$0xff] }
 0x28a   : > { %8604 = vst [vmem:[#allocation48_spill] sm:$0xff] %v7815_v18  ;;  %v5651_v18 = vcombine.high %v1294_v34, %v1298_v4  ;;  %v5658_v4 = vcombine.low %v1302_v61, %v1306_v51 }
 0x28b   : > { %3921 = vmatmul.mubr.bf16.gmra.mrb[12].mxu1 %v5622_v46  ;;  %3359 = vmatmul.mubr.bf16.gmra.mrb[156].mxu0 %v5634_v47  ;;  %v1292_v47 = vld [vmem:[%s7415_s12 + $0x630] sm:$0xff] }
 0x28c   : > { %3928 = vmatprep.mubr.bf16.mxu1 %v5631_v33  ;;  %3366 = vmatprep.mubr.bf16.mxu0 %v5643_v14  ;;  %v1288_v14 = vld [vmem:[%s7415_s12 + $0x610] sm:$0xff] }
 0x28d   : > { %v5646_v27 = vcombine.low %v1288_v14, %v1292_v47 }
 0x28e   : > { %v7821_v5 = vpop.f32.mrb[52].mxu0 }
 0x28f   : > { %8605 = vst [vmem:[#allocation49_spill] sm:$0xff] %v7821_v5  ;;  %v7823_v43 = vpop.f32.mrb[53].mxu0 }
 0x290   : > { %8606 = vst [vmem:[#allocation50_spill] sm:$0xff] %v7823_v43  ;;  %v7825_v46 = vpop.f32.mrb[54].mxu0  ;;  %v1310_v43 = vld [vmem:[%s7415_s12 + $0x6c0] sm:$0xff] }
 0x291   : > { %8607 = vst [vmem:[#allocation51_spill] sm:$0xff] %v7825_v46  ;;  %v7827_v33 = vpop.f32.mrb[55].mxu0  ;;  %v5647_v46 = vcombine.high %v1288_v14, %v1292_v47  ;;  %v1318_v14 = vld [vmem:[%s7415_s12 + $0x700] sm:$0xff] }
 0x292   : > { %8608 = vst [vmem:[#allocation52_spill] sm:$0xff] %v7827_v33  ;;  %v5659_v33 = vcombine.high %v1302_v61, %v1306_v51  ;;  %v1322_v61 = vld [vmem:[%s7415_s12 + $0x720] sm:$0xff]  ;;  %v5666_v51 = vcombine.low %v1310_v43, %v1314_v26 }
 0x293   : > { %3929 = vmatmul.mubr.bf16.gmra.mrb[16].mxu1 %v5630_v9  ;;  %3367 = vmatmul.mubr.bf16.gmra.mrb[160].mxu0 %v5642_v10  ;;  %v1300_v10 = vld [vmem:[%s7415_s12 + $0x670] sm:$0xff] }
 0x294   : > { %3936 = vmatprep.mubr.bf16.mxu1 %v5639_v17  ;;  %3374 = vmatprep.mubr.bf16.mxu0 %v5651_v18  ;;  %v1296_v18 = vld [vmem:[%s7415_s12 + $0x650] sm:$0xff] }
 0x295   : > { %v5654_v47 = vcombine.low %v1296_v18, %v1300_v10 }
 0x296   : > { %v7833_v54 = vpop.f32.mrb[56].mxu0 }
 0x297   : > { %8609 = vst [vmem:[#allocation53_spill] sm:$0xff] %v7833_v54  ;;  %v7835_v5 = vpop.f32.mrb[57].mxu0 }
 0x298   : > { %8610 = vst [vmem:[#allocation54_spill] sm:$0xff] %v7835_v5  ;;  %v7837_v9 = vpop.f32.mrb[58].mxu0 }
 0x299   : > { %8611 = vst [vmem:[#allocation55_spill] sm:$0xff] %v7837_v9  ;;  %v7839_v17 = vpop.f32.mrb[59].mxu0  ;;  %v5655_v9 = vcombine.high %v1296_v18, %v1300_v10  ;;  %v1324_v18 = vld [vmem:[%s7415_s12 + $0x730] sm:$0xff]  ;;  %v1338_v10 = vld [vmem:[%s7415_s12 + $0x7a0] sm:$0xff] }
 0x29a   : > { %8612 = vst [vmem:[#allocation56_spill] sm:$0xff] %v7839_v17  ;;  %v5667_v17 = vcombine.high %v1310_v43, %v1314_v26  ;;  %v1320_v43 = vld [vmem:[%s7415_s12 + $0x710] sm:$0xff] }
 0x29b   : > { %3937 = vmatmul.mubr.bf16.gmra.mrb[20].mxu1 %v5638_v60  ;;  %3375 = vmatmul.mubr.bf16.gmra.mrb[164].mxu0 %v5650_v42  ;;  %v1308_v42 = vld [vmem:[%s7415_s12 + $0x6b0] sm:$0xff] }
 0x29c   : > { %3944 = vmatprep.mubr.bf16.mxu1 %v5647_v46  ;;  %3382 = vmatprep.mubr.bf16.mxu0 %v5659_v33  ;;  %v1304_v33 = vld [vmem:[%s7415_s12 + $0x690] sm:$0xff] }
 0x29e   : > { %v7845_v34 = vpop.f32.mrb[60].mxu0 }
 0x29f   : > { %8613 = vst [vmem:[#allocation57_spill] sm:$0xff] %v7845_v34  ;;  %v7847_v54 = vpop.f32.mrb[61].mxu0  ;;  %v5663_v34 = vcombine.high %v1304_v33, %v1308_v42 }
 0x2a0   : > { %8614 = vst [vmem:[#allocation58_spill] sm:$0xff] %v7847_v54  ;;  %v7849_v60 = vpop.f32.mrb[62].mxu0  ;;  %v5675_v54 = vcombine.high %v1318_v14, %v1322_v61 }
 0x2a1   : > { %8615 = vst [vmem:[#allocation59_spill] sm:$0xff] %v7849_v60  ;;  %v7851_v46 = vpop.f32.mrb[63].mxu0  ;;  %v5662_v60 = vcombine.low %v1304_v33, %v1308_v42  ;;  %v5678_v33 = vcombine.low %v1320_v43, %v1324_v18 }
 0x2a2   : > { %8616 = vst [vmem:[#allocation60_spill] sm:$0xff] %v7851_v46  ;;  %v5674_v46 = vcombine.low %v1318_v14, %v1322_v61 }
 0x2a3   : > { %3945 = vmatmul.mubr.bf16.gmra.mrb[24].mxu1 %v5646_v27  ;;  %3383 = vmatmul.mubr.bf16.gmra.mrb[168].mxu0 %v5658_v4  ;;  %v1316_v27 = vld [vmem:[%s7415_s12 + $0x6f0] sm:$0xff]  ;;  %v1330_v4 = vld [vmem:[%s7415_s12 + $0x760] sm:$0xff] }
 0x2a4   : > { %3952 = vmatprep.mubr.bf16.mxu1 %v5655_v9  ;;  %3390 = vmatprep.mubr.bf16.mxu0 %v5667_v17  ;;  %v1312_v9 = vld [vmem:[%s7415_s12 + $0x6d0] sm:$0xff]  ;;  %v1326_v17 = vld [vmem:[%s7415_s12 + $0x740] sm:$0xff] }
 0x2a5   : > { %v5671_v5 = vcombine.high %v1312_v9, %v1316_v27  ;;  %v5683_v23 = vcombine.high %v1326_v17, %v1330_v4  ;;  %v5670_v26 = vcombine.low %v1312_v9, %v1316_v27  ;;  %v1336_v9 = vld [vmem:[%s7415_s12 + $0x790] sm:$0xff] }
 0x2a6   : > { %v1340_v27 = vld [vmem:[%s7415_s12 + $0x7b0] sm:$0xff] }
 0x2ab   : > { %3953 = vmatmul.mubr.bf16.gmra.mrb[28].mxu1 %v5654_v47  ;;  %3391 = vmatmul.mubr.bf16.gmra.mrb[172].mxu0 %v5666_v51  ;;  %v5679_v47 = vcombine.high %v1320_v43, %v1324_v18  ;;  %v1344_v43 = vld [vmem:[%s7415_s12 + $0x7d0] sm:$0xff] }
 0x2ac   : > { %3960 = vmatprep.mubr.bf16.mxu1 %v5663_v34  ;;  %3398 = vmatprep.mubr.bf16.mxu0 %v5675_v54  ;;  %v1334_v54 = vld [vmem:[%s7415_s12 + $0x780] sm:$0xff]  ;;  %v5682_v34 = vcombine.low %v1326_v17, %v1330_v4  ;;  %v1095_v17 = vld [vmem:[%s7415_s12 + $0x8] sm:$0xff]  ;;  %v1348_v18 = vld [vmem:[%s7415_s12 + $0x7f0] sm:$0xff] }
 0x2ad   : > { %v5691_v51 = vcombine.high %v1334_v54, %v1338_v10  ;;  %v5690_v42 = vcombine.low %v1334_v54, %v1338_v10  ;;  %v1099_v4 = vld [vmem:[%s7415_s12 + $0x28] sm:$0xff] }
 0x2ae   : > { %v1103_v54 = vld [vmem:[%s7415_s12 + $0x48] sm:$0xff] }
 0x2af   : > { %v1107_v10 = vld [vmem:[%s7415_s12 + $0x68] sm:$0xff] }
 0x2b3   : > { %3961 = vmatmul.mubr.bf16.gmra.mrb[32].mxu1 %v5662_v60  ;;  %3399 = vmatmul.mubr.bf16.gmra.mrb[176].mxu0 %v5674_v46  ;;  %v1332_v60 = vld [vmem:[%s7415_s12 + $0x770] sm:$0xff]  ;;  %v1346_v46 = vld [vmem:[%s7415_s12 + $0x7e0] sm:$0xff] }
 0x2b4   : > { %3968 = vmatprep.mubr.bf16.mxu1 %v5671_v5  ;;  %3406 = vmatprep.mubr.bf16.mxu0 %v5683_v23  ;;  %v1328_v5 = vld [vmem:[%s7415_s12 + $0x750] sm:$0xff]  ;;  %v1342_v23 = vld [vmem:[%s7415_s12 + $0x7c0] sm:$0xff] }
 0x2b5   : > { %v5687_v14 = vcombine.high %v1328_v5, %v1332_v60  ;;  %v5699_v61 = vcombine.high %v1342_v23, %v1346_v46 }
 0x2bb   : > { %3969 = vmatmul.mubr.bf16.gmra.mrb[36].mxu1 %v5670_v26  ;;  %3407 = vmatmul.mubr.bf16.gmra.mrb[180].mxu0 %v5682_v34  ;;  %v5686_v26 = vcombine.low %v1328_v5, %v1332_v60  ;;  %v5698_v34 = vcombine.low %v1342_v23, %v1346_v46  ;;  %v1097_v5 = vld [vmem:[%s7415_s12 + $0x18] sm:$0xff]  ;;  %v1111_v23 = vld [vmem:[%s7415_s12 + $0x88] sm:$0xff] }
 0x2bc   : > { %3976 = vmatprep.mubr.bf16.mxu1 %v5679_v47  ;;  %3414 = vmatprep.mubr.bf16.mxu0 %v5691_v51  ;;  %v5695_v47 = vcombine.high %v1336_v9, %v1340_v27  ;;  %v5453_v51 = vcombine.high %v1095_v17, %v1099_v4  ;;  %v1101_v60 = vld [vmem:[%s7415_s12 + $0x38] sm:$0xff]  ;;  %v1115_v46 = vld [vmem:[%s7415_s12 + $0xa8] sm:$0xff] }
 0x2c3   : > { %3977 = vmatmul.mubr.bf16.gmra.mrb[40].mxu1 %v5678_v33  ;;  %3415 = vmatmul.mubr.bf16.gmra.mrb[184].mxu0 %v5690_v42  ;;  %v5452_v33 = vcombine.low %v1095_v17, %v1099_v4  ;;  %v5694_v42 = vcombine.low %v1336_v9, %v1340_v27  ;;  %v1105_v9 = vld [vmem:[%s7415_s12 + $0x58] sm:$0xff]  ;;  %v1119_v17 = vld [vmem:[%s7415_s12 + $0xc8] sm:$0xff] }
 0x2c4   : > { %3984 = vmatprep.mubr.bf16.mxu1 %v5687_v14  ;;  %3422 = vmatprep.mubr.bf16.mxu0 %v5699_v61  ;;  %v5703_v14 = vcombine.high %v1344_v43, %v1348_v18  ;;  %v5461_v61 = vcombine.high %v1103_v54, %v1107_v10  ;;  %v1109_v27 = vld [vmem:[%s7415_s12 + $0x78] sm:$0xff]  ;;  %v1123_v4 = vld [vmem:[%s7415_s12 + $0xe8] sm:$0xff] }
 0x2cb   : > { %3985 = vmatmul.mubr.bf16.gmra.mrb[44].mxu1 %v5686_v26  ;;  %3423 = vmatmul.mubr.bf16.gmra.mrb[188].mxu0 %v5698_v34  ;;  %v5702_v26 = vcombine.low %v1344_v43, %v1348_v18  ;;  %v5460_v34 = vcombine.low %v1103_v54, %v1107_v10  ;;  %v1113_v43 = vld [vmem:[%s7415_s12 + $0x98] sm:$0xff]  ;;  %v1127_v54 = vld [vmem:[%s7415_s12 + $0x108] sm:$0xff] }
 0x2cc   : > { %3992 = vmatprep.mubr.bf16.mxu1 %v5695_v47  ;;  %3463 = vmatprep.mubr.bf16.mxu0 %v5453_v51  ;;  %v5457_v47 = vcombine.high %v1097_v5, %v1101_v60  ;;  %v5469_v51 = vcombine.high %v1111_v23, %v1115_v46  ;;  %v1117_v18 = vld [vmem:[%s7415_s12 + $0xb8] sm:$0xff]  ;;  %v1131_v10 = vld [vmem:[%s7415_s12 + $0x128] sm:$0xff] }
 0x2d3   : > { %3993 = vmatmul.mubr.bf16.gmra.mrb[48].mxu1 %v5694_v42  ;;  %3464 = vmatmul.mubr.bf16.vlgmr.msra.gmra.mrb[64].mxu0 %v5452_v33  ;;  %v5456_v33 = vcombine.low %v1097_v5, %v1101_v60  ;;  %v5468_v42 = vcombine.low %v1111_v23, %v1115_v46  ;;  %v1121_v5 = vld [vmem:[%s7415_s12 + $0xd8] sm:$0xff]  ;;  %v1135_v23 = vld [vmem:[%s7415_s12 + $0x148] sm:$0xff] }
 0x2d4   : > { %4000 = vmatprep.mubr.bf16.mxu1 %v5703_v14  ;;  %3471 = vmatprep.mubr.bf16.mxu0 %v5461_v61  ;;  %v5465_v14 = vcombine.high %v1105_v9, %v1109_v27  ;;  %v5477_v61 = vcombine.high %v1119_v17, %v1123_v4  ;;  %v1125_v60 = vld [vmem:[%s7415_s12 + $0xf8] sm:$0xff]  ;;  %v1139_v46 = vld [vmem:[%s7415_s12 + $0x168] sm:$0xff] }
 0x2db   : > { %4001 = vmatmul.mubr.bf16.gmra.mrb[52].mxu1 %v5702_v26  ;;  %3472 = vmatmul.mubr.bf16.gmra.mrb[68].mxu0 %v5460_v34  ;;  %v5464_v26 = vcombine.low %v1105_v9, %v1109_v27  ;;  %v5476_v34 = vcombine.low %v1119_v17, %v1123_v4  ;;  %v1129_v9 = vld [vmem:[%s7415_s12 + $0x118] sm:$0xff]  ;;  %v1143_v17 = vld [vmem:[%s7415_s12 + $0x188] sm:$0xff] }
 0x2dc   : > { %4041 = vmatprep.mubr.bf16.mxu1 %v5457_v47  ;;  %3479 = vmatprep.mubr.bf16.mxu0 %v5469_v51  ;;  %v5473_v47 = vcombine.high %v1113_v43, %v1117_v18  ;;  %v5485_v51 = vcombine.high %v1127_v54, %v1131_v10  ;;  %v1133_v27 = vld [vmem:[%s7415_s12 + $0x138] sm:$0xff]  ;;  %v1147_v4 = vld [vmem:[%s7415_s12 + $0x1a8] sm:$0xff] }
 0x2e3   : > { %4042 = vmatmul.mubr.bf16.vlgmr.msra.gmra.mrb[56].mxu1 %v5456_v33  ;;  %3480 = vmatmul.mubr.bf16.gmra.mrb[72].mxu0 %v5468_v42  ;;  %v5472_v33 = vcombine.low %v1113_v43, %v1117_v18  ;;  %v5484_v42 = vcombine.low %v1127_v54, %v1131_v10  ;;  %v1137_v43 = vld [vmem:[%s7415_s12 + $0x158] sm:$0xff]  ;;  %v1151_v54 = vld [vmem:[%s7415_s12 + $0x1c8] sm:$0xff] }
 0x2e4   : > { %4049 = vmatprep.mubr.bf16.mxu1 %v5465_v14  ;;  %3487 = vmatprep.mubr.bf16.mxu0 %v5477_v61  ;;  %v5481_v14 = vcombine.high %v1121_v5, %v1125_v60  ;;  %v5493_v61 = vcombine.high %v1135_v23, %v1139_v46  ;;  %v1141_v18 = vld [vmem:[%s7415_s12 + $0x178] sm:$0xff]  ;;  %v1155_v10 = vld [vmem:[%s7415_s12 + $0x1e8] sm:$0xff] }
 0x2eb   : > { %4050 = vmatmul.mubr.bf16.gmra.mrb[60].mxu1 %v5464_v26  ;;  %3488 = vmatmul.mubr.bf16.gmra.mrb[76].mxu0 %v5476_v34  ;;  %v5480_v26 = vcombine.low %v1121_v5, %v1125_v60  ;;  %v5492_v34 = vcombine.low %v1135_v23, %v1139_v46  ;;  %v1145_v5 = vld [vmem:[%s7415_s12 + $0x198] sm:$0xff]  ;;  %v1159_v23 = vld [vmem:[%s7415_s12 + $0x208] sm:$0xff] }
 0x2ec   : > { %4057 = vmatprep.mubr.bf16.mxu1 %v5473_v47  ;;  %3495 = vmatprep.mubr.bf16.mxu0 %v5485_v51  ;;  %v5489_v47 = vcombine.high %v1129_v9, %v1133_v27  ;;  %v5501_v51 = vcombine.high %v1143_v17, %v1147_v4  ;;  %v1149_v60 = vld [vmem:[%s7415_s12 + $0x1b8] sm:$0xff]  ;;  %v1163_v46 = vld [vmem:[%s7415_s12 + $0x228] sm:$0xff] }
 0x2f3   : > { %4058 = vmatmul.mubr.bf16.gmra.mrb[64].mxu1 %v5472_v33  ;;  %3496 = vmatmul.mubr.bf16.gmra.mrb[80].mxu0 %v5484_v42  ;;  %v5488_v33 = vcombine.low %v1129_v9, %v1133_v27  ;;  %v5500_v42 = vcombine.low %v1143_v17, %v1147_v4  ;;  %v1153_v9 = vld [vmem:[%s7415_s12 + $0x1d8] sm:$0xff]  ;;  %v1167_v17 = vld [vmem:[%s7415_s12 + $0x248] sm:$0xff] }
 0x2f4   : > { %4065 = vmatprep.mubr.bf16.mxu1 %v5481_v14  ;;  %3503 = vmatprep.mubr.bf16.mxu0 %v5493_v61  ;;  %v5497_v14 = vcombine.high %v1137_v43, %v1141_v18  ;;  %v5509_v61 = vcombine.high %v1151_v54, %v1155_v10  ;;  %v1157_v27 = vld [vmem:[%s7415_s12 + $0x1f8] sm:$0xff]  ;;  %v1171_v4 = vld [vmem:[%s7415_s12 + $0x268] sm:$0xff] }
 0x2fb   : > { %4066 = vmatmul.mubr.bf16.gmra.mrb[68].mxu1 %v5480_v26  ;;  %3504 = vmatmul.mubr.bf16.gmra.mrb[84].mxu0 %v5492_v34  ;;  %v5496_v26 = vcombine.low %v1137_v43, %v1141_v18  ;;  %v5508_v34 = vcombine.low %v1151_v54, %v1155_v10  ;;  %v1161_v43 = vld [vmem:[%s7415_s12 + $0x218] sm:$0xff]  ;;  %v1175_v54 = vld [vmem:[%s7415_s12 + $0x288] sm:$0xff] }
 0x2fc   : > { %4073 = vmatprep.mubr.bf16.mxu1 %v5489_v47  ;;  %3511 = vmatprep.mubr.bf16.mxu0 %v5501_v51  ;;  %v5505_v47 = vcombine.high %v1145_v5, %v1149_v60  ;;  %v5517_v51 = vcombine.high %v1159_v23, %v1163_v46  ;;  %v1165_v18 = vld [vmem:[%s7415_s12 + $0x238] sm:$0xff]  ;;  %v1179_v10 = vld [vmem:[%s7415_s12 + $0x2a8] sm:$0xff] }
 0x303   : > { %4074 = vmatmul.mubr.bf16.gmra.mrb[72].mxu1 %v5488_v33  ;;  %3512 = vmatmul.mubr.bf16.gmra.mrb[88].mxu0 %v5500_v42  ;;  %v5504_v33 = vcombine.low %v1145_v5, %v1149_v60  ;;  %v5516_v42 = vcombine.low %v1159_v23, %v1163_v46  ;;  %v1169_v5 = vld [vmem:[%s7415_s12 + $0x258] sm:$0xff]  ;;  %v1183_v23 = vld [vmem:[%s7415_s12 + $0x2c8] sm:$0xff] }
 0x304   : > { %4081 = vmatprep.mubr.bf16.mxu1 %v5497_v14  ;;  %3519 = vmatprep.mubr.bf16.mxu0 %v5509_v61  ;;  %v5513_v14 = vcombine.high %v1153_v9, %v1157_v27  ;;  %v5525_v61 = vcombine.high %v1167_v17, %v1171_v4  ;;  %v1173_v60 = vld [vmem:[%s7415_s12 + $0x278] sm:$0xff]  ;;  %v1187_v46 = vld [vmem:[%s7415_s12 + $0x2e8] sm:$0xff] }
 0x30b   : > { %4082 = vmatmul.mubr.bf16.gmra.mrb[76].mxu1 %v5496_v26  ;;  %3520 = vmatmul.mubr.bf16.gmra.mrb[92].mxu0 %v5508_v34  ;;  %v5512_v26 = vcombine.low %v1153_v9, %v1157_v27  ;;  %v5524_v34 = vcombine.low %v1167_v17, %v1171_v4  ;;  %v1177_v9 = vld [vmem:[%s7415_s12 + $0x298] sm:$0xff]  ;;  %v1191_v17 = vld [vmem:[%s7415_s12 + $0x308] sm:$0xff] }
 0x30c   : > { %4089 = vmatprep.mubr.bf16.mxu1 %v5505_v47  ;;  %3527 = vmatprep.mubr.bf16.mxu0 %v5517_v51  ;;  %v5521_v47 = vcombine.high %v1161_v43, %v1165_v18  ;;  %v5533_v51 = vcombine.high %v1175_v54, %v1179_v10  ;;  %v1181_v27 = vld [vmem:[%s7415_s12 + $0x2b8] sm:$0xff]  ;;  %v1195_v4 = vld [vmem:[%s7415_s12 + $0x328] sm:$0xff] }
 0x313   : > { %4090 = vmatmul.mubr.bf16.gmra.mrb[80].mxu1 %v5504_v33  ;;  %3528 = vmatmul.mubr.bf16.gmra.mrb[96].mxu0 %v5516_v42  ;;  %v5520_v33 = vcombine.low %v1161_v43, %v1165_v18  ;;  %v5532_v42 = vcombine.low %v1175_v54, %v1179_v10  ;;  %v1185_v43 = vld [vmem:[%s7415_s12 + $0x2d8] sm:$0xff]  ;;  %v1199_v54 = vld [vmem:[%s7415_s12 + $0x348] sm:$0xff] }
 0x314   : > { %4097 = vmatprep.mubr.bf16.mxu1 %v5513_v14  ;;  %3535 = vmatprep.mubr.bf16.mxu0 %v5525_v61  ;;  %v5529_v14 = vcombine.high %v1169_v5, %v1173_v60  ;;  %v5541_v61 = vcombine.high %v1183_v23, %v1187_v46  ;;  %v1189_v18 = vld [vmem:[%s7415_s12 + $0x2f8] sm:$0xff]  ;;  %v1203_v10 = vld [vmem:[%s7415_s12 + $0x368] sm:$0xff] }
 0x31b   : > { %4098 = vmatmul.mubr.bf16.gmra.mrb[84].mxu1 %v5512_v26  ;;  %3536 = vmatmul.mubr.bf16.gmra.mrb[100].mxu0 %v5524_v34  ;;  %v5528_v26 = vcombine.low %v1169_v5, %v1173_v60  ;;  %v5540_v34 = vcombine.low %v1183_v23, %v1187_v46  ;;  %v5545_v5 = vcombine.high %v1185_v43, %v1189_v18  ;;  %v6603_v23 = vld [vmem:[#allocation15 + $0x8] sm:$0xff]   ;;  %v1193_v46 = vld [vmem:[%s7415_s12 + $0x318] sm:$0xff] }
 0x31c   : > { %4105 = vmatprep.mubr.bf16.mxu1 %v5521_v47  ;;  %3543 = vmatprep.mubr.bf16.mxu0 %v5533_v51  ;;  %v5537_v47 = vcombine.high %v1177_v9, %v1181_v27  ;;  %v5549_v51 = vcombine.high %v1191_v17, %v1195_v4  ;;  %v5557_v60 = vcombine.high %v1199_v54, %v1203_v10 }
 0x323   : > { %4106 = vmatmul.mubr.bf16.gmra.mrb[88].mxu1 %v5520_v33  ;;  %3544 = vmatmul.mubr.bf16.gmra.mrb[104].mxu0 %v5532_v42  ;;  %v6602_v33 = vld [vmem:[#allocation15] sm:$0xff]   ;;  %v5536_v42 = vcombine.low %v1177_v9, %v1181_v27  ;;  %v5544_v9 = vcombine.low %v1185_v43, %v1189_v18  ;;  %v5556_v27 = vcombine.low %v1199_v54, %v1203_v10 }
 0x324   : > { %4113 = vmatprep.mubr.bf16.mxu1 %v5529_v14  ;;  %3551 = vmatprep.mubr.bf16.mxu0 %v5541_v61  ;;  %v5548_v14 = vcombine.low %v1191_v17, %v1195_v4  ;;  %v1197_v61 = vld [vmem:[%s7415_s12 + $0x338] sm:$0xff]  ;;  %v1219_v43 = vld [vmem:[%s7415_s12 + $0x3e8] sm:$0xff] }
 0x325   : > { %5951 = vmatprep.subr.bf16.mxu0 %v6602_v33  ;;  %v5553_v4 = vcombine.high %v1193_v46, %v1197_v61  ;;  %v6606_v18 = vld [vmem:[#allocation15 + $0x20] sm:$0xff]   ;;  %v5552_v10 = vcombine.low %v1193_v46, %v1197_v61  ;;  %v6608_v61 = vld [vmem:[#allocation15 + $0x30] sm:$0xff]  }
 0x326   : > { %5952 = vmatpush3.bf16.msra.mxu0 %v6602_v33  ;;  %v1227_v46 = vld [vmem:[%s7415_s12 + $0x428] sm:$0xff] }
 0x327   : > { %5953 = vmatprep.subr.bf16.mxu0 %v6603_v23 }
 0x32a   : > { %5954 = vmatpush3.bf16.msra.mxu0 %v6603_v23  ;;  %v1205_v23 = vld [vmem:[%s7415_s12 + $0x378] sm:$0xff] }
 0x32b   : > { %4114 = vmatmul.mubr.bf16.gmra.mrb[92].mxu1 %v5528_v26  ;;  %3552 = vmatmul.mubr.bf16.gmra.mrb[108].mxu0 %v5540_v34  ;;  %v1207_v26 = vld [vmem:[%s7415_s12 + $0x388] sm:$0xff] }
 0x32c   : > { %4121 = vmatprep.mubr.bf16.mxu1 %v5537_v47  ;;  %3559 = vmatprep.mubr.bf16.mxu0 %v5549_v51  ;;  %v1211_v34 = vld [vmem:[%s7415_s12 + $0x3a8] sm:$0xff]  ;;  %v6604_v47 = vld [vmem:[#allocation15 + $0x10] sm:$0xff]  }
 0x32d   : > { %5955 = vmatprep.subr.bf16.mxu0 %v6604_v47  ;;  %v5565_v33 = vcombine.high %v1207_v26, %v1211_v34 }
 0x32e   : > { %5956 = vmatpush3.bf16.msra.mxu0 %v6604_v47 }
 0x333   : > { %4122 = vmatmul.mubr.bf16.gmra.mrb[96].mxu1 %v5536_v42  ;;  %3560 = vmatmul.mubr.bf16.gmra.mrb[112].mxu0 %v5548_v14 }
 0x334   : > { %4129 = vmatprep.mubr.bf16.mxu1 %v5545_v5  ;;  %3567 = vmatprep.mubr.bf16.mxu0 %v5557_v60  ;;  %v6605_v5 = vld [vmem:[#allocation15 + $0x18] sm:$0xff]  }
 0x335   : > { %v1201_v60 = vld [vmem:[%s7415_s12 + $0x358] sm:$0xff]  ;;  %5957 = vmatprep.subr.bf16.mxu0 %v6605_v5 }
 0x336   : > { %v7929_v51 = vpop.f32.mrb[136].mxu0  ;;  %5958 = vmatpush3.bf16.msra.mxu0 %v6605_v5  ;;  %v1213_v5 = vld [vmem:[%s7415_s12 + $0x3b8] sm:$0xff] }
 0x337   : > { %v3322_v17 = vpop.f32.mrb[137].mxu0  ;;  %5959 = vmatprep.subr.bf16.mxu0 %v6606_v18 }
 0x338   : > { %v7931_v42 = vpop.f32.mrb[138].mxu0  ;;  %v5564_v17 = vcombine.low %v1207_v26, %v1211_v34  ;;  %v5560_v34 = vcombine.low %v1201_v60, %v1205_v23 }
 0x339   : > { %8617 = vst [vmem:[#allocation61_spill] sm:$0xff] %v7931_v42  ;;  %v3325_v14 = vpop.f32.mrb[139].mxu0 }
 0x33a   : > { %v6607_v14 = vld [vmem:[#allocation15 + $0x28] sm:$0xff]   ;;  %5960 = vmatpush3.bf16.msra.mxu0 %v6606_v18 }
 0x33b   : > { %4130 = vmatmul.mubr.bf16.gmra.mrb[100].mxu1 %v5544_v9  ;;  %3568 = vmatmul.mubr.bf16.gmra.mrb[116].mxu0 %v5556_v27  ;;  %v5561_v9 = vcombine.high %v1201_v60, %v1205_v23  ;;  %v5573_v27 = vcombine.high %v1215_v62, %v1219_v43  ;;  %v1235_v60 = vld [vmem:[%s7415_s12 + $0x468] sm:$0xff]  ;;  %v5568_v23 = vcombine.low %v1209_v49, %v1213_v5 }
 0x33c   : > { %4137 = vmatprep.mubr.bf16.mxu1 %v5553_v4  ;;  %3575 = vmatprep.mubr.bf16.mxu0 %v5565_v33 }
 0x33d   : > { %5961 = vmatprep.subr.bf16.mxu0 %v6607_v14 }
 0x33e   : > { %v7937_v54 = vpop.f32.mrb[140].mxu0  ;;  %5962 = vmatpush3.bf16.msra.mxu0 %v6607_v14  ;;  %v1221_v14 = vld [vmem:[%s7415_s12 + $0x3f8] sm:$0xff] }
 0x33f   : > { %8618 = vst [vmem:[#allocation62_spill] sm:$0xff] %v7937_v54  ;;  %v3330_v47 = vpop.f32.mrb[141].mxu0  ;;  %5963 = vmatprep.subr.bf16.mxu0 %v6608_v61 }
 0x340   : > { %v7939_v4 = vpop.f32.mrb[142].mxu0  ;;  %v5572_v47 = vcombine.low %v1215_v62, %v1219_v43  ;;  %v5580_v43 = vcombine.low %v1223_v1, %v1227_v46 }
 0x341   : > { %8619 = vst [vmem:[#allocation63_spill] sm:$0xff] %v7939_v4  ;;  %v3333_v33 = vpop.f32.mrb[143].mxu0 }
 0x342   : > { %v6609_v33 = vld [vmem:[#allocation15 + $0x38] sm:$0xff]   ;;  %5964 = vmatpush3.bf16.msra.mxu0 %v6608_v61 }
 0x343   : > { %4138 = vmatmul.mubr.bf16.gmra.mrb[104].mxu1 %v5552_v10  ;;  %3576 = vmatmul.mubr.bf16.gmra.mrb[120].mxu0 %v5564_v17  ;;  %v5569_v10 = vcombine.high %v1209_v49, %v1213_v5  ;;  %v5581_v17 = vcombine.high %v1223_v1, %v1227_v46 }
 0x344   : > { %4145 = vmatprep.mubr.bf16.mxu1 %v5561_v9  ;;  %3583 = vmatprep.mubr.bf16.mxu0 %v5573_v27 }
 0x345   : > { %5965 = vmatprep.subr.bf16.mxu0 %v6609_v33 }
 0x346   : > { %v7945_v26 = vpop.f32.mrb[144].mxu0  ;;  %5966 = vmatpush3.bf16.msra.mxu0 %v6609_v33 }
 0x347   : > { %8620 = vst [vmem:[#allocation64_spill] sm:$0xff] %v7945_v26  ;;  %v3338_v18 = vpop.f32.mrb[145].mxu0  ;;  %v1231_v26 = vld [vmem:[%s7415_s12 + $0x448] sm:$0xff] }
 0x348   : > { %v7947_v9 = vpop.f32.mrb[146].mxu0  ;;  %v5588_v33 = vcombine.low %v1231_v26, %v1235_v60 }
 0x349   : > { %8621 = vst [vmem:[#allocation65_spill] sm:$0xff] %v7947_v9  ;;  %v3341_v27 = vpop.f32.mrb[147].mxu0  ;;  %v5589_v9 = vcombine.high %v1231_v26, %v1235_v60  ;;  %v1245_v60 = vld [vmem:[%s7415_s12 + $0x4b8] sm:$0xff] }
 0x34a   : > { %v5577_v27 = vcombine.high %v1217_v55, %v1221_v14 }
 0x34b   : > { %4146 = vmatmul.mubr.bf16.gmra.mrb[108].mxu1 %v5560_v34  ;;  %3584 = vmatmul.mubr.bf16.gmra.mrb[124].mxu0 %v5572_v47  ;;  %v1225_v47 = vld [vmem:[%s7415_s12 + $0x418] sm:$0xff] }
 0x34c   : > { %4153 = vmatprep.mubr.bf16.mxu1 %v5569_v10  ;;  %3591 = vmatprep.mubr.bf16.mxu0 %v5581_v17  ;;  %v1229_v10 = vld [vmem:[%s7415_s12 + $0x438] sm:$0xff] }
 0x34d   : > { %v5585_v1 = vcombine.high %v1225_v47, %v1229_v10 }
 0x34e   : > { %v7953_v62 = vpop.f32.mrb[148].mxu0 }
 0x34f   : > { %8622 = vst [vmem:[#allocation66_spill] sm:$0xff] %v7953_v62  ;;  %v3346_v18 = vpop.f32.mrb[149].mxu0  ;;  %v5576_v62 = vcombine.low %v1217_v55, %v1221_v14  ;;  %v1241_v14 = vld [vmem:[%s7415_s12 + $0x498] sm:$0xff] }
 0x350   : > { %v7955_v61 = vpop.f32.mrb[150].mxu0 }
 0x351   : > { %8623 = vst [vmem:[#allocation67_spill] sm:$0xff] %v7955_v61  ;;  %v3349_v34 = vpop.f32.mrb[151].mxu0 }
 0x353   : > { %4154 = vmatmul.mubr.bf16.gmra.mrb[112].mxu1 %v5568_v23  ;;  %3592 = vmatmul.mubr.bf16.gmra.mrb[128].mxu0 %v5580_v43  ;;  %v1233_v23 = vld [vmem:[%s7415_s12 + $0x458] sm:$0xff] }
 0x354   : > { %4161 = vmatprep.mubr.bf16.mxu1 %v5577_v27  ;;  %3599 = vmatprep.mubr.bf16.mxu0 %v5589_v9  ;;  %v1237_v43 = vld [vmem:[%s7415_s12 + $0x478] sm:$0xff]  ;;  %v5584_v9 = vcombine.low %v1225_v47, %v1229_v10 }
 0x355   : > { %v5593_v34 = vcombine.high %v1233_v23, %v1237_v43  ;;  %v1249_v10 = vld [vmem:[%s7415_s12 + $0x4d8] sm:$0xff] }
 0x356   : > { %v7959_v17 = vpop.f32.mrb[152].mxu0 }
 0x357   : > { %8624 = vst [vmem:[#allocation68_spill] sm:$0xff] %v7959_v17  ;;  %v3354_v49 = vpop.f32.mrb[153].mxu0  ;;  %v1321_v17 = vld [vmem:[%s7415_s12 + $0x718] sm:$0xff] }
 0x358   : > { %v7961_v5 = vpop.f32.mrb[154].mxu0 }
 0x359   : > { %8625 = vst [vmem:[#allocation69_spill] sm:$0xff] %v7961_v5  ;;  %v3357_v46 = vpop.f32.mrb[155].mxu0 }
 0x35b   : > { %4162 = vmatmul.mubr.bf16.gmra.mrb[116].mxu1 %v5576_v62  ;;  %3600 = vmatmul.mubr.bf16.gmra.mrb[132].mxu0 %v5588_v33  ;;  %v5592_v62 = vcombine.low %v1233_v23, %v1237_v43  ;;  %v1257_v43 = vld [vmem:[%s7415_s12 + $0x518] sm:$0xff] }
 0x35c   : > { %4169 = vmatprep.mubr.bf16.mxu1 %v5585_v1  ;;  %v5601_v1 = vcombine.high %v1241_v14, %v1245_v60 }
 0x35e   : > { %v7965_v18 = vpop.f32.mrb[156].mxu0 }
 0x35f   : > { %8626 = vst [vmem:[#allocation70_spill] sm:$0xff] %v7965_v18  ;;  %v3362_v27 = vpop.f32.mrb[157].mxu0 }
 0x360   : > { %v7967_v55 = vpop.f32.mrb[158].mxu0  ;;  %v1253_v27 = vld [vmem:[%s7415_s12 + $0x4f8] sm:$0xff] }
 0x361   : > { %8627 = vst [vmem:[#allocation71_spill] sm:$0xff] %v7967_v55  ;;  %v3365_v26 = vpop.f32.mrb[159].mxu0 }
 0x362   : > { %v5609_v26 = vcombine.high %v1249_v10, %v1253_v27 }
 0x363   : > { %4170 = vmatmul.mubr.bf16.gmra.mrb[120].mxu1 %v5584_v9  ;;  %v5600_v9 = vcombine.low %v1241_v14, %v1245_v60  ;;  %v1265_v60 = vld [vmem:[%s7415_s12 + $0x558] sm:$0xff] }
 0x364   : > { %4177 = vmatprep.mubr.bf16.mxu1 %v5593_v34 }
 0x366   : > { %v7971_v49 = vpop.f32.mrb[160].mxu0 }
 0x367   : > { %8628 = vst [vmem:[#allocation72_spill] sm:$0xff] %v7971_v49  ;;  %v3370_v33 = vpop.f32.mrb[161].mxu0 }
 0x368   : > { %v7973_v46 = vpop.f32.mrb[162].mxu0  ;;  %v1261_v33 = vld [vmem:[%s7415_s12 + $0x538] sm:$0xff] }
 0x369   : > { %8629 = vst [vmem:[#allocation73_spill] sm:$0xff] %v7973_v46  ;;  %v3373_v47 = vpop.f32.mrb[163].mxu0 }
 0x36a   : > { %v5617_v47 = vcombine.high %v1257_v43, %v1261_v33 }
 0x36b   : > { %4178 = vmatmul.mubr.bf16.gmra.mrb[124].mxu1 %v5592_v62  ;;  %v5608_v62 = vcombine.low %v1249_v10, %v1253_v27  ;;  %v1273_v27 = vld [vmem:[%s7415_s12 + $0x598] sm:$0xff] }
 0x36c   : > { %4185 = vmatprep.mubr.bf16.mxu1 %v5601_v1 }
 0x36e   : > { %v7977_v55 = vpop.f32.mrb[164].mxu0 }
 0x36f   : > { %8630 = vst [vmem:[#allocation74_spill] sm:$0xff] %v7977_v55  ;;  %v3378_v34 = vpop.f32.mrb[165].mxu0 }
 0x370   : > { %v7979_v49 = vpop.f32.mrb[166].mxu0  ;;  %v1269_v34 = vld [vmem:[%s7415_s12 + $0x578] sm:$0xff] }
 0x371   : > { %8631 = vst [vmem:[#allocation75_spill] sm:$0xff] %v7979_v49  ;;  %v3381_v23 = vpop.f32.mrb[167].mxu0 }
 0x372   : > { %v5625_v23 = vcombine.high %v1265_v60, %v1269_v34 }
 0x373   : > { %4186 = vmatmul.mubr.bf16.gmra.mrb[0].mxu1 %v5600_v9  ;;  %v5616_v9 = vcombine.low %v1257_v43, %v1261_v33  ;;  %v1281_v33 = vld [vmem:[%s7415_s12 + $0x5d8] sm:$0xff] }
 0x374   : > { %4193 = vmatprep.mubr.bf16.mxu1 %v5609_v26 }
 0x376   : > { %v7983_v46 = vpop.f32.mrb[168].mxu0 }
 0x377   : > { %8632 = vst [vmem:[#allocation76_spill] sm:$0xff] %v7983_v46  ;;  %v3386_v1 = vpop.f32.mrb[169].mxu0 }
 0x378   : > { %v7985_v55 = vpop.f32.mrb[170].mxu0  ;;  %v1277_v1 = vld [vmem:[%s7415_s12 + $0x5b8] sm:$0xff] }
 0x379   : > { %8633 = vst [vmem:[#allocation77_spill] sm:$0xff] %v7985_v55  ;;  %v3389_v14 = vpop.f32.mrb[171].mxu0 }
 0x37a   : > { %v5633_v14 = vcombine.high %v1273_v27, %v1277_v1 }
 0x37b   : > { %4194 = vmatmul.mubr.bf16.gmra.mrb[4].mxu1 %v5608_v62  ;;  %v5624_v62 = vcombine.low %v1265_v60, %v1269_v34  ;;  %v1289_v34 = vld [vmem:[%s7415_s12 + $0x618] sm:$0xff] }
 0x37c   : > { %4201 = vmatprep.mubr.bf16.mxu1 %v5617_v47 }
 0x37e   : > { %v7989_v49 = vpop.f32.mrb[172].mxu0 }
 0x37f   : > { %8634 = vst [vmem:[#allocation78_spill] sm:$0xff] %v7989_v49  ;;  %v3394_v26 = vpop.f32.mrb[173].mxu0 }
 0x380   : > { %v7991_v46 = vpop.f32.mrb[174].mxu0  ;;  %v1285_v26 = vld [vmem:[%s7415_s12 + $0x5f8] sm:$0xff] }
 0x381   : > { %8635 = vst [vmem:[#allocation79_spill] sm:$0xff] %v7991_v46  ;;  %v3397_v10 = vpop.f32.mrb[175].mxu0 }
 0x382   : > { %v5641_v10 = vcombine.high %v1281_v33, %v1285_v26 }
 0x383   : > { %4202 = vmatmul.mubr.bf16.gmra.mrb[8].mxu1 %v5616_v9  ;;  %v5632_v9 = vcombine.low %v1273_v27, %v1277_v1 }
 0x384   : > { %4209 = vmatprep.mubr.bf16.mxu1 %v5625_v23 }
 0x386   : > { %v7995_v55 = vpop.f32.mrb[176].mxu0 }
 0x387   : > { %8636 = vst [vmem:[#allocation80_spill] sm:$0xff] %v7995_v55  ;;  %v3402_v47 = vpop.f32.mrb[177].mxu0 }
 0x388   : > { %v7997_v49 = vpop.f32.mrb[178].mxu0  ;;  %v1293_v47 = vld [vmem:[%s7415_s12 + $0x638] sm:$0xff] }
 0x389   : > { %8637 = vst [vmem:[#allocation81_spill] sm:$0xff] %v7997_v49  ;;  %v3405_v43 = vpop.f32.mrb[179].mxu0  ;;  %v5649_v27 = vcombine.high %v1289_v34, %v1293_v47 }
 0x38b   : > { %4210 = vmatmul.mubr.bf16.gmra.mrb[12].mxu1 %v5624_v62  ;;  %v5640_v62 = vcombine.low %v1281_v33, %v1285_v26 }
 0x38c   : > { %4217 = vmatprep.mubr.bf16.mxu1 %v5633_v14 }
 0x38e   : > { %v8001_v46 = vpop.f32.mrb[180].mxu0 }
 0x38f   : > { %8638 = vst [vmem:[#allocation82_spill] sm:$0xff] %v8001_v46  ;;  %v3410_v23 = vpop.f32.mrb[181].mxu0  ;;  %v1301_v46 = vld [vmem:[%s7415_s12 + $0x678] sm:$0xff] }
 0x390   : > { %v8003_v55 = vpop.f32.mrb[182].mxu0  ;;  %v1297_v23 = vld [vmem:[%s7415_s12 + $0x658] sm:$0xff] }
 0x391   : > { %8639 = vst [vmem:[#allocation83_spill] sm:$0xff] %v8003_v55  ;;  %v3413_v60 = vpop.f32.mrb[183].mxu0  ;;  %v5657_v33 = vcombine.high %v1297_v23, %v1301_v46 }
 0x393   : > { %4218 = vmatmul.mubr.bf16.gmra.mrb[16].mxu1 %v5632_v9  ;;  %v5648_v9 = vcombine.low %v1289_v34, %v1293_v47  ;;  %v1313_v34 = vld [vmem:[%s7415_s12 + $0x6d8] sm:$0xff] }
 0x394   : > { %4225 = vmatprep.mubr.bf16.mxu1 %v5641_v10  ;;  %v1317_v47 = vld [vmem:[%s7415_s12 + $0x6f8] sm:$0xff] }
 0x396   : > { %v8007_v49 = vpop.f32.mrb[184].mxu0 }
 0x397   : > { %8640 = vst [vmem:[#allocation84_spill] sm:$0xff] %v8007_v49  ;;  %v3418_v14 = vpop.f32.mrb[185].mxu0 }
 0x398   : > { %v8009_v43 = vpop.f32.mrb[186].mxu0  ;;  %v1305_v14 = vld [vmem:[%s7415_s12 + $0x698] sm:$0xff] }
 0x399   : > { %8641 = vst [vmem:[#allocation85_spill] sm:$0xff] %v8009_v43  ;;  %v3421_v1 = vpop.f32.mrb[187].mxu0  ;;  %v1309_v43 = vld [vmem:[%s7415_s12 + $0x6b8] sm:$0xff] }
 0x39a   : > { %v5665_v18 = vcombine.high %v1305_v14, %v1309_v43  ;;  %v5664_v5 = vcombine.low %v1305_v14, %v1309_v43 }
 0x39b   : > { %4226 = vmatmul.mubr.bf16.gmra.mrb[20].mxu1 %v5640_v62  ;;  %v5656_v62 = vcombine.low %v1297_v23, %v1301_v46 }
 0x39c   : > { %4233 = vmatprep.mubr.bf16.mxu1 %v5649_v27 }
 0x39e   : > { %v8013_v55 = vpop.f32.mrb[188].mxu0 }
 0x39f   : > { %8642 = vst [vmem:[#allocation86_spill] sm:$0xff] %v8013_v55  ;;  %v3426_v10 = vpop.f32.mrb[189].mxu0 }
 0x3a0   : > { %v8015_v60 = vpop.f32.mrb[190].mxu0 }
 0x3a1   : > { %8643 = vst [vmem:[#allocation87_spill] sm:$0xff] %v8015_v60  ;;  %v3429_v26 = vpop.f32.mrb[191].mxu0 }
 0x3a3   : > { %4234 = vmatmul.mubr.bf16.gmra.mrb[24].mxu1 %v5648_v9  ;;  %v5673_v9 = vcombine.high %v1313_v34, %v1317_v47 }
 0x3a4   : > { %4241 = vmatprep.mubr.bf16.mxu1 %v5657_v33 }
 0x3a6   : > { %v3465_v49 = vpop.f32.mrb[64].mxu0 }
 0x3a7   : > { %v3467_v1 = vpop.f32.mrb[65].mxu0 }
 0x3a8   : > { %v3468_v27 = vpop.f32.mrb[66].mxu0  ;;  %v1325_v1 = vld [vmem:[%s7415_s12 + $0x738] sm:$0xff] }
 0x3a9   : > { %v3470_v55 = vpop.f32.mrb[67].mxu0  ;;  %v5681_v43 = vcombine.high %v1321_v17, %v1325_v1 }
 0x3aa   : > { %v5672_v55 = vcombine.low %v1313_v34, %v1317_v47  ;;  %v1329_v34 = vld [vmem:[%s7415_s12 + $0x758] sm:$0xff] }
 0x3ab   : > { %4242 = vmatmul.mubr.bf16.gmra.mrb[28].mxu1 %v5656_v62  ;;  %v1333_v47 = vld [vmem:[%s7415_s12 + $0x778] sm:$0xff] }
 0x3ac   : > { %4249 = vmatprep.mubr.bf16.mxu1 %v5665_v18  ;;  %v8023_v18 = vld [vmem:[#allocation10] ss:$0 sm:$0xff] }
 0x3ae   : > { %v3473_v10 = vpop.f32.mrb[68].mxu0 }
 0x3af   : > { %v3475_v60 = vpop.f32.mrb[69].mxu0 }
 0x3b0   : > { %v3476_v26 = vpop.f32.mrb[70].mxu0 }
 0x3b1   : > { %v3478_v33 = vpop.f32.mrb[71].mxu0 }
 0x3b3   : > { %4250 = vmatmul.mubr.bf16.gmra.mrb[32].mxu1 %v5664_v5 }
 0x3b4   : > { %4257 = vmatprep.mubr.bf16.mxu1 %v5673_v9 }
 0x3b6   : > { %v4043_v46 = vpop.f32.mrb[56].mxu1  ;;  %v3481_v23 = vpop.f32.mrb[72].mxu0 }
 0x3b7   : > { %v6063_v61 = vadd.f32 %v4043_v46, %v3465_v49  ;;  %v4045_v36 = vpop.f32.mrb[57].mxu1  ;;  %v3483_v4 = vpop.f32.mrb[73].mxu0 }
 0x3b8   : > { %v4046_v62 = vpop.f32.mrb[58].mxu1  ;;  %v3484_v60 = vpop.f32.mrb[74].mxu0  ;;  %v8028_v36 = vld [vmem:[#allocation12] ss:$0 sm:$0xff] }
 0x3b9   : > { %v4298_v14 = vadd.f32 %v6063_v61, %v7665_v16  ;;  %v6064_v33 = vadd.f32 %v4046_v62, %v3468_v27  ;;  %v4048_v5 = vpop.f32.mrb[59].mxu1  ;;  %v3486_v9 = vpop.f32.mrb[75].mxu0 }
 0x3ba   : > { %v8034_v9 = vld [vmem:[#allocation13] ss:$0 sm:$0xff] }
 0x3bb   : > { %v4500_v24 = vadd.f32 %v8023_v18, %v4298_v14  ;;  %v4299_v54 = vadd.f32 %v6064_v33, %v7669_v20  ;;  %4258 = vmatmul.mubr.bf16.gmra.mrb[36].mxu1 %v5672_v55  ;;  %v5680_v14 = vcombine.low %v1321_v17, %v1325_v1 }
 0x3bc   : > { %4265 = vmatprep.mubr.bf16.mxu1 %v5681_v43  ;;  %v5689_v43 = vcombine.high %v1329_v34, %v1333_v47 }
 0x3bd   : > { %v4564_v4 = vmax.f32 %v4500_v24, 0.0  ;;  %v4501_v49 = vadd.f32 %v8023_v18, %v4299_v54 }
 0x3be   : > { %v4051_v46 = vpop.f32.mrb[60].mxu1  ;;  %v3489_v37 = vpop.f32.mrb[76].mxu0 }
 0x3bf   : > { %v4635_v16 = vmul.f32 %v8028_v36, %v4564_v4  ;;  %v4565_v61 = vmax.f32 %v4501_v49, 0.0  ;;  %v6065_v27 = vadd.f32 %v4051_v46, %v3473_v10  ;;  %v4053_v62 = vpop.f32.mrb[61].mxu1  ;;  %v3491_v5 = vpop.f32.mrb[77].mxu0 }
 0x3c0   : > { %v4054_v20 = vpop.f32.mrb[62].mxu1  ;;  %v3492_v55 = vpop.f32.mrb[78].mxu0  ;;  %v1341_v5 = vld [vmem:[%s7415_s12 + $0x7b8] sm:$0xff] }
 0x3c1   : > { %v4636_v24 = vmul.f32 %v8028_v36, %v4565_v61  ;;  %v4300_v54 = vadd.f32 %v6065_v27, %v7662_v13  ;;  %v6066_v33 = vadd.f32 %v4054_v20, %v3476_v26  ;;  %v4056_v42 = vpop.f32.mrb[63].mxu1  ;;  %v3494_v29 = vpop.f32.mrb[79].mxu0  ;;  %v4706_v17 = vadd.f32 %v8034_v9, %v4635_v16  ;;  %v1337_v61 = vld [vmem:[%s7415_s12 + $0x798] sm:$0xff] }
 0x3c3   : > { %v4502_v4 = vadd.f32 %v8023_v18, %v4300_v54  ;;  %v4301_v10 = vadd.f32 %v6066_v33, %v7667_v19  ;;  %4266 = vmatmul.mubr.bf16.gmra.mrb[40].mxu1 %v5680_v14  ;;  %v4707_v1 = vadd.f32 %v8034_v9, %v4636_v24  ;;  %v5688_v14 = vcombine.low %v1329_v34, %v1333_v47 }
 0x3c4   : > { %4273 = vmatprep.mubr.bf16.mxu1 %v5689_v43  ;;  %v5697_v43 = vcombine.high %v1337_v61, %v1341_v5 }
 0x3c5   : > { %v4566_v49 = vmax.f32 %v4502_v4, 0.0  ;;  %v4503_v46 = vadd.f32 %v8023_v18, %v4301_v10  ;;  %v4770_v62 = vpack.c.bf16 %v4707_v1, %v4706_v17 }
 0x3c6   : > { %v4059_v13 = vpop.f32.mrb[64].mxu1  ;;  %v3497_v26 = vpop.f32.mrb[80].mxu0 }
 0x3c7   : > { %v4637_v29 = vmul.f32 %v8028_v36, %v4566_v49  ;;  %v4567_v42 = vmax.f32 %v4503_v46, 0.0  ;;  %v6067_v27 = vadd.f32 %v4059_v13, %v3481_v23  ;;  %v4061_v20 = vpop.f32.mrb[65].mxu1  ;;  %5967 = vmatprep.mubr.bf16.mxu0 %v4770_v62  ;;  %v3499_v19 = vpop.f32.mrb[81].mxu0  ;;  %v1345_v13 = vld [vmem:[%s7415_s12 + $0x7d8] sm:$0xff] }
 0x3c8   : > { %v4062_v16 = vpop.f32.mrb[66].mxu1  ;;  %v3500_v54 = vpop.f32.mrb[82].mxu0 }
 0x3c9   : > { %v4638_v24 = vmul.f32 %v8028_v36, %v4567_v42  ;;  %v4302_v33 = vadd.f32 %v6067_v27, %v7677_v28  ;;  %v6068_v4 = vadd.f32 %v4062_v16, %v3484_v60  ;;  %v4064_v10 = vpop.f32.mrb[67].mxu1  ;;  %v3502_v17 = vpop.f32.mrb[83].mxu0  ;;  %v4708_v1 = vadd.f32 %v8034_v9, %v4637_v29  ;;  %v1349_v42 = vld [vmem:[%s7415_s12 + $0x7f8] sm:$0xff] }
 0x3cb   : > { %v4709_v23 = vadd.f32 %v8034_v9, %v4638_v24  ;;  %v4504_v49 = vadd.f32 %v8023_v18, %v4302_v33  ;;  %v4303_v34 = vadd.f32 %v6068_v4, %v7681_v32  ;;  %4274 = vmatmul.mubr.bf16.gmra.mrb[44].mxu1 %v5688_v14  ;;  %v5696_v24 = vcombine.low %v1337_v61, %v1341_v5 }
 0x3cc   : > { %4281 = vmatprep.mubr.bf16.mxu1 %v5697_v43  ;;  %v5705_v14 = vcombine.high %v1345_v13, %v1349_v42 }
 0x3cd   : > { %v4771_v47 = vpack.c.bf16 %v4709_v23, %v4708_v1  ;;  %v4568_v46 = vmax.f32 %v4504_v49, 0.0  ;;  %v4505_v62 = vadd.f32 %v8023_v18, %v4303_v34 }
 0x3ce   : > { %v4067_v28 = vpop.f32.mrb[68].mxu1  ;;  %v3505_v60 = vpop.f32.mrb[84].mxu0 }
 0x3cf   : > { %v4639_v27 = vmul.f32 %v8028_v36, %v4568_v46  ;;  %v4569_v20 = vmax.f32 %v4505_v62, 0.0  ;;  %v6069_v29 = vadd.f32 %v4067_v28, %v3489_v37  ;;  %v4069_v19 = vpop.f32.mrb[69].mxu1  ;;  %5968 = vmatmul.mubr.bf16.vlgmr.msra.gmra.mrb[192].mxu0 %v4771_v47  ;;  %v3507_v16 = vpop.f32.mrb[85].mxu0 }
 0x3d0   : > { %v4070_v33 = vpop.f32.mrb[70].mxu1  ;;  %v3508_v32 = vpop.f32.mrb[86].mxu0 }
 0x3d1   : > { %v4640_v43 = vmul.f32 %v8028_v36, %v4569_v20  ;;  %v4304_v4 = vadd.f32 %v6069_v29, %v7675_v25  ;;  %v6070_v10 = vadd.f32 %v4070_v33, %v3492_v55  ;;  %v4072_v17 = vpop.f32.mrb[71].mxu1  ;;  %v3510_v1 = vpop.f32.mrb[87].mxu0  ;;  %v4710_v37 = vadd.f32 %v8034_v9, %v4639_v27 }
 0x3d3   : > { %v4506_v23 = vadd.f32 %v8023_v18, %v4304_v4  ;;  %v4305_v49 = vadd.f32 %v6070_v10, %v7679_v31  ;;  %4282 = vmatmul.mubr.bf16.gmra.mrb[48].mxu1 %v5696_v24  ;;  %v4711_v34 = vadd.f32 %v8034_v9, %v4640_v43  ;;  %v5704_v31 = vcombine.low %v1345_v13, %v1349_v42 }
 0x3d4   : > { %4289 = vmatprep.mubr.bf16.mxu1 %v5705_v14 }
 0x3d5   : > { %v4570_v61 = vmax.f32 %v4506_v23, 0.0  ;;  %v4507_v5 = vadd.f32 %v8023_v18, %v4305_v49  ;;  %v4772_v47 = vpack.c.bf16 %v4711_v34, %v4710_v37 }
 0x3d6   : > { %v4075_v46 = vpop.f32.mrb[72].mxu1  ;;  %v3513_v62 = vpop.f32.mrb[88].mxu0 }
 0x3d7   : > { %v4641_v25 = vmul.f32 %v8028_v36, %v4570_v61  ;;  %v4571_v55 = vmax.f32 %v4507_v5, 0.0  ;;  %v6071_v28 = vadd.f32 %v4075_v46, %v3497_v26  ;;  %v4077_v20 = vpop.f32.mrb[73].mxu1  ;;  %5971 = vmatprep.mubr.bf16.mxu0 %v4772_v47  ;;  %v3515_v29 = vpop.f32.mrb[89].mxu0 }
 0x3d8   : > { %v4078_v19 = vpop.f32.mrb[74].mxu1  ;;  %v3516_v16 = vpop.f32.mrb[90].mxu0 }
 0x3d9   : > { %v4642_v27 = vmul.f32 %v8028_v36, %v4571_v55  ;;  %v4306_v24 = vadd.f32 %v6071_v28, %v7690_v41  ;;  %v6072_v33 = vadd.f32 %v4078_v19, %v3500_v54  ;;  %v4080_v14 = vpop.f32.mrb[75].mxu1  ;;  %v3518_v43 = vpop.f32.mrb[91].mxu0  ;;  %v4712_v26 = vadd.f32 %v8034_v9, %v4641_v25 }
 0x3db   : > { %v4508_v4 = vadd.f32 %v8023_v18, %v4306_v24  ;;  %v4307_v10 = vadd.f32 %v6072_v33, %v7694_v45  ;;  %4290 = vmatmul.mubr.bf16.gmra.mrb[52].mxu1 %v5704_v31  ;;  %v4713_v17 = vadd.f32 %v8034_v9, %v4642_v27 }
 0x3dd   : > { %v4572_v1 = vmax.f32 %v4508_v4, 0.0  ;;  %v4509_v13 = vadd.f32 %v8023_v18, %v4307_v10  ;;  %v4773_v42 = vpack.c.bf16 %v4713_v17, %v4712_v26 }
 0x3de   : > { %v4083_v23 = vpop.f32.mrb[76].mxu1  ;;  %v3521_v49 = vpop.f32.mrb[92].mxu0 }
 0x3df   : > { %v4643_v41 = vmul.f32 %v8028_v36, %v4572_v1  ;;  %v4573_v54 = vmax.f32 %v4509_v13, 0.0  ;;  %v6073_v37 = vadd.f32 %v4083_v23, %v3505_v60  ;;  %v4085_v34 = vpop.f32.mrb[77].mxu1  ;;  %5972 = vmatmul.mubr.bf16.gmra.mrb[196].mxu0 %v4773_v42  ;;  %v3523_v61 = vpop.f32.mrb[93].mxu0 }
 0x3e0   : > { %v4086_v5 = vpop.f32.mrb[78].mxu1  ;;  %v3524_v45 = vpop.f32.mrb[94].mxu0 }
 0x3e1   : > { %v4644_v47 = vmul.f32 %v8028_v36, %v4573_v54  ;;  %v4308_v46 = vadd.f32 %v6073_v37, %v7687_v38  ;;  %v6074_v25 = vadd.f32 %v4086_v5, %v3508_v32  ;;  %v4088_v55 = vpop.f32.mrb[79].mxu1  ;;  %v3526_v28 = vpop.f32.mrb[95].mxu0  ;;  %v4714_v31 = vadd.f32 %v8034_v9, %v4643_v41 }
 0x3e3   : > { %v4510_v20 = vadd.f32 %v8023_v18, %v4308_v46  ;;  %v4309_v29 = vadd.f32 %v6074_v25, %v7692_v44  ;;  %v4715_v60 = vadd.f32 %v8034_v9, %v4644_v47 }
 0x3e5   : > { %v4574_v19 = vmax.f32 %v4510_v20, 0.0  ;;  %v4511_v27 = vadd.f32 %v8023_v18, %v4309_v29  ;;  %v4774_v24 = vpack.c.bf16 %v4715_v60, %v4714_v31 }
 0x3e6   : > { %v4091_v33 = vpop.f32.mrb[80].mxu1  ;;  %v3529_v14 = vpop.f32.mrb[96].mxu0 }
 0x3e7   : > { %v4645_v43 = vmul.f32 %v8028_v36, %v4574_v19  ;;  %v4575_v38 = vmax.f32 %v4511_v27, 0.0  ;;  %v6075_v32 = vadd.f32 %v4091_v33, %v3513_v62  ;;  %v4093_v4 = vpop.f32.mrb[81].mxu1  ;;  %5975 = vmatprep.mubr.bf16.mxu0 %v4774_v24  ;;  %v3531_v10 = vpop.f32.mrb[97].mxu0 }
 0x3e8   : > { %v4094_v26 = vpop.f32.mrb[82].mxu1  ;;  %v3532_v17 = vpop.f32.mrb[98].mxu0 }
 0x3e9   : > { %v4646_v44 = vmul.f32 %v8028_v36, %v4575_v38  ;;  %v4310_v1 = vadd.f32 %v6075_v32, %v7702_v53  ;;  %v6076_v13 = vadd.f32 %v4094_v26, %v3516_v16  ;;  %v4096_v42 = vpop.f32.mrb[83].mxu1  ;;  %v3534_v23 = vpop.f32.mrb[99].mxu0  ;;  %v4716_v37 = vadd.f32 %v8034_v9, %v4645_v43 }
 0x3eb   : > { %v4512_v41 = vadd.f32 %v8023_v18, %v4310_v1  ;;  %v4311_v54 = vadd.f32 %v6076_v13, %v7706_v57  ;;  %v4717_v62 = vadd.f32 %v8034_v9, %v4646_v44 }
 0x3ed   : > { %v4576_v34 = vmax.f32 %v4512_v41, 0.0  ;;  %v4513_v61 = vadd.f32 %v8023_v18, %v4311_v54  ;;  %v4775_v5 = vpack.c.bf16 %v4717_v62, %v4716_v37 }
 0x3ee   : > { %v4099_v47 = vpop.f32.mrb[84].mxu1  ;;  %v3537_v46 = vpop.f32.mrb[100].mxu0 }
 0x3ef   : > { %v4647_v25 = vmul.f32 %v8028_v36, %v4576_v34  ;;  %v4577_v53 = vmax.f32 %v4513_v61, 0.0  ;;  %v6077_v16 = vadd.f32 %v4099_v47, %v3521_v49  ;;  %v4101_v55 = vpop.f32.mrb[85].mxu1  ;;  %5976 = vmatmul.mubr.bf16.gmra.mrb[200].mxu0 %v4775_v5  ;;  %v3539_v28 = vpop.f32.mrb[101].mxu0 }
 0x3f0   : > { %v4102_v20 = vpop.f32.mrb[86].mxu1  ;;  %v3540_v29 = vpop.f32.mrb[102].mxu0 }
 0x3f1   : > { %v4648_v57 = vmul.f32 %v8028_v36, %v4577_v53  ;;  %v4312_v31 = vadd.f32 %v6077_v16, %v7700_v50  ;;  %v6078_v60 = vadd.f32 %v4102_v20, %v3524_v45  ;;  %v4104_v19 = vpop.f32.mrb[87].mxu1  ;;  %v3542_v27 = vpop.f32.mrb[103].mxu0  ;;  %v4718_v43 = vadd.f32 %v8034_v9, %v4647_v25 }
 0x3f3   : > { %v4514_v24 = vadd.f32 %v8023_v18, %v4312_v31  ;;  %v4313_v33 = vadd.f32 %v6078_v60, %v7704_v56  ;;  %v4719_v49 = vadd.f32 %v8034_v9, %v4648_v57 }
 0x3f5   : > { %v4578_v38 = vmax.f32 %v4514_v24, 0.0  ;;  %v4515_v32 = vadd.f32 %v8023_v18, %v4313_v33  ;;  %v4776_v4 = vpack.c.bf16 %v4719_v49, %v4718_v43 }
 0x3f6   : > { %v4107_v10 = vpop.f32.mrb[88].mxu1  ;;  %v3545_v26 = vpop.f32.mrb[104].mxu0 }
 0x3f7   : > { %v4649_v44 = vmul.f32 %v8028_v36, %v4578_v38  ;;  %v4579_v50 = vmax.f32 %v4515_v32, 0.0  ;;  %v6079_v45 = vadd.f32 %v4107_v10, %v3529_v14  ;;  %v4109_v1 = vpop.f32.mrb[89].mxu1  ;;  %5979 = vmatprep.mubr.bf16.mxu0 %v4776_v4  ;;  %v3547_v13 = vpop.f32.mrb[105].mxu0 }
 0x3f8   : > { %v4110_v42 = vpop.f32.mrb[90].mxu1  ;;  %v3548_v23 = vpop.f32.mrb[106].mxu0 }
 0x3f9   : > { %v4650_v56 = vmul.f32 %v8028_v36, %v4579_v50  ;;  %v4314_v41 = vadd.f32 %v6079_v45, %v7715_v3  ;;  %v6080_v54 = vadd.f32 %v4110_v42, %v3532_v17  ;;  %v4112_v37 = vpop.f32.mrb[91].mxu1  ;;  %v3550_v62 = vpop.f32.mrb[107].mxu0  ;;  %v4720_v5 = vadd.f32 %v8034_v9, %v4649_v44 }
 0x3fb   : > { %v4516_v34 = vadd.f32 %v8023_v18, %v4314_v41  ;;  %v4315_v61 = vadd.f32 %v6080_v54, %v7719_v7  ;;  %v4721_v14 = vadd.f32 %v8034_v9, %v4650_v56 }
 0x3fd   : > { %v4580_v47 = vmax.f32 %v4516_v34, 0.0  ;;  %v4517_v25 = vadd.f32 %v8023_v18, %v4315_v61  ;;  %v4777_v53 = vpack.c.bf16 %v4721_v14, %v4720_v5 }
 0x3fe   : > { %v4115_v16 = vpop.f32.mrb[92].mxu1  ;;  %v3553_v55 = vpop.f32.mrb[108].mxu0 }
 0x3ff   : > { %v4651_v28 = vmul.f32 %v8028_v36, %v4580_v47  ;;  %v4581_v3 = vmax.f32 %v4517_v25, 0.0  ;;  %v6081_v17 = vadd.f32 %v4115_v16, %v3537_v46  ;;  %v4117_v20 = vpop.f32.mrb[93].mxu1  ;;  %5980 = vmatmul.mubr.bf16.gmra.mrb[204].mxu0 %v4777_v53  ;;  %v3555_v57 = vpop.f32.mrb[109].mxu0 }
 0x400   : > { %v4118_v31 = vpop.f32.mrb[94].mxu1  ;;  %v3556_v60 = vpop.f32.mrb[110].mxu0 }
 0x401   : > { %v4652_v7 = vmul.f32 %v8028_v36, %v4581_v3  ;;  %v4316_v19 = vadd.f32 %v6081_v17, %v7712_v63  ;;  %v6082_v27 = vadd.f32 %v4118_v31, %v3540_v29  ;;  %v4120_v24 = vpop.f32.mrb[95].mxu1  ;;  %v3558_v33 = vpop.f32.mrb[111].mxu0  ;;  %v4722_v38 = vadd.f32 %v8034_v9, %v4651_v28 }
 0x403   : > { %v4518_v43 = vadd.f32 %v8023_v18, %v4316_v19  ;;  %v4317_v49 = vadd.f32 %v6082_v27, %v7717_v6  ;;  %v4723_v46 = vadd.f32 %v8034_v9, %v4652_v7 }
 0x405   : > { %v4582_v32 = vmax.f32 %v4518_v43, 0.0  ;;  %v4519_v4 = vadd.f32 %v8023_v18, %v4317_v49  ;;  %v4778_v10 = vpack.c.bf16 %v4723_v46, %v4722_v38 }
 0x406   : > { %v4123_v44 = vpop.f32.mrb[96].mxu1  ;;  %v3561_v50 = vpop.f32.mrb[112].mxu0 }
 0x407   : > { %v4653_v45 = vmul.f32 %v8028_v36, %v4582_v32  ;;  %v4583_v63 = vmax.f32 %v4519_v4, 0.0  ;;  %v6083_v29 = vadd.f32 %v4123_v44, %v3545_v26  ;;  %v4125_v1 = vpop.f32.mrb[97].mxu1  ;;  %5983 = vmatprep.mubr.bf16.mxu0 %v4778_v10  ;;  %v3563_v13 = vpop.f32.mrb[113].mxu0 }
 0x408   : > { %v4126_v42 = vpop.f32.mrb[98].mxu1  ;;  %v3564_v56 = vpop.f32.mrb[114].mxu0 }
 0x409   : > { %v4654_v6 = vmul.f32 %v8028_v36, %v4583_v63  ;;  %v4318_v41 = vadd.f32 %v6083_v29, %v7727_v15  ;;  %v6084_v54 = vadd.f32 %v4126_v42, %v3548_v23  ;;  %v4128_v37 = vpop.f32.mrb[99].mxu1  ;;  %v3566_v62 = vpop.f32.mrb[115].mxu0  ;;  %v4724_v5 = vadd.f32 %v8034_v9, %v4653_v45 }
 0x40b   : > { %v4520_v34 = vadd.f32 %v8023_v18, %v4318_v41  ;;  %v4319_v61 = vadd.f32 %v6084_v54, %v7731_v22  ;;  %v4725_v26 = vadd.f32 %v8034_v9, %v4654_v6 }
 0x40d   : > { %v4584_v14 = vmax.f32 %v4520_v34, 0.0  ;;  %v4521_v47 = vadd.f32 %v8023_v18, %v4319_v61  ;;  %v4779_v25 = vpack.c.bf16 %v4725_v26, %v4724_v5 }
 0x40e   : > { %v4131_v53 = vpop.f32.mrb[100].mxu1  ;;  %v3569_v16 = vpop.f32.mrb[116].mxu0 }
 0x40f   : > { %v4655_v28 = vmul.f32 %v8028_v36, %v4584_v14  ;;  %v4585_v15 = vmax.f32 %v4521_v47, 0.0  ;;  %v6085_v23 = vadd.f32 %v4131_v53, %v3553_v55  ;;  %v4133_v3 = vpop.f32.mrb[101].mxu1  ;;  %5984 = vmatmul.mubr.bf16.gmra.mrb[208].mxu0 %v4779_v25  ;;  %v3571_v17 = vpop.f32.mrb[117].mxu0 }
 0x410   : > { %v4134_v20 = vpop.f32.mrb[102].mxu1  ;;  %v3572_v57 = vpop.f32.mrb[118].mxu0 }
 0x411   : > { %v4656_v22 = vmul.f32 %v8028_v36, %v4585_v15  ;;  %v4320_v31 = vadd.f32 %v6085_v23, %v7725_v11  ;;  %v6086_v7 = vadd.f32 %v4134_v20, %v3556_v60  ;;  %v4136_v19 = vpop.f32.mrb[103].mxu1  ;;  %v3574_v27 = vpop.f32.mrb[119].mxu0  ;;  %v4726_v43 = vadd.f32 %v8034_v9, %v4655_v28 }
 0x413   : > { %v4522_v24 = vadd.f32 %v8023_v18, %v4320_v31  ;;  %v4321_v33 = vadd.f32 %v6086_v7, %v7729_v21  ;;  %v4727_v55 = vadd.f32 %v8034_v9, %v4656_v22 }
 0x415   : > { %v4586_v49 = vmax.f32 %v4522_v24, 0.0  ;;  %v4523_v38 = vadd.f32 %v8023_v18, %v4321_v33  ;;  %v4780_v46 = vpack.c.bf16 %v4727_v55, %v4726_v43 }
 0x416   : > { %v4139_v32 = vpop.f32.mrb[104].mxu1  ;;  %v3577_v4 = vpop.f32.mrb[120].mxu0 }
 0x417   : > { %v4657_v10 = vmul.f32 %v8028_v36, %v4586_v49  ;;  %v4587_v11 = vmax.f32 %v4523_v38, 0.0  ;;  %v6087_v60 = vadd.f32 %v4139_v32, %v3561_v50  ;;  %v4141_v44 = vpop.f32.mrb[105].mxu1  ;;  %5987 = vmatprep.mubr.bf16.mxu0 %v4780_v46  ;;  %v3579_v45 = vpop.f32.mrb[121].mxu0 }
 0x418   : > { %v4142_v63 = vpop.f32.mrb[106].mxu1  ;;  %v3580_v29 = vpop.f32.mrb[122].mxu0 }
 0x419   : > { %v4658_v21 = vmul.f32 %v8028_v36, %v4587_v11  ;;  %v4322_v1 = vadd.f32 %v6087_v60, %v7739_v35  ;;  %v6088_v13 = vadd.f32 %v4142_v63, %v3564_v56  ;;  %v4144_v42 = vpop.f32.mrb[107].mxu1  ;;  %v3582_v6 = vpop.f32.mrb[123].mxu0  ;;  %v4728_v37 = vadd.f32 %v8034_v9, %v4657_v10 }
 0x41b   : > { %v4524_v41 = vadd.f32 %v8023_v18, %v4322_v1  ;;  %v4323_v54 = vadd.f32 %v6088_v13, %v7743_v40  ;;  %v4729_v50 = vadd.f32 %v8034_v9, %v4658_v21 }
 0x41d   : > { %v4588_v62 = vmax.f32 %v4524_v41, 0.0  ;;  %v4525_v34 = vadd.f32 %v8023_v18, %v4323_v54  ;;  %v4781_v61 = vpack.c.bf16 %v4729_v50, %v4728_v37 }
 0x41e   : > { %v4147_v5 = vpop.f32.mrb[108].mxu1  ;;  %v3585_v26 = vpop.f32.mrb[124].mxu0 }
 0x41f   : > { %v4659_v14 = vmul.f32 %v8028_v36, %v4588_v62  ;;  %v4589_v35 = vmax.f32 %v4525_v34, 0.0  ;;  %v6089_v56 = vadd.f32 %v4147_v5, %v3569_v16  ;;  %v4149_v47 = vpop.f32.mrb[109].mxu1  ;;  %5988 = vmatmul.mubr.bf16.gmra.mrb[212].mxu0 %v4781_v61  ;;  %v3587_v25 = vpop.f32.mrb[125].mxu0 }
 0x420   : > { %v4150_v53 = vpop.f32.mrb[110].mxu1  ;;  %v3588_v28 = vpop.f32.mrb[126].mxu0 }
 0x421   : > { %v4660_v40 = vmul.f32 %v8028_v36, %v4589_v35  ;;  %v4324_v15 = vadd.f32 %v6089_v56, %v7737_v30  ;;  %v6090_v23 = vadd.f32 %v4150_v53, %v3572_v57  ;;  %v4152_v3 = vpop.f32.mrb[111].mxu1  ;;  %v3590_v17 = vpop.f32.mrb[127].mxu0  ;;  %v4730_v31 = vadd.f32 %v8034_v9, %v4659_v14 }
 0x423   : > { %v4526_v20 = vadd.f32 %v8023_v18, %v4324_v15  ;;  %v4325_v22 = vadd.f32 %v6090_v23, %v7741_v39  ;;  %v4731_v16 = vadd.f32 %v8034_v9, %v4660_v40 }
 0x425   : > { %v4590_v7 = vmax.f32 %v4526_v20, 0.0  ;;  %v4527_v19 = vadd.f32 %v8023_v18, %v4325_v22  ;;  %v4782_v27 = vpack.c.bf16 %v4731_v16, %v4730_v31 }
 0x426   : > { %v4155_v24 = vpop.f32.mrb[112].mxu1  ;;  %v3593_v33 = vpop.f32.mrb[128].mxu0 }
 0x427   : > { %v4661_v43 = vmul.f32 %v8028_v36, %v4590_v7  ;;  %v4591_v30 = vmax.f32 %v4527_v19, 0.0  ;;  %v6091_v57 = vadd.f32 %v4155_v24, %v3577_v4  ;;  %v4157_v55 = vpop.f32.mrb[113].mxu1  ;;  %5991 = vmatprep.mubr.bf16.mxu0 %v4782_v27  ;;  %v3595_v49 = vpop.f32.mrb[129].mxu0 }
 0x428   : > { %v4158_v38 = vpop.f32.mrb[114].mxu1  ;;  %v3596_v46 = vpop.f32.mrb[130].mxu0 }
 0x429   : > { %v4662_v39 = vmul.f32 %v8028_v36, %v4591_v30  ;;  %v4326_v32 = vadd.f32 %v6091_v57, %v7751_v52  ;;  %v6092_v10 = vadd.f32 %v4158_v38, %v3580_v29  ;;  %v4160_v11 = vpop.f32.mrb[115].mxu1  ;;  %v3598_v60 = vpop.f32.mrb[131].mxu0  ;;  %v4732_v63 = vadd.f32 %v8034_v9, %v4661_v43 }
 0x42b   : > { %v4528_v44 = vadd.f32 %v8023_v18, %v4326_v32  ;;  %v4327_v45 = vadd.f32 %v6092_v10, %v7755_v59  ;;  %v4733_v4 = vadd.f32 %v8034_v9, %v4662_v39 }
 0x42d   : > { %v4592_v21 = vmax.f32 %v4528_v44, 0.0  ;;  %v4529_v1 = vadd.f32 %v8023_v18, %v4327_v45  ;;  %v4783_v13 = vpack.c.bf16 %v4733_v4, %v4732_v63 }
 0x42e   : > { %v4163_v42 = vpop.f32.mrb[116].mxu1  ;;  %v3601_v6 = vpop.f32.mrb[132].mxu0 }
 0x42f   : > { %v4663_v41 = vmul.f32 %v8028_v36, %v4592_v21  ;;  %v4593_v52 = vmax.f32 %v4529_v1, 0.0  ;;  %v6093_v29 = vadd.f32 %v4163_v42, %v3585_v26  ;;  %v4165_v54 = vpop.f32.mrb[117].mxu1  ;;  %5992 = vmatmul.mubr.bf16.gmra.mrb[216].mxu0 %v4783_v13  ;;  %v3603_v37 = vpop.f32.mrb[133].mxu0 }
 0x430   : > { %v4166_v50 = vpop.f32.mrb[118].mxu1  ;;  %v3604_v62 = vpop.f32.mrb[134].mxu0 }
 0x431   : > { %v4664_v59 = vmul.f32 %v8028_v36, %v4593_v52  ;;  %v4328_v34 = vadd.f32 %v6093_v29, %v7749_v48  ;;  %v6094_v61 = vadd.f32 %v4166_v50, %v3588_v28  ;;  %v4168_v5 = vpop.f32.mrb[119].mxu1  ;;  %v3606_v14 = vpop.f32.mrb[135].mxu0  ;;  %v4734_v47 = vadd.f32 %v8034_v9, %v4663_v41  ;;  %v8645_v29 = vld [vmem:[#allocation61_spill] sm:$0xff] }
 0x433   : > { %v4530_v35 = vadd.f32 %v8023_v18, %v4328_v34  ;;  %v4329_v56 = vadd.f32 %v6094_v61, %v7753_v58  ;;  %v4735_v26 = vadd.f32 %v8034_v9, %v4664_v59 }
 0x435   : > { %v4594_v25 = vmax.f32 %v4530_v35, 0.0  ;;  %v4531_v53 = vadd.f32 %v8023_v18, %v4329_v56  ;;  %v4784_v40 = vpack.c.bf16 %v4735_v26, %v4734_v47  ;;  %v8647_v26 = vld [vmem:[#allocation62_spill] sm:$0xff] }
 0x436   : > { %v4171_v15 = vpop.f32.mrb[120].mxu1 }
 0x437   : > { %v4665_v23 = vmul.f32 %v8028_v36, %v4594_v25  ;;  %v4595_v3 = vmax.f32 %v4531_v53, 0.0  ;;  %v6095_v48 = vadd.f32 %v4171_v15, %v3593_v33  ;;  %v4173_v28 = vpop.f32.mrb[121].mxu1  ;;  %5995 = vmatprep.mubr.bf16.mxu0 %v4784_v40 }
 0x438   : > { %v4174_v17 = vpop.f32.mrb[122].mxu1 }
 0x439   : > { %v4666_v20 = vmul.f32 %v8028_v36, %v4595_v3  ;;  %v4330_v58 = vadd.f32 %v6095_v48, %v7763_v8  ;;  %v6096_v22 = vadd.f32 %v4174_v17, %v3596_v46  ;;  %v4176_v31 = vpop.f32.mrb[123].mxu1  ;;  %v4736_v19 = vadd.f32 %v8034_v9, %v4665_v23  ;;  %v8648_v23 = vld [vmem:[#allocation33_spill] sm:$0xff]  ;;  %v8649_v48 = vld [vmem:[#allocation63_spill] sm:$0xff] }
 0x43b   : > { %v4532_v16 = vadd.f32 %v8023_v18, %v4330_v58  ;;  %v4331_v7 = vadd.f32 %v6096_v22, %v7767_v12  ;;  %v4737_v27 = vadd.f32 %v8034_v9, %v4666_v20  ;;  %v8650_v58 = vld [vmem:[#allocation35_spill] sm:$0xff] }
 0x43d   : > { %v4596_v24 = vmax.f32 %v4532_v16, 0.0  ;;  %v4533_v33 = vadd.f32 %v8023_v18, %v4331_v7  ;;  %v4785_v43 = vpack.c.bf16 %v4737_v27, %v4736_v19 }
 0x43e   : > { %v4179_v30 = vpop.f32.mrb[124].mxu1 }
 0x43f   : > { %v4667_v57 = vmul.f32 %v8028_v36, %v4596_v24  ;;  %v4597_v55 = vmax.f32 %v4533_v33, 0.0  ;;  %v6097_v49 = vadd.f32 %v4179_v30, %v3601_v6  ;;  %v4181_v8 = vpop.f32.mrb[125].mxu1  ;;  %5996 = vmatmul.mubr.bf16.gmra.mrb[220].mxu0 %v4785_v43  ;;  %v8651_v30 = vld [vmem:[#allocation64_spill] sm:$0xff] }
 0x440   : > { %v4182_v38 = vpop.f32.mrb[126].mxu1 }
 0x441   : > { %v4668_v46 = vmul.f32 %v8028_v36, %v4597_v55  ;;  %v4332_v12 = vadd.f32 %v6097_v49, %v7761_v2  ;;  %v6098_v39 = vadd.f32 %v4182_v38, %v3604_v62  ;;  %v4184_v32 = vpop.f32.mrb[127].mxu1  ;;  %v4738_v60 = vadd.f32 %v8034_v9, %v4667_v57  ;;  %v8646_v62 = vld [vmem:[#allocation36_spill] sm:$0xff]  ;;  %v8652_v38 = vld [vmem:[#allocation38_spill] sm:$0xff] }
 0x443   : > { %v4534_v10 = vadd.f32 %v8023_v18, %v4332_v12  ;;  %v4333_v11 = vadd.f32 %v6098_v39, %v7765_v0  ;;  %v4739_v44 = vadd.f32 %v8034_v9, %v4668_v46  ;;  %v8644_v0 = vld [vmem:[#allocation34_spill] sm:$0xff]  ;;  %v8653_v12 = vld [vmem:[#allocation65_spill] sm:$0xff] }
 0x445   : > { %v4598_v45 = vmax.f32 %v4534_v10, 0.0  ;;  %v4535_v63 = vadd.f32 %v8023_v18, %v4333_v11  ;;  %v4786_v4 = vpack.c.bf16 %v4739_v44, %v4738_v60  ;;  %v8654_v11 = vld [vmem:[#allocation40_spill] sm:$0xff] }
 0x446   : > { %v4187_v21 = vpop.f32.mrb[0].mxu1 }
 0x447   : > { %v4669_v1 = vmul.f32 %v8028_v36, %v4598_v45  ;;  %v4599_v13 = vmax.f32 %v4535_v63, 0.0  ;;  %v6099_v2 = vadd.f32 %v4187_v21, %v7929_v51  ;;  %v4189_v42 = vpop.f32.mrb[1].mxu1  ;;  %5999 = vmatprep.mubr.bf16.mxu0 %v4786_v4 }
 0x448   : > { %v4190_v6 = vpop.f32.mrb[2].mxu1  ;;  %v8655_v42 = vld [vmem:[#allocation66_spill] sm:$0xff] }
 0x449   : > { %v4670_v41 = vmul.f32 %v8028_v36, %v4599_v13  ;;  %v4334_v52 = vadd.f32 %v6099_v2, %v8644_v0  ;;  %v6100_v54 = vadd.f32 %v4190_v6, %v8645_v29  ;;  %v4192_v37 = vpop.f32.mrb[3].mxu1  ;;  %v4740_v34 = vadd.f32 %v8034_v9, %v4669_v1  ;;  %v8656_v29 = vld [vmem:[#allocation37_spill] sm:$0xff] }
 0x44a   : > { %v8657_v37 = vld [vmem:[#allocation67_spill] sm:$0xff] }
 0x44b   : > { %v4536_v50 = vadd.f32 %v8023_v18, %v4334_v52  ;;  %v4335_v59 = vadd.f32 %v6100_v54, %v8646_v62  ;;  %v4741_v61 = vadd.f32 %v8034_v9, %v4670_v41 }
 0x44d   : > { %v4600_v5 = vmax.f32 %v4536_v50, 0.0  ;;  %v4537_v51 = vadd.f32 %v8023_v18, %v4335_v59  ;;  %v4787_v14 = vpack.c.bf16 %v4741_v61, %v4740_v34  ;;  %v8658_v34 = vld [vmem:[#allocation39_spill] sm:$0xff] }
 0x44e   : > { %v4195_v35 = vpop.f32.mrb[4].mxu1 }
 0x44f   : > { %v4671_v56 = vmul.f32 %v8028_v36, %v4600_v5  ;;  %v4601_v47 = vmax.f32 %v4537_v51, 0.0  ;;  %v6101_v25 = vadd.f32 %v4195_v35, %v8647_v26  ;;  %v4197_v53 = vpop.f32.mrb[5].mxu1  ;;  %6000 = vmatmul.mubr.bf16.gmra.mrb[224].mxu0 %v4787_v14 }
 0x450   : > { %v4198_v40 = vpop.f32.mrb[6].mxu1  ;;  %v8659_v53 = vld [vmem:[#allocation68_spill] sm:$0xff] }
 0x451   : > { %v4672_v15 = vmul.f32 %v8028_v36, %v4601_v47  ;;  %v4336_v3 = vadd.f32 %v6101_v25, %v8648_v23  ;;  %v6102_v28 = vadd.f32 %v4198_v40, %v8649_v48  ;;  %v4200_v17 = vpop.f32.mrb[7].mxu1  ;;  %v4742_v31 = vadd.f32 %v8034_v9, %v4671_v56  ;;  %v8660_v48 = vld [vmem:[#allocation42_spill] sm:$0xff] }
 0x452   : > { %v8661_v17 = vld [vmem:[#allocation69_spill] sm:$0xff] }
 0x453   : > { %v4538_v20 = vadd.f32 %v8023_v18, %v4336_v3  ;;  %v4337_v22 = vadd.f32 %v6102_v28, %v8650_v58  ;;  %v4743_v16 = vadd.f32 %v8034_v9, %v4672_v15 }
 0x455   : > { %v4602_v7 = vmax.f32 %v4538_v20, 0.0  ;;  %v4539_v19 = vadd.f32 %v8023_v18, %v4337_v22  ;;  %v4788_v27 = vpack.c.bf16 %v4743_v16, %v4742_v31  ;;  %v8662_v31 = vld [vmem:[#allocation44_spill] sm:$0xff] }
 0x456   : > { %v4203_v24 = vpop.f32.mrb[8].mxu1 }
 0x457   : > { %v4673_v33 = vmul.f32 %v8028_v36, %v4602_v7  ;;  %v4603_v43 = vmax.f32 %v4539_v19, 0.0  ;;  %v6103_v57 = vadd.f32 %v4203_v24, %v8651_v30  ;;  %v4205_v55 = vpop.f32.mrb[9].mxu1  ;;  %6003 = vmatprep.mubr.bf16.mxu0 %v4788_v27 }
 0x458   : > { %v4206_v49 = vpop.f32.mrb[10].mxu1  ;;  %v8663_v55 = vld [vmem:[#allocation70_spill] sm:$0xff] }
 0x459   : > { %v4674_v8 = vmul.f32 %v8028_v36, %v4603_v43  ;;  %v4338_v46 = vadd.f32 %v6103_v57, %v8652_v38  ;;  %v6104_v39 = vadd.f32 %v4206_v49, %v8653_v12  ;;  %v4208_v32 = vpop.f32.mrb[11].mxu1  ;;  %v4744_v44 = vadd.f32 %v8034_v9, %v4673_v33  ;;  %v8664_v12 = vld [vmem:[#allocation41_spill] sm:$0xff] }
 0x45a   : > { %v8665_v32 = vld [vmem:[#allocation71_spill] sm:$0xff] }
 0x45b   : > { %v4540_v10 = vadd.f32 %v8023_v18, %v4338_v46  ;;  %v4339_v60 = vadd.f32 %v6104_v39, %v8654_v11  ;;  %v4745_v45 = vadd.f32 %v8034_v9, %v4674_v8 }
 0x45d   : > { %v4604_v63 = vmax.f32 %v4540_v10, 0.0  ;;  %v4541_v4 = vadd.f32 %v8023_v18, %v4339_v60  ;;  %v4789_v21 = vpack.c.bf16 %v4745_v45, %v4744_v44  ;;  %v8666_v44 = vld [vmem:[#allocation43_spill] sm:$0xff] }
 0x45e   : > { %v4211_v1 = vpop.f32.mrb[12].mxu1 }
 0x45f   : > { %v4675_v13 = vmul.f32 %v8028_v36, %v4604_v63  ;;  %v4605_v2 = vmax.f32 %v4541_v4, 0.0  ;;  %v6105_v6 = vadd.f32 %v4211_v1, %v8655_v42  ;;  %v4213_v41 = vpop.f32.mrb[13].mxu1  ;;  %6004 = vmatmul.mubr.bf16.gmra.mrb[228].mxu0 %v4789_v21 }
 0x460   : > { %v4214_v0 = vpop.f32.mrb[14].mxu1  ;;  %v8667_v41 = vld [vmem:[#allocation72_spill] sm:$0xff] }
 0x461   : > { %v4676_v52 = vmul.f32 %v8028_v36, %v4605_v2  ;;  %v4340_v54 = vadd.f32 %v6105_v6, %v8656_v29  ;;  %v6106_v50 = vadd.f32 %v4214_v0, %v8657_v37  ;;  %v4216_v62 = vpop.f32.mrb[15].mxu1  ;;  %v4746_v5 = vadd.f32 %v8034_v9, %v4675_v13  ;;  %v8668_v37 = vld [vmem:[#allocation46_spill] sm:$0xff] }
 0x462   : > { %v8669_v62 = vld [vmem:[#allocation73_spill] sm:$0xff] }
 0x463   : > { %v4542_v59 = vadd.f32 %v8023_v18, %v4340_v54  ;;  %v4341_v61 = vadd.f32 %v6106_v50, %v8658_v34  ;;  %v4747_v51 = vadd.f32 %v8034_v9, %v4676_v52 }
 0x465   : > { %v4606_v14 = vmax.f32 %v4542_v59, 0.0  ;;  %v4543_v35 = vadd.f32 %v8023_v18, %v4341_v61  ;;  %v4790_v56 = vpack.c.bf16 %v4747_v51, %v4746_v5  ;;  %v8240_v61 = vld [vmem:[#allocation10] ss:$0 sm:$0xff] }
 0x466   : > { %v4219_v47 = vpop.f32.mrb[16].mxu1  ;;  %v8670_v5 = vld [vmem:[#allocation48_spill] sm:$0xff] }
 0x467   : > { %v4677_v26 = vmul.f32 %v8028_v36, %v4606_v14  ;;  %v4607_v25 = vmax.f32 %v4543_v35, 0.0  ;;  %v6107_v40 = vadd.f32 %v4219_v47, %v8659_v53  ;;  %v4221_v15 = vpop.f32.mrb[17].mxu1  ;;  %6007 = vmatprep.mubr.bf16.mxu0 %v4790_v56 }
 0x468   : > { %v4222_v23 = vpop.f32.mrb[18].mxu1  ;;  %v8671_v15 = vld [vmem:[#allocation74_spill] sm:$0xff] }
 0x469   : > { %v4678_v3 = vmul.f32 %v8028_v36, %v4607_v25  ;;  %v4342_v28 = vadd.f32 %v6107_v40, %v8660_v48  ;;  %v6108_v20 = vadd.f32 %v4222_v23, %v8661_v17  ;;  %v4224_v58 = vpop.f32.mrb[19].mxu1  ;;  %v4748_v7 = vadd.f32 %v8034_v9, %v4677_v26  ;;  %v8247_v25 = vld [vmem:[#allocation12] ss:$0 sm:$0xff]  ;;  %v8672_v17 = vld [vmem:[#allocation45_spill] sm:$0xff] }
 0x46b   : > { %v4544_v22 = vadd.f32 %v8023_v18, %v4342_v28  ;;  %v4343_v16 = vadd.f32 %v6108_v20, %v8662_v31  ;;  %v4749_v19 = vadd.f32 %v8034_v9, %v4678_v3 }
 0x46d   : > { %v4608_v27 = vmax.f32 %v4544_v22, 0.0  ;;  %v4545_v24 = vadd.f32 %v8023_v18, %v4343_v16  ;;  %v4791_v33 = vpack.c.bf16 %v4749_v19, %v4748_v7  ;;  %v8674_v16 = vld [vmem:[#allocation47_spill] sm:$0xff]  ;;  %v8256_v19 = vld [vmem:[#allocation13] ss:$0 sm:$0xff] }
 0x46e   : > { %v4227_v43 = vpop.f32.mrb[20].mxu1 }
 0x46f   : > { %v4679_v30 = vmul.f32 %v8028_v36, %v4608_v27  ;;  %v4609_v57 = vmax.f32 %v4545_v24, 0.0  ;;  %v6109_v49 = vadd.f32 %v4227_v43, %v8663_v55  ;;  %v4229_v8 = vpop.f32.mrb[21].mxu1  ;;  %6008 = vmatmul.mubr.bf16.gmra.mrb[232].mxu0 %v4791_v33 }
 0x470   : > { %v4230_v38 = vpop.f32.mrb[22].mxu1  ;;  %v8675_v8 = vld [vmem:[#allocation76_spill] sm:$0xff] }
 0x471   : > { %v4680_v46 = vmul.f32 %v8028_v36, %v4609_v57  ;;  %v4344_v39 = vadd.f32 %v6109_v49, %v8664_v12  ;;  %v6110_v10 = vadd.f32 %v4230_v38, %v8665_v32  ;;  %v4232_v11 = vpop.f32.mrb[23].mxu1  ;;  %v4750_v63 = vadd.f32 %v8034_v9, %v4679_v30  ;;  %v8676_v32 = vld [vmem:[#allocation50_spill] sm:$0xff] }
 0x472   : > { %v8677_v11 = vld [vmem:[#allocation77_spill] sm:$0xff] }
 0x473   : > { %v4546_v60 = vadd.f32 %v8023_v18, %v4344_v39  ;;  %v4345_v45 = vadd.f32 %v6110_v10, %v8666_v44  ;;  %v4751_v4 = vadd.f32 %v8034_v9, %v4680_v46 }
 0x475   : > { %v4610_v21 = vmax.f32 %v4546_v60, 0.0  ;;  %v4547_v1 = vadd.f32 %v8023_v18, %v4345_v45  ;;  %v4792_v13 = vpack.c.bf16 %v4751_v4, %v4750_v63  ;;  %v8678_v63 = vld [vmem:[#allocation52_spill] sm:$0xff] }
 0x476   : > { %v4235_v2 = vpop.f32.mrb[24].mxu1 }
 0x477   : > { %v4681_v42 = vmul.f32 %v8028_v36, %v4610_v21  ;;  %v4611_v6 = vmax.f32 %v4547_v1, 0.0  ;;  %v6111_v0 = vadd.f32 %v4235_v2, %v8667_v41  ;;  %v4237_v52 = vpop.f32.mrb[25].mxu1  ;;  %6011 = vmatprep.mubr.bf16.mxu0 %v4792_v13 }
 0x478   : > { %v4238_v29 = vpop.f32.mrb[26].mxu1  ;;  %v8679_v52 = vld [vmem:[#allocation78_spill] sm:$0xff] }
 0x479   : > { %v4682_v54 = vmul.f32 %v8028_v36, %v4611_v6  ;;  %v4346_v50 = vadd.f32 %v6111_v0, %v8668_v37  ;;  %v6112_v59 = vadd.f32 %v4238_v29, %v8669_v62  ;;  %v4240_v34 = vpop.f32.mrb[27].mxu1  ;;  %v4752_v14 = vadd.f32 %v8034_v9, %v4681_v42  ;;  %v8680_v62 = vld [vmem:[#allocation49_spill] sm:$0xff] }
 0x47a   : > { %v8681_v34 = vld [vmem:[#allocation79_spill] sm:$0xff] }
 0x47b   : > { %v4548_v18 = vadd.f32 %v8240_v61, %v4346_v50  ;;  %v4347_v51 = vadd.f32 %v6112_v59, %v8670_v5  ;;  %v4753_v35 = vadd.f32 %v8034_v9, %v4682_v54  ;;  %v8673_v9 = vld [vmem:[#allocation75_spill] sm:$0xff] }
 0x47d   : > { %v4612_v56 = vmax.f32 %v4548_v18, 0.0  ;;  %v4549_v47 = vadd.f32 %v8240_v61, %v4347_v51  ;;  %v4793_v26 = vpack.c.bf16 %v4753_v35, %v4752_v14  ;;  %v8682_v14 = vld [vmem:[#allocation51_spill] sm:$0xff] }
 0x47e   : > { %v4243_v36 = vpop.f32.mrb[28].mxu1 }
 0x47f   : > { %v4683_v53 = vmul.f32 %v8247_v25, %v4612_v56  ;;  %v4613_v40 = vmax.f32 %v4549_v47, 0.0  ;;  %v6113_v23 = vadd.f32 %v4243_v36, %v8671_v15  ;;  %v4245_v3 = vpop.f32.mrb[29].mxu1  ;;  %6012 = vmatmul.mubr.bf16.gmra.mrb[236].mxu0 %v4793_v26 }
 0x480   : > { %v4246_v48 = vpop.f32.mrb[30].mxu1  ;;  %v8683_v3 = vld [vmem:[#allocation80_spill] sm:$0xff] }
 0x481   : > { %v4684_v28 = vmul.f32 %v8247_v25, %v4613_v40  ;;  %v4348_v20 = vadd.f32 %v6113_v23, %v8672_v17  ;;  %v6114_v58 = vadd.f32 %v4246_v48, %v8673_v9  ;;  %v4248_v22 = vpop.f32.mrb[31].mxu1  ;;  %v4754_v27 = vadd.f32 %v8256_v19, %v4683_v53  ;;  %v8684_v9 = vld [vmem:[#allocation54_spill] sm:$0xff] }
 0x482   : > { %v8685_v22 = vld [vmem:[#allocation81_spill] sm:$0xff] }
 0x483   : > { %v4550_v31 = vadd.f32 %v8240_v61, %v4348_v20  ;;  %v4349_v7 = vadd.f32 %v6114_v58, %v8674_v16  ;;  %v4755_v24 = vadd.f32 %v8256_v19, %v4684_v28 }
 0x485   : > { %v4614_v33 = vmax.f32 %v4550_v31, 0.0  ;;  %v4551_v43 = vadd.f32 %v8240_v61, %v4349_v7  ;;  %v4794_v30 = vpack.c.bf16 %v4755_v24, %v4754_v27  ;;  %v8686_v27 = vld [vmem:[#allocation56_spill] sm:$0xff] }
 0x486   : > { %v4251_v57 = vpop.f32.mrb[32].mxu1 }
 0x487   : > { %v4685_v55 = vmul.f32 %v8247_v25, %v4614_v33  ;;  %v4615_v49 = vmax.f32 %v4551_v43, 0.0  ;;  %v6115_v38 = vadd.f32 %v4251_v57, %v8675_v8  ;;  %v4253_v46 = vpop.f32.mrb[33].mxu1  ;;  %6015 = vmatprep.mubr.bf16.mxu0 %v4794_v30 }
 0x488   : > { %v4254_v12 = vpop.f32.mrb[34].mxu1  ;;  %v8687_v46 = vld [vmem:[#allocation82_spill] sm:$0xff] }
 0x489   : > { %v4686_v39 = vmul.f32 %v8247_v25, %v4615_v49  ;;  %v4350_v10 = vadd.f32 %v6115_v38, %v8676_v32  ;;  %v6116_v60 = vadd.f32 %v4254_v12, %v8677_v11  ;;  %v4256_v44 = vpop.f32.mrb[35].mxu1  ;;  %v4756_v21 = vadd.f32 %v8256_v19, %v4685_v55 }
 0x48b   : > { %v4552_v45 = vadd.f32 %v8240_v61, %v4350_v10  ;;  %v4351_v4 = vadd.f32 %v6116_v60, %v8678_v63  ;;  %v4757_v1 = vadd.f32 %v8256_v19, %v4686_v39  ;;  %v8293_v10 = vld [vmem:[#allocation16] ss:$0 sm:$0xff]  ;;  %v8688_v60 = vld [vmem:[#allocation53_spill] sm:$0xff] }
 0x48d   : > { %v4616_v13 = vmax.f32 %v4552_v45, 0.0  ;;  %v4553_v2 = vadd.f32 %v8240_v61, %v4351_v4  ;;  %v4795_v42 = vpack.c.bf16 %v4757_v1, %v4756_v21  ;;  %v8689_v45 = vld [vmem:[#allocation83_spill] sm:$0xff] }
 0x48e   : > { %v4259_v6 = vpop.f32.mrb[36].mxu1 }
 0x48f   : > { %v4687_v41 = vmul.f32 %v8247_v25, %v4616_v13  ;;  %v4617_v0 = vmax.f32 %v4553_v2, 0.0  ;;  %v6117_v29 = vadd.f32 %v4259_v6, %v8679_v52  ;;  %v4261_v54 = vpop.f32.mrb[37].mxu1  ;;  %6016 = vmatmul.mubr.bf16.gmra.mrb[240].mxu0 %v4795_v42  ;;  %v8690_v2 = vld [vmem:[#allocation55_spill] sm:$0xff] }
 0x490   : > { %v4262_v37 = vpop.f32.mrb[38].mxu1 }
 0x491   : > { %v4688_v50 = vmul.f32 %v8247_v25, %v4617_v0  ;;  %v4352_v59 = vadd.f32 %v6117_v29, %v8680_v62  ;;  %v6118_v18 = vadd.f32 %v4262_v37, %v8681_v34  ;;  %v4264_v5 = vpop.f32.mrb[39].mxu1  ;;  %v4758_v56 = vadd.f32 %v8256_v19, %v4687_v41 }
 0x493   : > { %v4554_v51 = vadd.f32 %v8240_v61, %v4352_v59  ;;  %v4353_v35 = vadd.f32 %v6118_v18, %v8682_v14  ;;  %v4759_v47 = vadd.f32 %v8256_v19, %v4688_v50  ;;  %v8691_v14 = vld [vmem:[#allocation84_spill] sm:$0xff] }
 0x495   : > { %v4618_v26 = vmax.f32 %v4554_v51, 0.0  ;;  %v4555_v36 = vadd.f32 %v8240_v61, %v4353_v35  ;;  %v4796_v53 = vpack.c.bf16 %v4759_v47, %v4758_v56 }
 0x496   : > { %v4267_v40 = vpop.f32.mrb[40].mxu1 }
 0x497   : > { %v4689_v15 = vmul.f32 %v8247_v25, %v4618_v26  ;;  %v4619_v23 = vmax.f32 %v4555_v36, 0.0  ;;  %v6119_v48 = vadd.f32 %v4267_v40, %v8683_v3  ;;  %v4269_v28 = vpop.f32.mrb[41].mxu1  ;;  %6019 = vmatprep.mubr.bf16.mxu0 %v4796_v53  ;;  %v8692_v36 = vld [vmem:[#allocation58_spill] sm:$0xff]  ;;  %v8693_v40 = vld [vmem:[#allocation85_spill] sm:$0xff] }
 0x498   : > { %v4270_v17 = vpop.f32.mrb[42].mxu1 }
 0x499   : > { %v4690_v20 = vmul.f32 %v8247_v25, %v4619_v23  ;;  %v4354_v58 = vadd.f32 %v6119_v48, %v8684_v9  ;;  %v6120_v31 = vadd.f32 %v4270_v17, %v8685_v22  ;;  %v4272_v16 = vpop.f32.mrb[43].mxu1  ;;  %v4760_v33 = vadd.f32 %v8256_v19, %v4689_v15  ;;  %v8694_v48 = vld [vmem:[#allocation60_spill] sm:$0xff] }
 0x49b   : > { %v4556_v7 = vadd.f32 %v8240_v61, %v4354_v58  ;;  %v4355_v24 = vadd.f32 %v6120_v31, %v8686_v27  ;;  %v4761_v43 = vadd.f32 %v8256_v19, %v4690_v20  ;;  %v8695_v27 = vld [vmem:[#allocation86_spill] sm:$0xff] }
 0x49d   : > { %v4620_v30 = vmax.f32 %v4556_v7, 0.0  ;;  %v4557_v57 = vadd.f32 %v8240_v61, %v4355_v24  ;;  %v4797_v55 = vpack.c.bf16 %v4761_v43, %v4760_v33 }
 0x49e   : > { %v4275_v49 = vpop.f32.mrb[44].mxu1 }
 0x49f   : > { %v4691_v8 = vmul.f32 %v8247_v25, %v4620_v30  ;;  %v4621_v38 = vmax.f32 %v4557_v57, 0.0  ;;  %v6121_v12 = vadd.f32 %v4275_v49, %v8687_v46  ;;  %v4277_v39 = vpop.f32.mrb[45].mxu1  ;;  %6020 = vmatmul.mubr.bf16.gmra.mrb[244].mxu0 %v4797_v55  ;;  %v8696_v57 = vld [vmem:[#allocation57_spill] sm:$0xff]  ;;  %v8697_v49 = vld [vmem:[#allocation87_spill] sm:$0xff] }
 0x4a0   : > { %v4278_v32 = vpop.f32.mrb[46].mxu1 }
 0x4a1   : > { %v4692_v11 = vmul.f32 %v8247_v25, %v4621_v38  ;;  %v4356_v44 = vadd.f32 %v6121_v12, %v8688_v60  ;;  %v6122_v63 = vadd.f32 %v4278_v32, %v8689_v45  ;;  %v4280_v4 = vpop.f32.mrb[47].mxu1  ;;  %v4762_v1 = vadd.f32 %v8256_v19, %v4691_v8  ;;  %v8698_v32 = vld [vmem:[#allocation59_spill] sm:$0xff] }
 0x4a2   : > { %v5969_v21 = vpop.f32.mrb[192].mxu0 }
 0x4a3   : > { %v4558_v13 = vadd.f32 %v8240_v61, %v4356_v44  ;;  %v4357_v42 = vadd.f32 %v6122_v63, %v8690_v2  ;;  %v4916_v6 = vadd.f32 %v5969_v21, %v8293_v10  ;;  %v4907_v41 = vpop.f32.mrb[193].mxu0  ;;  %v4763_v0 = vadd.f32 %v8256_v19, %v4692_v11 }
 0x4a4   : > { %v4908_v52 = vadd.f32 %v8293_v10, %v4907_v41  ;;  %v5970_v29 = vpop.f32.mrb[194].mxu0 }
 0x4a5   : > { %v4622_v54 = vmax.f32 %v4558_v13, 0.0  ;;  %v4559_v37 = vadd.f32 %v8240_v61, %v4357_v42  ;;  %5164 = vst [vmem:[%s8307_s15 + $0x10] sm:$0xff] %v4916_v6  ;;  %v4919_v50 = vadd.f32 %v5970_v29, %v8293_v10  ;;  %v4910_v62 = vpop.f32.mrb[195].mxu0  ;;  %v4798_v59 = vpack.c.bf16 %v4763_v0, %v4762_v1 }
 0x4a6   : > { %5162 = vst [vmem:[%s8307_s15] sm:$0xff] %v4908_v52  ;;  %v4911_v34 = vadd.f32 %v8293_v10, %v4910_v62  ;;  %v4283_v18 = vpop.f32.mrb[48].mxu1 }
 0x4a7   : > { %v4693_v5 = vmul.f32 %v8247_v25, %v4622_v54  ;;  %v4623_v51 = vmax.f32 %v4559_v37, 0.0  ;;  %5165 = vst [vmem:[%s8307_s15 + $0x18] sm:$0xff] %v4919_v50  ;;  %v6123_v35 = vadd.f32 %v4283_v18, %v8691_v14  ;;  %v4285_v56 = vpop.f32.mrb[49].mxu1  ;;  %6023 = vmatprep.mubr.bf16.mxu0 %v4798_v59 }
 0x4a8   : > { %5163 = vst [vmem:[%s8307_s15 + $0x8] sm:$0xff] %v4911_v34  ;;  %v4286_v47 = vpop.f32.mrb[50].mxu1 }
 0x4a9   : > { %v4694_v26 = vmul.f32 %v8247_v25, %v4623_v51  ;;  %v4358_v53 = vadd.f32 %v6123_v35, %v8692_v36  ;;  %v6124_v15 = vadd.f32 %v4286_v47, %v8693_v40  ;;  %v4288_v23 = vpop.f32.mrb[51].mxu1  ;;  %v4764_v17 = vadd.f32 %v8256_v19, %v4693_v5 }
 0x4ab   : > { %v4560_v3 = vadd.f32 %v8240_v61, %v4358_v53  ;;  %v4359_v28 = vadd.f32 %v6124_v15, %v8694_v48  ;;  %v4765_v20 = vadd.f32 %v8256_v19, %v4694_v26 }
 0x4ad   : > { %v4624_v9 = vmax.f32 %v4560_v3, 0.0  ;;  %v4561_v58 = vadd.f32 %v8240_v61, %v4359_v28  ;;  %v4799_v22 = vpack.c.bf16 %v4765_v20, %v4764_v17 }
 0x4ae   : > { %v4291_v31 = vpop.f32.mrb[52].mxu1 }
 0x4af   : > { %v4695_v16 = vmul.f32 %v8247_v25, %v4624_v9  ;;  %v4625_v7 = vmax.f32 %v4561_v58, 0.0  ;;  %v6125_v24 = vadd.f32 %v4291_v31, %v8695_v27  ;;  %v4293_v33 = vpop.f32.mrb[53].mxu1  ;;  %6024 = vmatmul.mubr.bf16.gmra.mrb[248].mxu0 %v4799_v22 }
 0x4b0   : > { %v4294_v43 = vpop.f32.mrb[54].mxu1 }
 0x4b1   : > { %v4696_v30 = vmul.f32 %v8247_v25, %v4625_v7  ;;  %v4360_v55 = vadd.f32 %v6125_v24, %v8696_v57  ;;  %v6126_v8 = vadd.f32 %v4294_v43, %v8697_v49  ;;  %v4296_v38 = vpop.f32.mrb[55].mxu1  ;;  %v4766_v12 = vadd.f32 %v8256_v19, %v4695_v16 }
 0x4b2   : > { %v5973_v46 = vpop.f32.mrb[196].mxu0 }
 0x4b3   : > { %v4562_v39 = vadd.f32 %v8240_v61, %v4360_v55  ;;  %v4361_v11 = vadd.f32 %v6126_v8, %v8698_v32  ;;  %v4932_v60 = vadd.f32 %v5973_v46, %v8293_v10  ;;  %v4923_v44 = vpop.f32.mrb[197].mxu0  ;;  %v4767_v45 = vadd.f32 %v8256_v19, %v4696_v30 }
 0x4b4   : > { %v4924_v63 = vadd.f32 %v8293_v10, %v4923_v44  ;;  %v5974_v4 = vpop.f32.mrb[198].mxu0 }
 0x4b5   : > { %v4626_v21 = vmax.f32 %v4562_v39, 0.0  ;;  %v4563_v1 = vadd.f32 %v8240_v61, %v4361_v11  ;;  %5168 = vst [vmem:[%s8307_s15 + $0x30] sm:$0xff] %v4932_v60  ;;  %v4935_v13 = vadd.f32 %v5974_v4, %v8293_v10  ;;  %v4926_v2 = vpop.f32.mrb[199].mxu0  ;;  %v4800_v42 = vpack.c.bf16 %v4767_v45, %v4766_v12 }
 0x4b6   : > { %5166 = vst [vmem:[%s8307_s15 + $0x20] sm:$0xff] %v4924_v63  ;;  %v4927_v6 = vadd.f32 %v8293_v10, %v4926_v2 }
 0x4b7   : > { %v4697_v41 = vmul.f32 %v8247_v25, %v4626_v21  ;;  %v4627_v0 = vmax.f32 %v4563_v1, 0.0  ;;  %5169 = vst [vmem:[%s8307_s15 + $0x38] sm:$0xff] %v4935_v13  ;;  %6027 = vmatprep.mubr.bf16.mxu0 %v4800_v42 }
 0x4b8   : > { %5167 = vst [vmem:[%s8307_s15 + $0x28] sm:$0xff] %v4927_v6 }
 0x4b9   : > { %v4698_v52 = vmul.f32 %v8247_v25, %v4627_v0  ;;  %v4768_v61 = vadd.f32 %v8256_v19, %v4697_v41 }
 0x4bb   : > { %v4769_v29 = vadd.f32 %v8256_v19, %v4698_v52 }
 0x4bd   : > { %v4801_v54 = vpack.c.bf16 %v4769_v29, %v4768_v61 }
 0x4bf   : > { %6028 = vmatmul.mubr.bf16.gmra.mrb[252].mxu0 %v4801_v54 }
 0x4c2   : > { %v5977_v37 = vpop.f32.mrb[200].mxu0 }
 0x4c3   : > { %v4948_v50 = vadd.f32 %v5977_v37, %v8293_v10  ;;  %v4939_v62 = vpop.f32.mrb[201].mxu0 }
 0x4c4   : > { %v4940_v59 = vadd.f32 %v8293_v10, %v4939_v62  ;;  %v5978_v34 = vpop.f32.mrb[202].mxu0 }
 0x4c5   : > { %5172 = vst [vmem:[%s8307_s15 + $0x50] sm:$0xff] %v4948_v50  ;;  %v4951_v18 = vadd.f32 %v5978_v34, %v8293_v10  ;;  %v4942_v25 = vpop.f32.mrb[203].mxu0 }
 0x4c6   : > { %5170 = vst [vmem:[%s8307_s15 + $0x40] sm:$0xff] %v4940_v59  ;;  %v4943_v19 = vadd.f32 %v8293_v10, %v4942_v25 }
 0x4c7   : > { %5173 = vst [vmem:[%s8307_s15 + $0x58] sm:$0xff] %v4951_v18 }
 0x4c8   : > { %5171 = vst [vmem:[%s8307_s15 + $0x48] sm:$0xff] %v4943_v19 }
 0x4d2   : > { %v5981_v5 = vpop.f32.mrb[204].mxu0 }
 0x4d3   : > { %v4964_v51 = vadd.f32 %v5981_v5, %v8293_v10  ;;  %v4955_v14 = vpop.f32.mrb[205].mxu0 }
 0x4d4   : > { %v4956_v35 = vadd.f32 %v8293_v10, %v4955_v14  ;;  %v5982_v56 = vpop.f32.mrb[206].mxu0 }
 0x4d5   : > { %5176 = vst [vmem:[%s8307_s15 + $0x70] sm:$0xff] %v4964_v51  ;;  %v4967_v47 = vadd.f32 %v5982_v56, %v8293_v10  ;;  %v4958_v26 = vpop.f32.mrb[207].mxu0 }
 0x4d6   : > { %5174 = vst [vmem:[%s8307_s15 + $0x60] sm:$0xff] %v4956_v35  ;;  %v4959_v36 = vadd.f32 %v8293_v10, %v4958_v26 }
 0x4d7   : > { %5177 = vst [vmem:[%s8307_s15 + $0x78] sm:$0xff] %v4967_v47 }
 0x4d8   : > { %5175 = vst [vmem:[%s8307_s15 + $0x68] sm:$0xff] %v4959_v36 }
 0x4e2   : > { %v5985_v53 = vpop.f32.mrb[208].mxu0 }
 0x4e3   : > { %v4980_v40 = vadd.f32 %v5985_v53, %v8293_v10  ;;  %v4971_v15 = vpop.f32.mrb[209].mxu0 }
 0x4e4   : > { %v4972_v23 = vadd.f32 %v8293_v10, %v4971_v15  ;;  %v5986_v3 = vpop.f32.mrb[210].mxu0 }
 0x4e5   : > { %5180 = vst [vmem:[%s8307_s15 + $0x90] sm:$0xff] %v4980_v40  ;;  %v4983_v48 = vadd.f32 %v5986_v3, %v8293_v10  ;;  %v4974_v28 = vpop.f32.mrb[211].mxu0 }
 0x4e6   : > { %5178 = vst [vmem:[%s8307_s15 + $0x80] sm:$0xff] %v4972_v23  ;;  %v4975_v17 = vadd.f32 %v8293_v10, %v4974_v28 }
 0x4e7   : > { %5181 = vst [vmem:[%s8307_s15 + $0x98] sm:$0xff] %v4983_v48 }
 0x4e8   : > { %5179 = vst [vmem:[%s8307_s15 + $0x88] sm:$0xff] %v4975_v17 }
 0x4f2   : > { %v5989_v20 = vpop.f32.mrb[212].mxu0 }
 0x4f3   : > { %v4996_v9 = vadd.f32 %v5989_v20, %v8293_v10  ;;  %v4987_v58 = vpop.f32.mrb[213].mxu0 }
 0x4f4   : > { %v4988_v22 = vadd.f32 %v8293_v10, %v4987_v58  ;;  %v5990_v31 = vpop.f32.mrb[214].mxu0 }
 0x4f5   : > { %5184 = vst [vmem:[%s8307_s15 + $0xb0] sm:$0xff] %v4996_v9  ;;  %v4999_v16 = vadd.f32 %v5990_v31, %v8293_v10  ;;  %v4990_v7 = vpop.f32.mrb[215].mxu0 }
 0x4f6   : > { %5182 = vst [vmem:[%s8307_s15 + $0xa0] sm:$0xff] %v4988_v22  ;;  %v4991_v27 = vadd.f32 %v8293_v10, %v4990_v7 }
 0x4f7   : > { %5185 = vst [vmem:[%s8307_s15 + $0xb8] sm:$0xff] %v4999_v16 }
 0x4f8   : > { %5183 = vst [vmem:[%s8307_s15 + $0xa8] sm:$0xff] %v4991_v27 }
 0x502   : > { %v5993_v24 = vpop.f32.mrb[216].mxu0 }
 0x503   : > { %v5012_v33 = vadd.f32 %v5993_v24, %v8293_v10  ;;  %v5003_v43 = vpop.f32.mrb[217].mxu0 }
 0x504   : > { %v5004_v30 = vadd.f32 %v8293_v10, %v5003_v43  ;;  %v5994_v57 = vpop.f32.mrb[218].mxu0 }
 0x505   : > { %5188 = vst [vmem:[%s8307_s15 + $0xd0] sm:$0xff] %v5012_v33  ;;  %v5015_v55 = vadd.f32 %v5994_v57, %v8293_v10  ;;  %v5006_v49 = vpop.f32.mrb[219].mxu0 }
 0x506   : > { %5186 = vst [vmem:[%s8307_s15 + $0xc0] sm:$0xff] %v5004_v30  ;;  %v5007_v8 = vadd.f32 %v8293_v10, %v5006_v49 }
 0x507   : > { %5189 = vst [vmem:[%s8307_s15 + $0xd8] sm:$0xff] %v5015_v55 }
 0x508   : > { %5187 = vst [vmem:[%s8307_s15 + $0xc8] sm:$0xff] %v5007_v8 }
 0x512   : > { %v5997_v38 = vpop.f32.mrb[220].mxu0 }
 0x513   : > { %v5028_v46 = vadd.f32 %v5997_v38, %v8293_v10  ;;  %v5019_v12 = vpop.f32.mrb[221].mxu0 }
 0x514   : > { %v5020_v39 = vadd.f32 %v8293_v10, %v5019_v12  ;;  %v5998_v32 = vpop.f32.mrb[222].mxu0 }
 0x515   : > { %5192 = vst [vmem:[%s8307_s15 + $0xf0] sm:$0xff] %v5028_v46  ;;  %v5031_v11 = vadd.f32 %v5998_v32, %v8293_v10  ;;  %v5022_v60 = vpop.f32.mrb[223].mxu0 }
 0x516   : > { %5190 = vst [vmem:[%s8307_s15 + $0xe0] sm:$0xff] %v5020_v39  ;;  %v5023_v44 = vadd.f32 %v8293_v10, %v5022_v60 }
 0x517   : > { %5193 = vst [vmem:[%s8307_s15 + $0xf8] sm:$0xff] %v5031_v11 }
 0x518   : > { %5191 = vst [vmem:[%s8307_s15 + $0xe8] sm:$0xff] %v5023_v44 }
 0x522   : > { %v6001_v45 = vpop.f32.mrb[224].mxu0 }
 0x523   : > { %v5044_v63 = vadd.f32 %v6001_v45, %v8293_v10  ;;  %v5035_v4 = vpop.f32.mrb[225].mxu0 }
 0x524   : > { %v5036_v21 = vadd.f32 %v8293_v10, %v5035_v4  ;;  %v6002_v1 = vpop.f32.mrb[226].mxu0 }
 0x525   : > { %5196 = vst [vmem:[%s8307_s15 + $0x110] sm:$0xff] %v5044_v63  ;;  %v5047_v13 = vadd.f32 %v6002_v1, %v8293_v10  ;;  %v5038_v2 = vpop.f32.mrb[227].mxu0 }
 0x526   : > { %5194 = vst [vmem:[%s8307_s15 + $0x100] sm:$0xff] %v5036_v21  ;;  %v5039_v42 = vadd.f32 %v8293_v10, %v5038_v2 }
 0x527   : > { %5197 = vst [vmem:[%s8307_s15 + $0x118] sm:$0xff] %v5047_v13 }
 0x528   : > { %5195 = vst [vmem:[%s8307_s15 + $0x108] sm:$0xff] %v5039_v42 }
 0x532   : > { %v6005_v6 = vpop.f32.mrb[228].mxu0 }
 0x533   : > { %v5060_v41 = vadd.f32 %v6005_v6, %v8293_v10  ;;  %v5051_v0 = vpop.f32.mrb[229].mxu0 }
 0x534   : > { %v5052_v52 = vadd.f32 %v8293_v10, %v5051_v0  ;;  %v6006_v61 = vpop.f32.mrb[230].mxu0 }
 0x535   : > { %5200 = vst [vmem:[%s8307_s15 + $0x130] sm:$0xff] %v5060_v41  ;;  %v5063_v29 = vadd.f32 %v6006_v61, %v8293_v10  ;;  %v5054_v54 = vpop.f32.mrb[231].mxu0 }
 0x536   : > { %5198 = vst [vmem:[%s8307_s15 + $0x120] sm:$0xff] %v5052_v52  ;;  %v5055_v37 = vadd.f32 %v8293_v10, %v5054_v54 }
 0x537   : > { %5201 = vst [vmem:[%s8307_s15 + $0x138] sm:$0xff] %v5063_v29 }
 0x538   : > { %5199 = vst [vmem:[%s8307_s15 + $0x128] sm:$0xff] %v5055_v37 }
 0x542   : > { %v6009_v50 = vpop.f32.mrb[232].mxu0 }
 0x543   : > { %v5076_v62 = vadd.f32 %v6009_v50, %v8293_v10  ;;  %v5067_v59 = vpop.f32.mrb[233].mxu0 }
 0x544   : > { %v5068_v34 = vadd.f32 %v8293_v10, %v5067_v59  ;;  %v6010_v18 = vpop.f32.mrb[234].mxu0 }
 0x545   : > { %5204 = vst [vmem:[%s8307_s15 + $0x150] sm:$0xff] %v5076_v62  ;;  %v5079_v25 = vadd.f32 %v6010_v18, %v8293_v10  ;;  %v5070_v19 = vpop.f32.mrb[235].mxu0 }
 0x546   : > { %5202 = vst [vmem:[%s8307_s15 + $0x140] sm:$0xff] %v5068_v34  ;;  %v5071_v5 = vadd.f32 %v8293_v10, %v5070_v19 }
 0x547   : > { %5205 = vst [vmem:[%s8307_s15 + $0x158] sm:$0xff] %v5079_v25 }
 0x548   : > { %5203 = vst [vmem:[%s8307_s15 + $0x148] sm:$0xff] %v5071_v5 }
 0x552   : > { %v6013_v51 = vpop.f32.mrb[236].mxu0 }
 0x553   : > { %v5092_v14 = vadd.f32 %v6013_v51, %v8293_v10  ;;  %v5083_v35 = vpop.f32.mrb[237].mxu0 }
 0x554   : > { %v5084_v56 = vadd.f32 %v8293_v10, %v5083_v35  ;;  %v6014_v47 = vpop.f32.mrb[238].mxu0 }
 0x555   : > { %5208 = vst [vmem:[%s8307_s15 + $0x170] sm:$0xff] %v5092_v14  ;;  %v5095_v26 = vadd.f32 %v6014_v47, %v8293_v10  ;;  %v5086_v36 = vpop.f32.mrb[239].mxu0 }
 0x556   : > { %5206 = vst [vmem:[%s8307_s15 + $0x160] sm:$0xff] %v5084_v56  ;;  %v5087_v53 = vadd.f32 %v8293_v10, %v5086_v36 }
 0x557   : > { %5209 = vst [vmem:[%s8307_s15 + $0x178] sm:$0xff] %v5095_v26 }
 0x558   : > { %5207 = vst [vmem:[%s8307_s15 + $0x168] sm:$0xff] %v5087_v53 }
 0x562   : > { %v6017_v40 = vpop.f32.mrb[240].mxu0 }
 0x563   : > { %v5108_v15 = vadd.f32 %v6017_v40, %v8293_v10  ;;  %v5099_v23 = vpop.f32.mrb[241].mxu0 }
 0x564   : > { %v5100_v3 = vadd.f32 %v8293_v10, %v5099_v23  ;;  %v6018_v48 = vpop.f32.mrb[242].mxu0 }
 0x565   : > { %5212 = vst [vmem:[%s8307_s15 + $0x190] sm:$0xff] %v5108_v15  ;;  %v5111_v28 = vadd.f32 %v6018_v48, %v8293_v10  ;;  %v5102_v17 = vpop.f32.mrb[243].mxu0 }
 0x566   : > { %5210 = vst [vmem:[%s8307_s15 + $0x180] sm:$0xff] %v5100_v3  ;;  %v5103_v20 = vadd.f32 %v8293_v10, %v5102_v17 }
 0x567   : > { %5213 = vst [vmem:[%s8307_s15 + $0x198] sm:$0xff] %v5111_v28 }
 0x568   : > { %5211 = vst [vmem:[%s8307_s15 + $0x188] sm:$0xff] %v5103_v20 }
 0x572   : > { %v6021_v9 = vpop.f32.mrb[244].mxu0 }
 0x573   : > { %v5124_v58 = vadd.f32 %v6021_v9, %v8293_v10  ;;  %v5115_v22 = vpop.f32.mrb[245].mxu0 }
 0x574   : > { %v5116_v31 = vadd.f32 %v8293_v10, %v5115_v22  ;;  %v6022_v16 = vpop.f32.mrb[246].mxu0 }
 0x575   : > { %5216 = vst [vmem:[%s8307_s15 + $0x1b0] sm:$0xff] %v5124_v58  ;;  %v5127_v7 = vadd.f32 %v6022_v16, %v8293_v10  ;;  %v5118_v27 = vpop.f32.mrb[247].mxu0 }
 0x576   : > { %5214 = vst [vmem:[%s8307_s15 + $0x1a0] sm:$0xff] %v5116_v31  ;;  %v5119_v24 = vadd.f32 %v8293_v10, %v5118_v27 }
 0x577   : > { %5217 = vst [vmem:[%s8307_s15 + $0x1b8] sm:$0xff] %v5127_v7 }
 0x578   : > { %5215 = vst [vmem:[%s8307_s15 + $0x1a8] sm:$0xff] %v5119_v24 }
 0x582   : > { %v6025_v33 = vpop.f32.mrb[248].mxu0 }
 0x583   : > { %v5140_v43 = vadd.f32 %v6025_v33, %v8293_v10  ;;  %v5131_v30 = vpop.f32.mrb[249].mxu0 }
 0x584   : > { %v5132_v57 = vadd.f32 %v8293_v10, %v5131_v30  ;;  %v6026_v55 = vpop.f32.mrb[250].mxu0 }
 0x585   : > { %5220 = vst [vmem:[%s8307_s15 + $0x1d0] sm:$0xff] %v5140_v43  ;;  %v5143_v49 = vadd.f32 %v6026_v55, %v8293_v10  ;;  %v5134_v8 = vpop.f32.mrb[251].mxu0 }
 0x586   : > { %5218 = vst [vmem:[%s8307_s15 + $0x1c0] sm:$0xff] %v5132_v57  ;;  %v5135_v38 = vadd.f32 %v8293_v10, %v5134_v8 }
 0x587   : > { %5221 = vst [vmem:[%s8307_s15 + $0x1d8] sm:$0xff] %v5143_v49 }
 0x588   : > { %5219 = vst [vmem:[%s8307_s15 + $0x1c8] sm:$0xff] %v5135_v38 }
 0x592   : > { %v6029_v46 = vpop.f32.mrb[252].mxu0 }
 0x593   : > { %v5156_v12 = vadd.f32 %v6029_v46, %v8293_v10  ;;  %v5147_v39 = vpop.f32.mrb[253].mxu0 }
 0x594   : > { %v5148_v32 = vadd.f32 %v8293_v10, %v5147_v39  ;;  %v6030_v11 = vpop.f32.mrb[254].mxu0 }
 0x595   : > { %5224 = vst [vmem:[%s8307_s15 + $0x1f0] sm:$0xff] %v5156_v12  ;;  %v5159_v60 = vadd.f32 %v6030_v11, %v8293_v10  ;;  %v5150_v44 = vpop.f32.mrb[255].mxu0 }
 0x596   : > { %5222 = vst [vmem:[%s8307_s15 + $0x1e0] sm:$0xff] %v5148_v32  ;;  %v5151_v45 = vadd.f32 %v8293_v10, %v5150_v44 }
 0x597   : > { %5225 = vst [vmem:[%s8307_s15 + $0x1f8] sm:$0xff] %v5159_v60 }
 0x598   : > { %5223 = vst [vmem:[%s8307_s15 + $0x1e8] sm:$0xff] %v5151_v45 }
 0x599   : > { %6898 = shalt.err (!%p6895_p13)
}
 0x59a   : > { %s6899_s21 = scalar_lea.hbm %s8460_s26, 8192  ;;  %s6903_s0 = scalar_lea.hbm %s8700_s17, 16384 }
 0x59b   : > { %p6900_p6 = scmp.ne.s32.totalorder %s8460_s26, %s6899_s21  ;;  %p6904_p8 = scmp.lt.u32.totalorder %s8460_s26, %s8700_s17 }
 0x59c   : > { %p6905_p2 = scmp.lt.u32.totalorder %s6903_s0, %s6899_s21  ;;  %p6907_p1 = scmp.lt.u32.totalorder %s6899_s21, %s8460_s26 }
 0x59d   : > { %p6901_p7 = pnand %p6900_p6, %p8701_p4 }
 0x59e   : > { %p6906_p5 = por %p6905_p2, %p6904_p8 }
 0x59f   : > { %p6902_p9 = pneg %p6901_p7 }
 0x5a0   : > { %p6908_p3 = por %p6907_p1, %p6906_p5 }
 0x5a2   : > { %p6909_p10 = pnand %p6908_p3, %p6902_p9 }
 0x5a4   : > { %6912 = shalt.err (!%p6909_p10)
}
 0x5a5   : > { %s7010_s12 = smov 128   ;;  %s7011_s15 = smov 8  }
 0x5a6   : > { %6415 = dma.vmem_to_hbm [thread:$0]  (%p8701_p4), %s8462_s9, 8192, %s8460_s26, %s5227_s1, %s7010_s12, %s7010_s12, %s7011_s15  }
 0x5a7 PF: > { %s8702_s23 = sld [smem:[#allocation32_spill]]  ;;  %s8703_s25 = sld [smem:[#allocation28_spill]] }
 0x5a8   : > { %s5255_s18 = sand.u32 1, %s6971_s30  }
 0x5a9   : > { %s5256_s19 = scalar_lea.sflag [#allocation5], %s5255_s18 }
 0x5ad   : > { %p8704_p12 = scmp.ne.s32.totalorder %s8702_s23, 0  ;;  %p8705_p11 = scmp.ge.s32.totalorder %s8703_s25, 2 }
 0x5af   : > { %p6447_p0 = pnand %p8705_p11, %p8704_p12 }
 0x5b1   : > { %6966 = dma.done.wait (!%p6447_p0), %s5256_s19, 8192  }
 0x5b2   : > { %6968 = vsyncadd (!%p6447_p0), %s5256_s19, 4294959104  ;;  %s29_s14 = sadd.s32 1, %s8703_s25   ;;  %s8706_s28 = sld [smem:[#allocation31_spill]] }
 0x5b3   : > { %p26_p13 = scmp.ge.s32.totalorder %s29_s14, 4   ;;  %s8707_s22 = sld [smem:[#allocation30_spill]] }
 0x5b4   : > { %s8708_s30 = smov %s6975_s10  ;;  %s8709_s10 = smov %s6979_s11 }
 0x5b5   : > { %s8711_s12 = smov %s6987_s13  ;;  %28 = sbr.rel (!%p26_p13) target bundleno = 16 (0x10), region = 149 }
 0x5b8   : > { %s8710_s11 = smov %s8706_s28 }
 0x5b9   : > { %s8712_s13 = smov %s8707_s22 }
 0x5bc   :  { %5261 = vsyncpa [#allocation4], 1 }
 0x5bd   :  { %5263 = vsyncpa [#allocation4 + $0x1], 1 }
 0x5be   :  { %5264 = vsyncpa [#allocation7], 1 }
 0x5bf   :  { %5265 = vsyncpa [#allocation11], 1 }
 0x5c0   :  { %5266 = vsyncpa [#allocation14], 1 }
 0x5c1   :  { %5267 = vsyncpa [#allocation17], 1 }
 0x5c2   :  { %5268 = vsyncpa [#allocation5], 1 }
 0x5c3   :  { %5270 = vsyncpa [#allocation5 + $0x1], 1 }

</bundles_post_ra>
